<compile_context>
chip_gen: v7x
topology: tpu7x:2x2x1
jax: 0.10.0
libtpu: 0.0.40
codegen_flags: <defaults>
</compile_context>

<pallas_src>
import jax
import jax.numpy as jnp
from jax import lax
from jax.experimental import pallas as pl
from jax.experimental.pallas import tpu as pltpu


def _double_conv_kernel(x_ref, w1_ref, w2_ref, o_ref, xpad1_ref, xpad2_ref):
    """Fused (conv3x3 -> InstanceNorm -> ReLU) x 2 for one batch element.

    x_ref     : (1, H, W, Cin)     input tile (NHWC)
    w1_ref    : (9*Cin, Cmid)      stage-1 weights, rows ordered (dy, dx, cin)
    w2_ref    : (9*Cmid, Cout)     stage-2 weights
    o_ref     : (1, Cout, H*W)     lane-dense output (NCHW after a free reshape)
    xpad1_ref : VMEM (H+2, W+2, Cin)   zero-halo scratch, stage 1
    xpad2_ref : VMEM (H+2, W+2, Cmid)  zero-halo scratch, stage 2 (mid act.)
    """
    _, H, W, _ = x_ref.shape
    inv_n = 1.0 / float(H * W)

    def conv_in_relu(xpad_ref, w_ref):
        C = xpad_ref.shape[-1]
        # im2col: build one (H*W, 9*C) LHS -> single MXU matmul per stage.
        taps = [xpad_ref[dy:dy + H, dx:dx + W, :].reshape(H * W, C)
                for dy in range(3) for dx in range(3)]
        lhs = jnp.concatenate(taps, axis=1)                       # (H*W, 9*C)
        acc = jnp.dot(lhs, w_ref[...], preferred_element_type=jnp.float32)
        # One-pass InstanceNorm stats (biased var, eps=1e-5, affine=False).
        mean = jnp.sum(acc, axis=0, keepdims=True) * inv_n        # (1, Cnext)
        ex2 = jnp.sum(acc * acc, axis=0, keepdims=True) * inv_n
        var = jnp.maximum(ex2 - mean * mean, 0.0)
        y = (acc - mean) * lax.rsqrt(var + 1e-5)
        return jnp.maximum(y, 0.0)                                # (H*W, Cnext)

    # ---- stage 1: zero-halo pad input into VMEM scratch, conv+IN+ReLU ----
    xpad1_ref[...] = jnp.zeros_like(xpad1_ref)
    xpad1_ref[1:H + 1, 1:W + 1, :] = x_ref[0].astype(jnp.float32)
    y1 = conv_in_relu(xpad1_ref, w1_ref)                          # (H*W, Cmid)

    # ---- stage 2: mid activation stays in VMEM (no HBM round trip) ----
    xpad2_ref[...] = jnp.zeros_like(xpad2_ref)
    xpad2_ref[1:H + 1, 1:W + 1, :] = y1.reshape(H, W, -1)
    y2 = conv_in_relu(xpad2_ref, w2_ref)                          # (H*W, Cout)

    # Lane-dense store: H*W (a multiple of 128 here) sits on the lane axis.
    o_ref[0] = y2.T.astype(o_ref.dtype)                           # (Cout, H*W)


def double_conv(x_nchw, w1_oihw, w2_oihw):
    """DoubleConv forward. PyTorch conventions: x NCHW, weights OIHW."""
    N, Cin, H, W = x_nchw.shape
    Cmid = w1_oihw.shape[0]
    Cout = w2_oihw.shape[0]

    # Single input-side layout change (NCHW -> NHWC); the output comes back
    # from the kernel already in NCHW-flat form (no output transpose needed).
    x_nhwc = jnp.transpose(x_nchw, (0, 2, 3, 1))
    # OIHW -> (dy, dx, cin, cout) -> (9*cin, cout): matches the im2col column
    # order (tap-major, channel-minor) used inside the kernel.
    w1 = jnp.transpose(w1_oihw, (2, 3, 1, 0)).reshape(9 * Cin, Cmid)
    w2 = jnp.transpose(w2_oihw, (2, 3, 1, 0)).reshape(9 * Cmid, Cout)

    out_flat = pl.pallas_call(
        _double_conv_kernel,
        out_shape=jax.ShapeDtypeStruct((N, Cout, H * W), x_nchw.dtype),
        grid_spec=pltpu.PrefetchScalarGridSpec(
            num_scalar_prefetch=0,
            grid=(N,),
            in_specs=[
                pl.BlockSpec((1, H, W, Cin), lambda n: (n, 0, 0, 0)),
                pl.BlockSpec((9 * Cin, Cmid), lambda n: (0, 0)),
                pl.BlockSpec((9 * Cmid, Cout), lambda n: (0, 0)),
            ],
            out_specs=pl.BlockSpec((1, Cout, H * W), lambda n: (n, 0, 0)),
            scratch_shapes=[
                pltpu.VMEM((H + 2, W + 2, Cin), jnp.float32),
                pltpu.VMEM((H + 2, W + 2, Cmid), jnp.float32),
            ],
        ),
        compiler_params=pltpu.CompilerParams(
            dimension_semantics=("parallel",),          # batch -> both v7x TCs
            vmem_limit_bytes=32 * 1024 * 1024,          # safe on v5e/v6e/v7x
        ),
    )(x_nhwc, w1, w2)

    # (N, Cout, H*W) -> (N, Cout, H, W): contiguous reshape, no HBM rewrite.
    return out_flat.reshape(N, Cout, H, W)


def _reference(x_nchw, w1_oihw, w2_oihw):
    """Pure-JAX reference for the same forward pass."""
    def stage(x, w_oihw):
        y = lax.conv_general_dilated(
            x, w_oihw, window_strides=(1, 1), padding=((1, 1), (1, 1)),
            dimension_numbers=("NCHW", "OIHW", "NCHW"))
        mean = jnp.mean(y, axis=(2, 3), keepdims=True)
        var = jnp.mean((y - mean) ** 2, axis=(2, 3), keepdims=True)
        y = (y - mean) * lax.rsqrt(var + 1e-5)
        return jnp.maximum(y, 0.0)
    return stage(stage(x_nchw, w1_oihw), w2_oihw)


if __name__ == "__main__":
    key = jax.random.PRNGKey(0)
    kx, kw1, kw2 = jax.random.split(key, 3)

    N, C_in, H, W = 2, 4, 16, 16
    C_mid = 8   # mid_channels defaults to out_channels
    C_out = 8

    x = jax.random.normal(kx, (N, C_in, H, W), dtype=jnp.float32)
    # Deterministic synthetic weights (kaiming-ish scale), PyTorch OIHW layout.
    w1 = jax.random.normal(kw1, (C_mid, C_in, 3, 3), dtype=jnp.float32) * 0.2
    w2 = jax.random.normal(kw2, (C_out, C_mid, 3, 3), dtype=jnp.float32) * 0.2

    out = jax.block_until_ready(jax.jit(double_conv)(x, w1, w2))

    ref = _reference(x, w1, w2)
    assert out.shape == (N, C_out, H, W)
    assert jnp.allclose(out, ref, rtol=1e-3, atol=1e-3), "mismatch vs reference"

    print("KERNEL_OK")
</pallas_src>

<mosaic_0001>
module attributes {stable_mosaic.version = 11 : i64} {
  func.func @_double_conv_kernel(%arg0: i32, %arg1: memref<1x16x16x4xf32, #tpu.memory_space<vmem>>, %arg2: memref<36x8xf32, #tpu.memory_space<vmem>>, %arg3: memref<72x8xf32, #tpu.memory_space<vmem>>, %arg4: memref<1x8x256xf32, #tpu.memory_space<vmem>>, %arg5: memref<18x18x4xf32, #tpu.memory_space<vmem>>, %arg6: memref<18x18x8xf32, #tpu.memory_space<vmem>>) attributes {dimension_semantics = [#tpu.dimension_semantics<parallel>], iteration_bounds = array<i64: 2>, scalar_prefetch = 0 : i64, scratch_operands = 2 : i64, tpu.core_type = #tpu.core_type<tc>, window_params = [{transform_indices = @transform_0, window_bounds = array<i64: 1, 16, 16, 4>}, {pipeline_mode = #tpu.pipeline_mode<synchronous>, transform_indices = @transform_1, window_bounds = array<i64: 36, 8>}, {pipeline_mode = #tpu.pipeline_mode<synchronous>, transform_indices = @transform_2, window_bounds = array<i64: 72, 8>}, {transform_indices = @transform_3, window_bounds = array<i64: 1, 8, 256>}]} {
    %cst = arith.constant 0.000000e+00 : f32
    %0 = vector.broadcast %cst : f32 to vector<18x18x4xf32>
    %c0 = arith.constant 0 : index
    %c0_0 = arith.constant 0 : index
    %c0_1 = arith.constant 0 : index
    %1 = vector.load %arg5[%c0, %c0_0, %c0_1] : memref<18x18x4xf32, #tpu.memory_space<vmem>>, vector<18x18x4xf32>
    tpu.vector_store %arg5[%c0, %c0_0, %c0_1], %0 {strides = array<i32>} : memref<18x18x4xf32, #tpu.memory_space<vmem>>, vector<18x18x4xf32>,
    %c0_2 = arith.constant 0 : index
    %c0_3 = arith.constant 0 : index
    %c0_4 = arith.constant 0 : index
    %c0_5 = arith.constant 0 : index
    %2 = vector.load %arg1[%c0_2, %c0_3, %c0_4, %c0_5] : memref<1x16x16x4xf32, #tpu.memory_space<vmem>>, vector<1x16x16x4xf32>
    %3 = vector.shape_cast %2 : vector<1x16x16x4xf32> to vector<16x16x4xf32>
    %c1 = arith.constant 1 : index
    %c1_6 = arith.constant 1 : index
    %c0_7 = arith.constant 0 : index
    %4 = vector.load %arg5[%c1, %c1_6, %c0_7] : memref<18x18x4xf32, #tpu.memory_space<vmem>>, vector<16x16x4xf32>
    tpu.vector_store %arg5[%c1, %c1_6, %c0_7], %3 {strides = array<i32>} : memref<18x18x4xf32, #tpu.memory_space<vmem>>, vector<16x16x4xf32>,
    %c0_8 = arith.constant 0 : index
    %c0_9 = arith.constant 0 : index
    %c0_10 = arith.constant 0 : index
    %5 = vector.load %arg5[%c0_8, %c0_9, %c0_10] : memref<18x18x4xf32, #tpu.memory_space<vmem>>, vector<16x16x4xf32>
    %6 = vector.shape_cast %5 : vector<16x16x4xf32> to vector<256x4xf32>
    %c0_11 = arith.constant 0 : index
    %c1_12 = arith.constant 1 : index
    %c0_13 = arith.constant 0 : index
    %7 = vector.load %arg5[%c0_11, %c1_12, %c0_13] : memref<18x18x4xf32, #tpu.memory_space<vmem>>, vector<16x16x4xf32>
    %8 = vector.shape_cast %7 : vector<16x16x4xf32> to vector<256x4xf32>
    %c0_14 = arith.constant 0 : index
    %c2 = arith.constant 2 : index
    %c0_15 = arith.constant 0 : index
    %9 = vector.load %arg5[%c0_14, %c2, %c0_15] : memref<18x18x4xf32, #tpu.memory_space<vmem>>, vector<16x16x4xf32>
    %10 = vector.shape_cast %9 : vector<16x16x4xf32> to vector<256x4xf32>
    %c1_16 = arith.constant 1 : index
    %c0_17 = arith.constant 0 : index
    %c0_18 = arith.constant 0 : index
    %11 = vector.load %arg5[%c1_16, %c0_17, %c0_18] : memref<18x18x4xf32, #tpu.memory_space<vmem>>, vector<16x16x4xf32>
    %12 = vector.shape_cast %11 : vector<16x16x4xf32> to vector<256x4xf32>
    %c1_19 = arith.constant 1 : index
    %c1_20 = arith.constant 1 : index
    %c0_21 = arith.constant 0 : index
    %13 = vector.load %arg5[%c1_19, %c1_20, %c0_21] : memref<18x18x4xf32, #tpu.memory_space<vmem>>, vector<16x16x4xf32>
    %14 = vector.shape_cast %13 : vector<16x16x4xf32> to vector<256x4xf32>
    %c1_22 = arith.constant 1 : index
    %c2_23 = arith.constant 2 : index
    %c0_24 = arith.constant 0 : index
    %15 = vector.load %arg5[%c1_22, %c2_23, %c0_24] : memref<18x18x4xf32, #tpu.memory_space<vmem>>, vector<16x16x4xf32>
    %16 = vector.shape_cast %15 : vector<16x16x4xf32> to vector<256x4xf32>
    %c2_25 = arith.constant 2 : index
    %c0_26 = arith.constant 0 : index
    %c0_27 = arith.constant 0 : index
    %17 = vector.load %arg5[%c2_25, %c0_26, %c0_27] : memref<18x18x4xf32, #tpu.memory_space<vmem>>, vector<16x16x4xf32>
    %18 = vector.shape_cast %17 : vector<16x16x4xf32> to vector<256x4xf32>
    %c2_28 = arith.constant 2 : index
    %c1_29 = arith.constant 1 : index
    %c0_30 = arith.constant 0 : index
    %19 = vector.load %arg5[%c2_28, %c1_29, %c0_30] : memref<18x18x4xf32, #tpu.memory_space<vmem>>, vector<16x16x4xf32>
    %20 = vector.shape_cast %19 : vector<16x16x4xf32> to vector<256x4xf32>
    %c2_31 = arith.constant 2 : index
    %c2_32 = arith.constant 2 : index
    %c0_33 = arith.constant 0 : index
    %21 = vector.load %arg5[%c2_31, %c2_32, %c0_33] : memref<18x18x4xf32, #tpu.memory_space<vmem>>, vector<16x16x4xf32>
    %22 = vector.shape_cast %21 : vector<16x16x4xf32> to vector<256x4xf32>
    %23 = tpu.concatenate %6, %8, %10, %12, %14, %16, %18, %20, %22 in 1 : vector<256x4xf32>, vector<256x4xf32>, vector<256x4xf32>, vector<256x4xf32>, vector<256x4xf32>, vector<256x4xf32>, vector<256x4xf32>, vector<256x4xf32>, vector<256x4xf32> -> vector<256x36xf32>
    %c0_34 = arith.constant 0 : index
    %c0_35 = arith.constant 0 : index
    %24 = vector.load %arg2[%c0_34, %c0_35] : memref<36x8xf32, #tpu.memory_space<vmem>>, vector<36x8xf32>
    %cst_36 = arith.constant dense<0.000000e+00> : vector<256x8xf32>
    %25 = tpu.matmul %23, %24, %cst_36 {dimension_numbers = #tpu.dot_dimension_numbers<[1], [0], [0], [1], [0, 0, 1, 1], [], []>} : vector<256x36xf32>, vector<36x8xf32>, vector<256x8xf32> -> vector<256x8xf32>
    %cst_37 = arith.constant dense<0.000000e+00> : vector<8xf32>
    %26 = vector.multi_reduction <add>, %25, %cst_37 [0] : vector<256x8xf32> to vector<8xf32>
    %27 = vector.shape_cast %26 : vector<8xf32> to vector<1x8xf32>
    %cst_38 = arith.constant 3.906250e-03 : f32
    %28 = vector.broadcast %cst_38 : f32 to vector<1x8xf32>
    %29 = arith.mulf %27, %28 : vector<1x8xf32>
    %30 = arith.mulf %25, %25 : vector<256x8xf32>
    %cst_39 = arith.constant dense<0.000000e+00> : vector<8xf32>
    %31 = vector.multi_reduction <add>, %30, %cst_39 [0] : vector<256x8xf32> to vector<8xf32>
    %32 = vector.shape_cast %31 : vector<8xf32> to vector<1x8xf32>
    %cst_40 = arith.constant 3.906250e-03 : f32
    %33 = vector.broadcast %cst_40 : f32 to vector<1x8xf32>
    %34 = arith.mulf %32, %33 : vector<1x8xf32>
    %35 = arith.mulf %29, %29 : vector<1x8xf32>
    %36 = arith.subf %34, %35 : vector<1x8xf32>
    %cst_41 = arith.constant 0.000000e+00 : f32
    %37 = vector.broadcast %cst_41 : f32 to vector<1x8xf32>
    %38 = arith.maximumf %36, %37 : vector<1x8xf32>
    %39 = vector.broadcast %29 : vector<1x8xf32> to vector<256x8xf32>
    %40 = arith.subf %25, %39 : vector<256x8xf32>
    %cst_42 = arith.constant 9.99999974E-6 : f32
    %41 = vector.broadcast %cst_42 : f32 to vector<1x8xf32>
    %42 = arith.addf %38, %41 : vector<1x8xf32>
    %43 = math.rsqrt %42 : vector<1x8xf32>
    %44 = vector.broadcast %43 : vector<1x8xf32> to vector<256x8xf32>
    %45 = arith.mulf %40, %44 : vector<256x8xf32>
    %cst_43 = arith.constant 0.000000e+00 : f32
    %46 = vector.broadcast %cst_43 : f32 to vector<256x8xf32>
    %47 = arith.maximumf %45, %46 : vector<256x8xf32>
    %cst_44 = arith.constant 0.000000e+00 : f32
    %48 = vector.broadcast %cst_44 : f32 to vector<18x18x8xf32>
    %c0_45 = arith.constant 0 : index
    %c0_46 = arith.constant 0 : index
    %c0_47 = arith.constant 0 : index
    %49 = vector.load %arg6[%c0_45, %c0_46, %c0_47] : memref<18x18x8xf32, #tpu.memory_space<vmem>>, vector<18x18x8xf32>
    tpu.vector_store %arg6[%c0_45, %c0_46, %c0_47], %48 {strides = array<i32>} : memref<18x18x8xf32, #tpu.memory_space<vmem>>, vector<18x18x8xf32>,
    %50 = vector.shape_cast %47 : vector<256x8xf32> to vector<16x16x8xf32>
    %c1_48 = arith.constant 1 : index
    %c1_49 = arith.constant 1 : index
    %c0_50 = arith.constant 0 : index
    %51 = vector.load %arg6[%c1_48, %c1_49, %c0_50] : memref<18x18x8xf32, #tpu.memory_space<vmem>>, vector<16x16x8xf32>
    tpu.vector_store %arg6[%c1_48, %c1_49, %c0_50], %50 {strides = array<i32>} : memref<18x18x8xf32, #tpu.memory_space<vmem>>, vector<16x16x8xf32>,
    %c0_51 = arith.constant 0 : index
    %c0_52 = arith.constant 0 : index
    %c0_53 = arith.constant 0 : index
    %52 = vector.load %arg6[%c0_51, %c0_52, %c0_53] : memref<18x18x8xf32, #tpu.memory_space<vmem>>, vector<16x16x8xf32>
    %53 = vector.shape_cast %52 : vector<16x16x8xf32> to vector<256x8xf32>
    %c0_54 = arith.constant 0 : index
    %c1_55 = arith.constant 1 : index
    %c0_56 = arith.constant 0 : index
    %54 = vector.load %arg6[%c0_54, %c1_55, %c0_56] : memref<18x18x8xf32, #tpu.memory_space<vmem>>, vector<16x16x8xf32>
    %55 = vector.shape_cast %54 : vector<16x16x8xf32> to vector<256x8xf32>
    %c0_57 = arith.constant 0 : index
    %c2_58 = arith.constant 2 : index
    %c0_59 = arith.constant 0 : index
    %56 = vector.load %arg6[%c0_57, %c2_58, %c0_59] : memref<18x18x8xf32, #tpu.memory_space<vmem>>, vector<16x16x8xf32>
    %57 = vector.shape_cast %56 : vector<16x16x8xf32> to vector<256x8xf32>
    %c1_60 = arith.constant 1 : index
    %c0_61 = arith.constant 0 : index
    %c0_62 = arith.constant 0 : index
    %58 = vector.load %arg6[%c1_60, %c0_61, %c0_62] : memref<18x18x8xf32, #tpu.memory_space<vmem>>, vector<16x16x8xf32>
    %59 = vector.shape_cast %58 : vector<16x16x8xf32> to vector<256x8xf32>
    %c1_63 = arith.constant 1 : index
    %c1_64 = arith.constant 1 : index
    %c0_65 = arith.constant 0 : index
    %60 = vector.load %arg6[%c1_63, %c1_64, %c0_65] : memref<18x18x8xf32, #tpu.memory_space<vmem>>, vector<16x16x8xf32>
    %61 = vector.shape_cast %60 : vector<16x16x8xf32> to vector<256x8xf32>
    %c1_66 = arith.constant 1 : index
    %c2_67 = arith.constant 2 : index
    %c0_68 = arith.constant 0 : index
    %62 = vector.load %arg6[%c1_66, %c2_67, %c0_68] : memref<18x18x8xf32, #tpu.memory_space<vmem>>, vector<16x16x8xf32>
    %63 = vector.shape_cast %62 : vector<16x16x8xf32> to vector<256x8xf32>
    %c2_69 = arith.constant 2 : index
    %c0_70 = arith.constant 0 : index
    %c0_71 = arith.constant 0 : index
    %64 = vector.load %arg6[%c2_69, %c0_70, %c0_71] : memref<18x18x8xf32, #tpu.memory_space<vmem>>, vector<16x16x8xf32>
    %65 = vector.shape_cast %64 : vector<16x16x8xf32> to vector<256x8xf32>
    %c2_72 = arith.constant 2 : index
    %c1_73 = arith.constant 1 : index
    %c0_74 = arith.constant 0 : index
    %66 = vector.load %arg6[%c2_72, %c1_73, %c0_74] : memref<18x18x8xf32, #tpu.memory_space<vmem>>, vector<16x16x8xf32>
    %67 = vector.shape_cast %66 : vector<16x16x8xf32> to vector<256x8xf32>
    %c2_75 = arith.constant 2 : index
    %c2_76 = arith.constant 2 : index
    %c0_77 = arith.constant 0 : index
    %68 = vector.load %arg6[%c2_75, %c2_76, %c0_77] : memref<18x18x8xf32, #tpu.memory_space<vmem>>, vector<16x16x8xf32>
    %69 = vector.shape_cast %68 : vector<16x16x8xf32> to vector<256x8xf32>
    %70 = tpu.concatenate %53, %55, %57, %59, %61, %63, %65, %67, %69 in 1 : vector<256x8xf32>, vector<256x8xf32>, vector<256x8xf32>, vector<256x8xf32>, vector<256x8xf32>, vector<256x8xf32>, vector<256x8xf32>, vector<256x8xf32>, vector<256x8xf32> -> vector<256x72xf32>
    %c0_78 = arith.constant 0 : index
    %c0_79 = arith.constant 0 : index
    %71 = vector.load %arg3[%c0_78, %c0_79] : memref<72x8xf32, #tpu.memory_space<vmem>>, vector<72x8xf32>
    %cst_80 = arith.constant dense<0.000000e+00> : vector<256x8xf32>
    %72 = tpu.matmul %70, %71, %cst_80 {dimension_numbers = #tpu.dot_dimension_numbers<[1], [0], [0], [1], [0, 0, 1, 1], [], []>} : vector<256x72xf32>, vector<72x8xf32>, vector<256x8xf32> -> vector<256x8xf32>
    %cst_81 = arith.constant dense<0.000000e+00> : vector<8xf32>
    %73 = vector.multi_reduction <add>, %72, %cst_81 [0] : vector<256x8xf32> to vector<8xf32>
    %74 = vector.shape_cast %73 : vector<8xf32> to vector<1x8xf32>
    %cst_82 = arith.constant 3.906250e-03 : f32
    %75 = vector.broadcast %cst_82 : f32 to vector<1x8xf32>
    %76 = arith.mulf %74, %75 : vector<1x8xf32>
    %77 = arith.mulf %72, %72 : vector<256x8xf32>
    %cst_83 = arith.constant dense<0.000000e+00> : vector<8xf32>
    %78 = vector.multi_reduction <add>, %77, %cst_83 [0] : vector<256x8xf32> to vector<8xf32>
    %79 = vector.shape_cast %78 : vector<8xf32> to vector<1x8xf32>
    %cst_84 = arith.constant 3.906250e-03 : f32
    %80 = vector.broadcast %cst_84 : f32 to vector<1x8xf32>
    %81 = arith.mulf %79, %80 : vector<1x8xf32>
    %82 = arith.mulf %76, %76 : vector<1x8xf32>
    %83 = arith.subf %81, %82 : vector<1x8xf32>
    %cst_85 = arith.constant 0.000000e+00 : f32
    %84 = vector.broadcast %cst_85 : f32 to vector<1x8xf32>
    %85 = arith.maximumf %83, %84 : vector<1x8xf32>
    %86 = vector.broadcast %76 : vector<1x8xf32> to vector<256x8xf32>
    %87 = arith.subf %72, %86 : vector<256x8xf32>
    %cst_86 = arith.constant 9.99999974E-6 : f32
    %88 = vector.broadcast %cst_86 : f32 to vector<1x8xf32>
    %89 = arith.addf %85, %88 : vector<1x8xf32>
    %90 = math.rsqrt %89 : vector<1x8xf32>
    %91 = vector.broadcast %90 : vector<1x8xf32> to vector<256x8xf32>
    %92 = arith.mulf %87, %91 : vector<256x8xf32>
    %cst_87 = arith.constant 0.000000e+00 : f32
    %93 = vector.broadcast %cst_87 : f32 to vector<256x8xf32>
    %94 = arith.maximumf %92, %93 : vector<256x8xf32>
    %95 = tpu.transpose %94, [1, 0] : vector<256x8xf32> -> vector<8x256xf32>
    %c0_88 = arith.constant 0 : index
    %c0_89 = arith.constant 0 : index
    %c0_90 = arith.constant 0 : index
    %96 = vector.load %arg4[%c0_88, %c0_89, %c0_90] : memref<1x8x256xf32, #tpu.memory_space<vmem>>, vector<1x8x256xf32>
    %97 = vector.shape_cast %96 : vector<1x8x256xf32> to vector<8x256xf32>
    %98 = vector.shape_cast %95 : vector<8x256xf32> to vector<1x8x256xf32>
    tpu.vector_store %arg4[%c0_88, %c0_89, %c0_90], %98 {strides = array<i32>} : memref<1x8x256xf32, #tpu.memory_space<vmem>>, vector<1x8x256xf32>,
    return
  }
  func.func @transform_0(%arg0: i32) -> (i32, i32, i32, i32) {
    %c0_i32 = arith.constant 0 : i32
    %c0_i32_0 = arith.constant 0 : i32
    %c0_i32_1 = arith.constant 0 : i32
    %c0_i32_2 = arith.constant 0 : i32
    return %arg0, %c0_i32, %c0_i32_0, %c0_i32_1 : i32, i32, i32, i32
  }
  func.func @transform_1(%arg0: i32) -> (i32, i32) {
    %c0_i32 = arith.constant 0 : i32
    %c0_i32_0 = arith.constant 0 : i32
    %c0_i32_1 = arith.constant 0 : i32
    return %c0_i32, %c0_i32_0 : i32, i32
  }
  func.func @transform_2(%arg0: i32) -> (i32, i32) {
    %c0_i32 = arith.constant 0 : i32
    %c0_i32_0 = arith.constant 0 : i32
    %c0_i32_1 = arith.constant 0 : i32
    return %c0_i32, %c0_i32_0 : i32, i32
  }
  func.func @transform_3(%arg0: i32) -> (i32, i32, i32) {
    %c0_i32 = arith.constant 0 : i32
    %c0_i32_0 = arith.constant 0 : i32
    %c0_i32_1 = arith.constant 0 : i32
    return %arg0, %c0_i32, %c0_i32_0 : i32, i32, i32
  }
}

</mosaic_0001>

<bundles_post_ra>
// kernel: double_conv.1
= control target key start
LH: loop header
LB: loop body
LE: loop exit
PB: predicated region body
PF: predicated region fallthrough
CT: control target
= control target key end

     0   :  { %s5258_s12 = smov 0   ;;  %s8536_s0 = inlined_call_operand.vmem [shape: f32[2,16,16,4], index: 0, kind: input, shape index: {}]   ;;  %s8537_s1 = inlined_call_operand.vmem [shape: f32[36,8], index: 1, kind: input, shape index: {}]   ;;  %s8538_s2 = inlined_call_operand.vmem [shape: f32[72,8], index: 2, kind: input, shape index: {}]   ;;  %s8539_s3 = inlined_call_operand.vmem [shape: f32[2,8,256], index: 3, kind: output, shape index: {}]  }
   0x1 LB: > { %s4858_s13 = sadd.s32 4294967295, %s5223_s12   ;;  %p4862_p0 = scmp.ge.s32.totalorder %s5223_s12, 1  ;;  %s5223_s12 = sphi %s5258_s12, %s13_s12  }
   0x2   : > { %p137_p1 = scmp.lt.s32.totalorder %s5223_s12, 3 }
   0x4   : > { %p138_p2 = pnand %p4862_p0, %p137_p1 }
   0x6   : > { %141 = sbr.rel (%p138_p2) target bundleno = 1948 (0x79c), region = 32 }
   0xd   : > { %vm171_vm0 = vcmask 31744   ;;  %vm174_vm1 = vcmask 25600   ;;  %p5268_p3 = scmp.lt.s32.totalorder %s4858_s13, 1  ;;  %v8540_v0 = vmov 0.0   ;;  %s5226_s19 = smov 4   ;;  %vm1637_vm2 = vcmask 64512  }
   0xe   : > { %172 = vst.msk [vmem:[#allocation2] sm:$0xff] %vm171_vm0, %v8540_v0  ;;  %173 = vst.msk [vmem:[#allocation2 + $0x8] sm:$0xff] %vm171_vm0, %v8540_v0  ;;  %s5227_s20 = smov 8   ;;  %s5228_s21 = smov 12   ;;  %vm1970_vm3 = vcmask 1043456   ;;  %vm1670_vm4 = vcmask 97280  }
   0xf   : > { %176 = vst.msk [vmem:[#allocation2 + $0x18] sm:$0xff] %vm171_vm0, %v8540_v0  ;;  %177 = vst.msk [vmem:[#allocation2 + $0x20] sm:$0xff] %vm171_vm0, %v8540_v0  ;;  %s8853_s13 = smov (!%p5268_p3, %s4858_s13), 1  ;;  %s5229_s22 = smov 16   ;;  %vm1703_vm5 = vcmask 130048   ;;  %vm1736_vm6 = vcmask 162816  }
  0x10   : > { %179 = vst.msk [vmem:[#allocation2 + $0x30] sm:$0xff] %vm171_vm0, %v8540_v0  ;;  %180 = vst.msk [vmem:[#allocation2 + $0x38] sm:$0xff] %vm171_vm0, %v8540_v0  ;;  %s4934_s15 = sshll.u32 %s8853_s13, 8  ;;  %s5230_s23 = smov 20   ;;  %vm1769_vm7 = vcmask 195584   ;;  %vm1802_vm8 = vcmask 228352  }
  0x11   : > { %182 = vst.msk [vmem:[#allocation2 + $0x48] sm:$0xff] %vm171_vm0, %v8540_v0  ;;  %183 = vst.msk [vmem:[#allocation2 + $0x50] sm:$0xff] %vm171_vm0, %v8540_v0  ;;  %s5390_s18 = scalar_lea.vmem %s8536_s0, %s4934_s15  ;;  %s5231_s7 = smov 24   ;;  %vm1835_vm9 = vcmask 261120   ;;  %vm1873_vm10 = vcmask 293888   ;;  %vm2474_vm11 = vcmask 58368  }
  0x12   : > { %185 = vst.msk [vmem:[#allocation2 + $0x60] sm:$0xff] %vm171_vm0, %v8540_v0  ;;  %186 = vst.msk [vmem:[#allocation2 + $0x68] sm:$0xff] %vm171_vm0, %v8540_v0  ;;  %v227_v1 = vld [vmem:[%s5390_s18] sm:$0xff]  ;;  %v229_v2 = vld [vmem:[%s5390_s18 + $0x10] sm:$0xff]  ;;  %s5232_s8 = smov 28   ;;  %s5233_s9 = smov 32  }
  0x13   : > { %188 = vst.msk [vmem:[#allocation2 + $0x78] sm:$0xff] %vm171_vm0, %v8540_v0  ;;  %189 = vst.msk [vmem:[#allocation2 + $0x80] sm:$0xff] %vm171_vm0, %v8540_v0  ;;  %v228_v3 = vld [vmem:[%s5390_s18 + $0x8] sm:$0xff]  ;;  %v231_v4 = vld [vmem:[%s5390_s18 + $0x20] sm:$0xff]  ;;  %s5234_s16 = smov 40   ;;  %s5236_s30 = smov 56  }
  0x14   : > { %191 = vst.msk [vmem:[#allocation2 + $0x90] sm:$0xff] %vm171_vm0, %v8540_v0  ;;  %192 = vst.msk [vmem:[#allocation2 + $0x98] sm:$0xff] %vm171_vm0, %v8540_v0  ;;  %v230_v5 = vld [vmem:[%s5390_s18 + $0x18] sm:$0xff]  ;;  %v233_v6 = vld [vmem:[%s5390_s18 + $0x30] sm:$0xff]  ;;  %s5237_s6 = smov 64   ;;  %vm4001_vm12 = vcmask 326656  }
  0x15   : > { %194 = vst.msk [vmem:[#allocation2 + $0xa8] sm:$0xff] %vm171_vm0, %v8540_v0  ;;  %195 = vst.msk [vmem:[#allocation2 + $0xb0] sm:$0xff] %vm171_vm0, %v8540_v0  ;;  %v324_v7 = vld [vmem:[#allocation2 + $0x1] sm:$0xff]  ;;  %v234_v11 = vld [vmem:[%s5390_s18 + $0x38] sm:$0xff]  ;;  %vm4034_vm13 = vcmask 392192   ;;  %vm4067_vm14 = vcmask 457728  }
  0x16   : > { %197 = vst.msk [vmem:[#allocation2 + $0xc0] sm:$0xff] %vm171_vm0, %v8540_v0  ;;  %198 = vst.msk [vmem:[#allocation2 + $0xc8] sm:$0xff] %vm171_vm0, %v8540_v0  ;;  %v232_v9 = vld [vmem:[%s5390_s18 + $0x28] sm:$0xff]  ;;  %613 = vrot.lane.b32.xlu0 %v324_v7, %s5226_s19  ;;  %v235_v10 = vld [vmem:[%s5390_s18 + $0x40] sm:$0xff]  ;;  %vm4100_vm15 = vcmask 523264  }
  0x17   : > { %200 = vst.msk [vmem:[#allocation2 + $0xd8] sm:$0xff] %vm171_vm0, %v8540_v0  ;;  %201 = vst.msk [vmem:[#allocation2 + $0xe0] sm:$0xff] %vm171_vm0, %v8540_v0  ;;  %v237_v12 = vld [vmem:[%s5390_s18 + $0x50] sm:$0xff]  ;;  %v236_v13 = vld [vmem:[%s5390_s18 + $0x48] sm:$0xff] }
  0x18   : > { %203 = vst.msk [vmem:[#allocation2 + $0xf0] sm:$0xff] %vm171_vm0, %v8540_v0  ;;  %204 = vst.msk [vmem:[#allocation2 + $0xf8] sm:$0xff] %vm171_vm0, %v8540_v0  ;;  %v239_v14 = vld [vmem:[%s5390_s18 + $0x60] sm:$0xff]  ;;  %v238_v15 = vld [vmem:[%s5390_s18 + $0x58] sm:$0xff] }
  0x19   : > { %206 = vst.msk [vmem:[#allocation2 + $0x108] sm:$0xff] %vm171_vm0, %v8540_v0  ;;  %207 = vst.msk [vmem:[#allocation2 + $0x110] sm:$0xff] %vm171_vm0, %v8540_v0  ;;  %v241_v16 = vld [vmem:[%s5390_s18 + $0x70] sm:$0xff]  ;;  %v240_v17 = vld [vmem:[%s5390_s18 + $0x68] sm:$0xff] }
  0x1a   : > { %209 = vst.msk [vmem:[#allocation2 + $0x120] sm:$0xff] %vm171_vm0, %v8540_v0  ;;  %210 = vst.msk [vmem:[#allocation2 + $0x128] sm:$0xff] %vm171_vm0, %v8540_v0  ;;  %v243_v18 = vld [vmem:[%s5390_s18 + $0x80] sm:$0xff]  ;;  %v242_v19 = vld [vmem:[%s5390_s18 + $0x78] sm:$0xff] }
  0x1b   : > { %212 = vst.msk [vmem:[#allocation2 + $0x138] sm:$0xff] %vm171_vm0, %v8540_v0  ;;  %213 = vst.msk [vmem:[#allocation2 + $0x140] sm:$0xff] %vm171_vm0, %v8540_v0  ;;  %v245_v20 = vld [vmem:[%s5390_s18 + $0x90] sm:$0xff]  ;;  %v244_v21 = vld [vmem:[%s5390_s18 + $0x88] sm:$0xff] }
  0x1c   : > { %215 = vst.msk [vmem:[#allocation2 + $0x150] sm:$0xff] %vm171_vm0, %v8540_v0  ;;  %216 = vst.msk [vmem:[#allocation2 + $0x158] sm:$0xff] %vm171_vm0, %v8540_v0  ;;  %v247_v22 = vld [vmem:[%s5390_s18 + $0xa0] sm:$0xff]  ;;  %v246_v23 = vld [vmem:[%s5390_s18 + $0x98] sm:$0xff] }
  0x1d   : > { %218 = vst.msk [vmem:[#allocation2 + $0x168] sm:$0xff] %vm171_vm0, %v8540_v0  ;;  %219 = vst.msk [vmem:[#allocation2 + $0x170] sm:$0xff] %vm171_vm0, %v8540_v0  ;;  %v249_v24 = vld [vmem:[%s5390_s18 + $0xb0] sm:$0xff]  ;;  %v248_v28 = vld [vmem:[%s5390_s18 + $0xa8] sm:$0xff] }
  0x1e   : > { %221 = vst.msk [vmem:[#allocation2 + $0x180] sm:$0xff] %vm171_vm0, %v8540_v0  ;;  %222 = vst.msk [vmem:[#allocation2 + $0x188] sm:$0xff] %vm171_vm0, %v8540_v0  ;;  %v251_v29 = vld [vmem:[%s5390_s18 + $0xc0] sm:$0xff]  ;;  %v250_v33 = vld [vmem:[%s5390_s18 + $0xb8] sm:$0xff] }
  0x1f   : > { %224 = vst.msk [vmem:[#allocation2 + $0x198] sm:$0xff] %vm171_vm0, %v8540_v0  ;;  %225 = vst.msk [vmem:[#allocation2 + $0x1a0] sm:$0xff] %vm171_vm0, %v8540_v0  ;;  %v253_v34 = vld [vmem:[%s5390_s18 + $0xd0] sm:$0xff]  ;;  %v252_v35 = vld [vmem:[%s5390_s18 + $0xc8] sm:$0xff] }
  0x20   : > { %175 = vst.msk [vmem:[#allocation2 + $0x10] sm:$0x3] %vm174_vm1, %v8540_v0  ;;  %178 = vst.msk [vmem:[#allocation2 + $0x28] sm:$0x3] %vm174_vm1, %v8540_v0  ;;  %v255_v36 = vld [vmem:[%s5390_s18 + $0xe0] sm:$0xff]  ;;  %v254_v37 = vld [vmem:[%s5390_s18 + $0xd8] sm:$0xff] }
  0x21   : > { %181 = vst.msk [vmem:[#allocation2 + $0x40] sm:$0x3] %vm174_vm1, %v8540_v0  ;;  %184 = vst.msk [vmem:[#allocation2 + $0x58] sm:$0x3] %vm174_vm1, %v8540_v0  ;;  %v256_v39 = vld [vmem:[%s5390_s18 + $0xe8] sm:$0xff]  ;;  %v257_v58 = vld [vmem:[%s5390_s18 + $0xf0] sm:$0xff] }
  0x22   : > { %187 = vst.msk [vmem:[#allocation2 + $0x70] sm:$0x3] %vm174_vm1, %v8540_v0  ;;  %190 = vst.msk [vmem:[#allocation2 + $0x88] sm:$0x3] %vm174_vm1, %v8540_v0  ;;  %v258_v62 = vld [vmem:[%s5390_s18 + $0xf8] sm:$0xff] }
  0x23   : > { %193 = vst.msk [vmem:[#allocation2 + $0xa0] sm:$0x3] %vm174_vm1, %v8540_v0  ;;  %196 = vst.msk [vmem:[#allocation2 + $0xb8] sm:$0x3] %vm174_vm1, %v8540_v0 }
  0x24   : > { %199 = vst.msk [vmem:[#allocation2 + $0xd0] sm:$0x3] %vm174_vm1, %v8540_v0  ;;  %202 = vst.msk [vmem:[#allocation2 + $0xe8] sm:$0x3] %vm174_vm1, %v8540_v0 }
  0x25   : > { %205 = vst.msk [vmem:[#allocation2 + $0x100] sm:$0x3] %vm174_vm1, %v8540_v0  ;;  %208 = vst.msk [vmem:[#allocation2 + $0x118] sm:$0x3] %vm174_vm1, %v8540_v0 }
  0x26   : > { %211 = vst.msk [vmem:[#allocation2 + $0x130] sm:$0x3] %vm174_vm1, %v8540_v0  ;;  %214 = vst.msk [vmem:[#allocation2 + $0x148] sm:$0x3] %vm174_vm1, %v8540_v0 }
  0x27   : > { %217 = vst.msk [vmem:[#allocation2 + $0x160] sm:$0x3] %vm174_vm1, %v8540_v0  ;;  %220 = vst.msk [vmem:[#allocation2 + $0x178] sm:$0x3] %vm174_vm1, %v8540_v0  ;;  %v325_v8 = vld [vmem:[#allocation2 + $0x9] sm:$0xff] }
  0x28   : > { %223 = vst.msk [vmem:[#allocation2 + $0x190] sm:$0x3] %vm174_vm1, %v8540_v0  ;;  %226 = vst.msk [vmem:[#allocation2 + $0x1a8] sm:$0x3] %vm174_vm1, %v8540_v0  ;;  %615 = vrot.lane.b32.xlu0 %v325_v8, %s5226_s19 }
  0x29   : > { %260 = vst.msk [vmem:[#allocation2 + $0x19] sm:$0xff] %vm171_vm0, %v227_v1  ;;  %262 = vst.msk [vmem:[#allocation2 + $0x31] sm:$0xff] %vm171_vm0, %v229_v2  ;;  %v356_v1 = vld [vmem:[#allocation2 + $0x2] sm:$0xff] }
  0x2a   : > { %261 = vst.msk [vmem:[#allocation2 + $0x21] sm:$0xff] %vm171_vm0, %v228_v3  ;;  %264 = vst.msk [vmem:[#allocation2 + $0x49] sm:$0xff] %vm171_vm0, %v231_v4  ;;  %v357_v4 = vld [vmem:[#allocation2 + $0xa] sm:$0xff] }
  0x2b   : > { %263 = vst.msk [vmem:[#allocation2 + $0x39] sm:$0xff] %vm171_vm0, %v230_v5  ;;  %266 = vst.msk [vmem:[#allocation2 + $0x61] sm:$0xff] %vm171_vm0, %v233_v6 }
  0x2c   : > { %265 = vst.msk [vmem:[#allocation2 + $0x51] sm:$0xff] %vm171_vm0, %v232_v9  ;;  %268 = vst.msk [vmem:[#allocation2 + $0x79] sm:$0xff] %vm171_vm0, %v235_v10 }
  0x2d   : > { %267 = vst.msk [vmem:[#allocation2 + $0x69] sm:$0xff] %vm171_vm0, %v234_v11  ;;  %270 = vst.msk [vmem:[#allocation2 + $0x91] sm:$0xff] %vm171_vm0, %v237_v12 }
  0x2e   : > { %269 = vst.msk [vmem:[#allocation2 + $0x81] sm:$0xff] %vm171_vm0, %v236_v13  ;;  %272 = vst.msk [vmem:[#allocation2 + $0xa9] sm:$0xff] %vm171_vm0, %v239_v14 }
  0x2f   : > { %271 = vst.msk [vmem:[#allocation2 + $0x99] sm:$0xff] %vm171_vm0, %v238_v15  ;;  %274 = vst.msk [vmem:[#allocation2 + $0xc1] sm:$0xff] %vm171_vm0, %v241_v16 }
  0x30   : > { %273 = vst.msk [vmem:[#allocation2 + $0xb1] sm:$0xff] %vm171_vm0, %v240_v17  ;;  %276 = vst.msk [vmem:[#allocation2 + $0xd9] sm:$0xff] %vm171_vm0, %v243_v18  ;;  %v5435_v25 = vld [vmem:[#allocation2 + $0x19] sm:$0xff]  ;;  %v5437_v26 = vld [vmem:[#allocation2 + $0x31] sm:$0xff] }
  0x31   : > { %275 = vst.msk [vmem:[#allocation2 + $0xc9] sm:$0xff] %vm171_vm0, %v242_v19  ;;  %278 = vst.msk [vmem:[#allocation2 + $0xf1] sm:$0xff] %vm171_vm0, %v245_v20  ;;  %617 = vrot.lane.b32.xlu1 %v5435_v25, %s5226_s19  ;;  %v5444_v27 = vld [vmem:[#allocation2 + $0x21] sm:$0xff]  ;;  %621 = vrot.lane.b32.xlu0 %v5437_v26, %s5226_s19  ;;  %v5452_v30 = vld [vmem:[#allocation2 + $0x49] sm:$0xff] }
  0x32   : > { %277 = vst.msk [vmem:[#allocation2 + $0xe1] sm:$0xff] %vm171_vm0, %v244_v21  ;;  %280 = vst.msk [vmem:[#allocation2 + $0x109] sm:$0xff] %vm171_vm0, %v247_v22  ;;  %v5456_v31 = vld [vmem:[#allocation2 + $0x39] sm:$0xff]  ;;  %v5460_v32 = vld [vmem:[#allocation2 + $0x61] sm:$0xff] }
  0x33   : > { %279 = vst.msk [vmem:[#allocation2 + $0xf9] sm:$0xff] %vm171_vm0, %v246_v23  ;;  %282 = vst.msk [vmem:[#allocation2 + $0x121] sm:$0xff] %vm171_vm0, %v249_v24  ;;  %v5472_v38 = vld [vmem:[#allocation2 + $0x51] sm:$0xff]  ;;  %v5480_v40 = vld [vmem:[#allocation2 + $0x79] sm:$0xff] }
  0x34   : > { %281 = vst.msk [vmem:[#allocation2 + $0x111] sm:$0xff] %vm171_vm0, %v248_v28  ;;  %284 = vst.msk [vmem:[#allocation2 + $0x139] sm:$0xff] %vm171_vm0, %v251_v29  ;;  %v5484_v41 = vld [vmem:[#allocation2 + $0x69] sm:$0xff]  ;;  %v5488_v42 = vld [vmem:[#allocation2 + $0x91] sm:$0xff] }
  0x35   : > { %619 = vrot.lane.b32.xlu1 %v5444_v27, %s5226_s19  ;;  %625 = vrot.lane.b32.xlu0 %v5452_v30, %s5226_s19  ;;  %283 = vst.msk [vmem:[#allocation2 + $0x129] sm:$0xff] %vm171_vm0, %v250_v33  ;;  %286 = vst.msk [vmem:[#allocation2 + $0x151] sm:$0xff] %vm171_vm0, %v253_v34  ;;  %v5492_v43 = vld [vmem:[#allocation2 + $0x81] sm:$0xff]  ;;  %v5496_v44 = vld [vmem:[#allocation2 + $0xa9] sm:$0xff] }
  0x36   : > { %285 = vst.msk [vmem:[#allocation2 + $0x141] sm:$0xff] %vm171_vm0, %v252_v35  ;;  %288 = vst.msk [vmem:[#allocation2 + $0x169] sm:$0xff] %vm171_vm0, %v255_v36  ;;  %v5500_v45 = vld [vmem:[#allocation2 + $0x99] sm:$0xff]  ;;  %v5504_v46 = vld [vmem:[#allocation2 + $0xc1] sm:$0xff] }
  0x37   : > { %287 = vst.msk [vmem:[#allocation2 + $0x159] sm:$0xff] %vm171_vm0, %v254_v37  ;;  %289 = vst.msk [vmem:[#allocation2 + $0x171] sm:$0xff] %vm171_vm0, %v256_v39  ;;  %v5508_v47 = vld [vmem:[#allocation2 + $0xb1] sm:$0xff]  ;;  %v5512_v48 = vld [vmem:[#allocation2 + $0xd9] sm:$0xff] }
  0x38   : > { %v5516_v49 = vld [vmem:[#allocation2 + $0xc9] sm:$0xff]  ;;  %v5520_v50 = vld [vmem:[#allocation2 + $0xf1] sm:$0xff]  ;;  %2472 = vst.msk [vmem:[#allocation3] sm:$0xff] %vm1637_vm2, %v8540_v0  ;;  %2473 = vst.msk [vmem:[#allocation3 + $0x8] sm:$0xff] %vm1637_vm2, %v8540_v0 }
  0x39   : > { %623 = vrot.lane.b32.xlu1 %v5456_v31, %s5226_s19  ;;  %629 = vrot.lane.b32.xlu0 %v5460_v32, %s5226_s19  ;;  %v5524_v51 = vld [vmem:[#allocation2 + $0xe1] sm:$0xff]  ;;  %v5528_v52 = vld [vmem:[#allocation2 + $0x109] sm:$0xff]  ;;  %2476 = vst.msk [vmem:[#allocation3 + $0x18] sm:$0xff] %vm1637_vm2, %v8540_v0  ;;  %2477 = vst.msk [vmem:[#allocation3 + $0x20] sm:$0xff] %vm1637_vm2, %v8540_v0 }
  0x3a   : > { %v5532_v53 = vld [vmem:[#allocation2 + $0xf9] sm:$0xff]  ;;  %v5536_v54 = vld [vmem:[#allocation2 + $0x121] sm:$0xff]  ;;  %2479 = vst.msk [vmem:[#allocation3 + $0x30] sm:$0xff] %vm1637_vm2, %v8540_v0  ;;  %2480 = vst.msk [vmem:[#allocation3 + $0x38] sm:$0xff] %vm1637_vm2, %v8540_v0 }
  0x3b   : > { %v5540_v55 = vld [vmem:[#allocation2 + $0x111] sm:$0xff]  ;;  %v5544_v56 = vld [vmem:[#allocation2 + $0x139] sm:$0xff]  ;;  %2482 = vst.msk [vmem:[#allocation3 + $0x48] sm:$0xff] %vm1637_vm2, %v8540_v0  ;;  %2483 = vst.msk [vmem:[#allocation3 + $0x50] sm:$0xff] %vm1637_vm2, %v8540_v0 }
  0x3c   : > { %2485 = vst.msk [vmem:[#allocation3 + $0x60] sm:$0xff] %vm1637_vm2, %v8540_v0  ;;  %2486 = vst.msk [vmem:[#allocation3 + $0x68] sm:$0xff] %vm1637_vm2, %v8540_v0  ;;  %v5620_v57 = vld [vmem:[#allocation2 + $0x129] sm:$0xff]  ;;  %v5626_v59 = vld [vmem:[#allocation2 + $0x151] sm:$0xff] }
  0x3d   : > { %627 = vrot.lane.b32.xlu1 %v5472_v38, %s5226_s19  ;;  %633 = vrot.lane.b32.xlu0 %v5480_v40, %s5226_s19  ;;  %2488 = vst.msk [vmem:[#allocation3 + $0x78] sm:$0xff] %vm1637_vm2, %v8540_v0  ;;  %2489 = vst.msk [vmem:[#allocation3 + $0x80] sm:$0xff] %vm1637_vm2, %v8540_v0  ;;  %v5630_v60 = vld [vmem:[#allocation2 + $0x141] sm:$0xff]  ;;  %v5634_v61 = vld [vmem:[#allocation2 + $0x169] sm:$0xff] }
  0x3e   : > { %2491 = vst.msk [vmem:[#allocation3 + $0x90] sm:$0xff] %vm1637_vm2, %v8540_v0  ;;  %2492 = vst.msk [vmem:[#allocation3 + $0x98] sm:$0xff] %vm1637_vm2, %v8540_v0  ;;  %v5640_v63 = vld [vmem:[#allocation2 + $0x159] sm:$0xff]  ;;  %v5646_v2 = vld [vmem:[#allocation2 + $0x171] sm:$0xff] }
  0x3f   : > { %2494 = vst.msk [vmem:[#allocation3 + $0xa8] sm:$0xff] %vm1637_vm2, %v8540_v0  ;;  %2495 = vst.msk [vmem:[#allocation3 + $0xb0] sm:$0xff] %vm1637_vm2, %v8540_v0  ;;  %v5649_v3 = vld [vmem:[#allocation2 + $0x1a] sm:$0xff]  ;;  %v5655_v5 = vld [vmem:[#allocation2 + $0x32] sm:$0xff] }
  0x40   : > { %2497 = vst.msk [vmem:[#allocation3 + $0xc0] sm:$0xff] %vm1637_vm2, %v8540_v0  ;;  %2498 = vst.msk [vmem:[#allocation3 + $0xc8] sm:$0xff] %vm1637_vm2, %v8540_v0  ;;  %v5658_v6 = vld [vmem:[#allocation2 + $0x22] sm:$0xff]  ;;  %v5662_v7 = vld [vmem:[#allocation2 + $0x4a] sm:$0xff] }
  0x41   : > { %631 = vrot.lane.b32.xlu1 %v5484_v41, %s5226_s19  ;;  %637 = vrot.lane.b32.xlu0 %v5488_v42, %s5226_s19  ;;  %2500 = vst.msk [vmem:[#allocation3 + $0xd8] sm:$0xff] %vm1637_vm2, %v8540_v0  ;;  %2501 = vst.msk [vmem:[#allocation3 + $0xe0] sm:$0xff] %vm1637_vm2, %v8540_v0  ;;  %v5666_v8 = vld [vmem:[#allocation2 + $0x3a] sm:$0xff]  ;;  %v5670_v9 = vld [vmem:[#allocation2 + $0x62] sm:$0xff] }
  0x42   : > { %2503 = vst.msk [vmem:[#allocation3 + $0xf0] sm:$0xff] %vm1637_vm2, %v8540_v0  ;;  %2504 = vst.msk [vmem:[#allocation3 + $0xf8] sm:$0xff] %vm1637_vm2, %v8540_v0  ;;  %v5674_v10 = vld [vmem:[#allocation2 + $0x52] sm:$0xff]  ;;  %v5678_v11 = vld [vmem:[#allocation2 + $0x7a] sm:$0xff] }
  0x43   : > { %2506 = vst.msk [vmem:[#allocation3 + $0x108] sm:$0xff] %vm1637_vm2, %v8540_v0  ;;  %2507 = vst.msk [vmem:[#allocation3 + $0x110] sm:$0xff] %vm1637_vm2, %v8540_v0  ;;  %v5682_v12 = vld [vmem:[#allocation2 + $0x6a] sm:$0xff]  ;;  %v368_v13 = vld [vmem:[#allocation2 + $0x92] sm:$0xff] }
  0x44   : > { %2509 = vst.msk [vmem:[#allocation3 + $0x120] sm:$0xff] %vm1637_vm2, %v8540_v0  ;;  %2510 = vst.msk [vmem:[#allocation3 + $0x128] sm:$0xff] %vm1637_vm2, %v8540_v0  ;;  %v367_v14 = vld [vmem:[#allocation2 + $0x82] sm:$0xff]  ;;  %v370_v15 = vld [vmem:[#allocation2 + $0xaa] sm:$0xff] }
  0x45   : > { %635 = vrot.lane.b32.xlu1 %v5492_v43, %s5226_s19  ;;  %641 = vrot.lane.b32.xlu0 %v5496_v44, %s5226_s19  ;;  %2512 = vst.msk [vmem:[#allocation3 + $0x138] sm:$0xff] %vm1637_vm2, %v8540_v0  ;;  %2513 = vst.msk [vmem:[#allocation3 + $0x140] sm:$0xff] %vm1637_vm2, %v8540_v0  ;;  %v369_v16 = vld [vmem:[#allocation2 + $0x9a] sm:$0xff]  ;;  %v372_v17 = vld [vmem:[#allocation2 + $0xc2] sm:$0xff] }
  0x46   : > { %2515 = vst.msk [vmem:[#allocation3 + $0x150] sm:$0xff] %vm1637_vm2, %v8540_v0  ;;  %2516 = vst.msk [vmem:[#allocation3 + $0x158] sm:$0xff] %vm1637_vm2, %v8540_v0  ;;  %v371_v18 = vld [vmem:[#allocation2 + $0xb2] sm:$0xff]  ;;  %v374_v19 = vld [vmem:[#allocation2 + $0xda] sm:$0xff] }
  0x47   : > { %2518 = vst.msk [vmem:[#allocation3 + $0x168] sm:$0xff] %vm1637_vm2, %v8540_v0  ;;  %2519 = vst.msk [vmem:[#allocation3 + $0x170] sm:$0xff] %vm1637_vm2, %v8540_v0  ;;  %v373_v20 = vld [vmem:[#allocation2 + $0xca] sm:$0xff]  ;;  %v376_v21 = vld [vmem:[#allocation2 + $0xf2] sm:$0xff] }
  0x48   : > { %2521 = vst.msk [vmem:[#allocation3 + $0x180] sm:$0xff] %vm1637_vm2, %v8540_v0  ;;  %2522 = vst.msk [vmem:[#allocation3 + $0x188] sm:$0xff] %vm1637_vm2, %v8540_v0  ;;  %v375_v22 = vld [vmem:[#allocation2 + $0xe2] sm:$0xff]  ;;  %v378_v23 = vld [vmem:[#allocation2 + $0x10a] sm:$0xff] }
  0x49   : > { %639 = vrot.lane.b32.xlu1 %v5500_v45, %s5226_s19  ;;  %645 = vrot.lane.b32.xlu0 %v5504_v46, %s5226_s19  ;;  %2524 = vst.msk [vmem:[#allocation3 + $0x198] sm:$0xff] %vm1637_vm2, %v8540_v0  ;;  %2525 = vst.msk [vmem:[#allocation3 + $0x1a0] sm:$0xff] %vm1637_vm2, %v8540_v0  ;;  %v377_v24 = vld [vmem:[#allocation2 + $0xfa] sm:$0xff]  ;;  %v380_v28 = vld [vmem:[#allocation2 + $0x122] sm:$0xff] }
  0x4a   : > { %290 = vst.msk [vmem:[#allocation2 + $0x181] sm:$0xff] %vm171_vm0, %v257_v58  ;;  %291 = vst.msk [vmem:[#allocation2 + $0x189] sm:$0xff] %vm171_vm0, %v258_v62  ;;  %v379_v29 = vld [vmem:[#allocation2 + $0x112] sm:$0xff]  ;;  %v382_v33 = vld [vmem:[#allocation2 + $0x13a] sm:$0xff] }
  0x4b   : > { %v381_v35 = vld [vmem:[#allocation2 + $0x12a] sm:$0xff]  ;;  %v384_v36 = vld [vmem:[#allocation2 + $0x152] sm:$0xff]  ;;  %v383_v39 = vld [vmem:[#allocation2 + $0x142] sm:$0xff] }
  0x4c   : > { %v386_v62 = vld [vmem:[#allocation2 + $0x16a] sm:$0xff] }
  0x4d   : > { %643 = vrot.lane.b32.xlu1 %v5508_v47, %s5226_s19  ;;  %649 = vrot.lane.b32.xlu0 %v5512_v48, %s5226_s19 }
  0x51   : > { %647 = vrot.lane.b32.xlu1 %v5516_v49, %s5226_s19  ;;  %653 = vrot.lane.b32.xlu0 %v5520_v50, %s5226_s19 }
  0x55   : > { %651 = vrot.lane.b32.xlu1 %v5524_v51, %s5226_s19  ;;  %657 = vrot.lane.b32.xlu0 %v5528_v52, %s5226_s19 }
  0x59   : > { %655 = vrot.lane.b32.xlu1 %v5532_v53, %s5226_s19  ;;  %661 = vrot.lane.b32.xlu0 %v5536_v54, %s5226_s19 }
  0x5d   : > { %659 = vrot.lane.b32.xlu1 %v5540_v55, %s5226_s19  ;;  %665 = vrot.lane.b32.xlu0 %v5544_v56, %s5226_s19 }
  0x61   : > { %663 = vrot.lane.b32.xlu1 %v5620_v57, %s5226_s19  ;;  %669 = vrot.lane.b32.xlu0 %v5626_v59, %s5226_s19 }
  0x65   : > { %667 = vrot.lane.b32.xlu1 %v5630_v60, %s5226_s19  ;;  %673 = vrot.lane.b32.xlu0 %v5634_v61, %s5226_s19 }
  0x69   : > { %671 = vrot.lane.b32.xlu1 %v5640_v63, %s5226_s19  ;;  %741 = vrot.lane.b32.xlu0 %v356_v1, %s5227_s20 }
  0x6d   : > { %675 = vrot.lane.b32.xlu1 %v5646_v2, %s5226_s19  ;;  %745 = vrot.lane.b32.xlu0 %v5649_v3, %s5227_s20 }
  0x71   : > { %743 = vrot.lane.b32.xlu1 %v357_v4, %s5227_s20  ;;  %749 = vrot.lane.b32.xlu0 %v5655_v5, %s5227_s20  ;;  %v385_v4 = vld [vmem:[#allocation2 + $0x15a] sm:$0xff] }
  0x75   : > { %747 = vrot.lane.b32.xlu1 %v5658_v6, %s5227_s20  ;;  %753 = vrot.lane.b32.xlu0 %v5662_v7, %s5227_s20 }
  0x79   : > { %751 = vrot.lane.b32.xlu1 %v5666_v8, %s5227_s20  ;;  %757 = vrot.lane.b32.xlu0 %v5670_v9, %s5227_s20 }
  0x7d   : > { %755 = vrot.lane.b32.xlu1 %v5674_v10, %s5227_s20  ;;  %761 = vrot.lane.b32.xlu0 %v5678_v11, %s5227_s20 }
  0x81   : > { %759 = vrot.lane.b32.xlu1 %v5682_v12, %s5227_s20  ;;  %765 = vrot.lane.b32.xlu0 %v368_v13, %s5227_s20 }
  0x85   : > { %763 = vrot.lane.b32.xlu1 %v367_v14, %s5227_s20  ;;  %769 = vrot.lane.b32.xlu0 %v370_v15, %s5227_s20  ;;  %v5720_v15 = vld [vmem:[#allocation2 + $0x18] sm:$0xff] }
  0x86   : > { %8559 = vst [vmem:[#allocation10_spill] sm:$0xff] %v5720_v15 }
  0x88   : > { %v5701_v34 = vpop.permute.xlu0 %613 }
  0x89   : > { %767 = vrot.lane.b32.xlu1 %v369_v16, %s5227_s20  ;;  %773 = vrot.lane.b32.xlu0 %v372_v17, %s5227_s20  ;;  %8553 = vst [vmem:[#allocation4_spill] sm:$0xff] %v5701_v34  ;;  %v387_v16 = vld [vmem:[#allocation2 + $0x172] sm:$0xff] }
  0x8a   : > { %v318_v34 = vld [vmem:[#allocation2 + $0x138] sm:$0xff] }
  0x8d   : > { %771 = vrot.lane.b32.xlu1 %v371_v18, %s5227_s20  ;;  %777 = vrot.lane.b32.xlu0 %v374_v19, %s5227_s20  ;;  %v5729_v19 = vld [vmem:[#allocation2 + $0x30] sm:$0xff] }
  0x91   : > { %775 = vrot.lane.b32.xlu1 %v373_v20, %s5227_s20  ;;  %781 = vrot.lane.b32.xlu0 %v376_v21, %s5227_s20  ;;  %v5735_v21 = vld [vmem:[#allocation2 + $0x20] sm:$0xff] }
  0x92   : > { %8563 = vst [vmem:[#allocation14_spill] sm:$0xff] %v5735_v21 }
  0x95   : > { %779 = vrot.lane.b32.xlu1 %v375_v22, %s5227_s20  ;;  %785 = vrot.lane.b32.xlu0 %v378_v23, %s5227_s20  ;;  %v5741_v23 = vld [vmem:[#allocation2 + $0x48] sm:$0xff] }
  0x99   : > { %783 = vrot.lane.b32.xlu1 %v377_v24, %s5227_s20  ;;  %789 = vrot.lane.b32.xlu0 %v380_v28, %s5227_s20  ;;  %v5747_v28 = vld [vmem:[#allocation2 + $0x38] sm:$0xff] }
  0x9a   : > { %v5705_v37 = vpop.permute.xlu0 %615 }
  0x9b   : > { %8554 = vst [vmem:[#allocation5_spill] sm:$0xff] %v5705_v37  ;;  %v315_v37 = vld [vmem:[#allocation2 + $0x110] sm:$0xff] }
  0x9d   : > { %787 = vrot.lane.b32.xlu1 %v379_v29, %s5227_s20  ;;  %793 = vrot.lane.b32.xlu0 %v382_v33, %s5227_s20  ;;  %v5753_v33 = vld [vmem:[#allocation2 + $0x60] sm:$0xff] }
  0xa1   : > { %791 = vrot.lane.b32.xlu1 %v381_v35, %s5227_s20  ;;  %797 = vrot.lane.b32.xlu0 %v384_v36, %s5227_s20  ;;  %v5759_v36 = vld [vmem:[#allocation2 + $0x50] sm:$0xff] }
  0xa3   : > { %v5709_v58 = vpop.permute.xlu1 %617  ;;  %v5711_v1 = vpop.permute.xlu0 %621 }
  0xa4   : > { %8555 = vst [vmem:[#allocation6_spill] sm:$0xff] %v5709_v58  ;;  %8556 = vst [vmem:[#allocation7_spill] sm:$0xff] %v5711_v1 }
  0xa5   : > { %795 = vrot.lane.b32.xlu1 %v383_v39, %s5227_s20  ;;  %801 = vrot.lane.b32.xlu0 %v386_v62, %s5227_s20  ;;  %v5765_v62 = vld [vmem:[#allocation2 + $0x78] sm:$0xff] }
  0xa7   : > { %v5715_v13 = vpop.permute.xlu1 %619  ;;  %v5717_v14 = vpop.permute.xlu0 %625 }
  0xa8   : > { %8557 = vst [vmem:[#allocation8_spill] sm:$0xff] %v5715_v13  ;;  %8558 = vst [vmem:[#allocation9_spill] sm:$0xff] %v5717_v14 }
  0xa9   : > { %799 = vrot.lane.b32.xlu1 %v385_v4, %s5227_s20  ;;  %869 = vrot.lane.b32.xlu0 %v5720_v15, %s5228_s21 }
  0xab   : > { %v5724_v17 = vpop.permute.xlu1 %623  ;;  %v5726_v18 = vpop.permute.xlu0 %629 }
  0xac   : > { %8560 = vst [vmem:[#allocation11_spill] sm:$0xff] %v5724_v17  ;;  %8561 = vst [vmem:[#allocation12_spill] sm:$0xff] %v5726_v18  ;;  %v5819_v17 = vld [vmem:[#allocation2 + $0xc8] sm:$0xff] }
  0xad   : > { %803 = vrot.lane.b32.xlu1 %v387_v16, %s5227_s20  ;;  %873 = vrot.lane.b32.xlu0 %v5729_v19, %s5228_s21  ;;  %v5771_v16 = vld [vmem:[#allocation2 + $0x68] sm:$0xff] }
  0xaf   : > { %v5733_v20 = vpop.permute.xlu1 %627  ;;  %v5737_v22 = vpop.permute.xlu0 %633 }
  0xb0   : > { %8562 = vst [vmem:[#allocation13_spill] sm:$0xff] %v5733_v20  ;;  %8564 = vst [vmem:[#allocation15_spill] sm:$0xff] %v5737_v22  ;;  %v5807_v20 = vld [vmem:[#allocation2 + $0xb0] sm:$0xff] }
  0xb1   : > { %871 = vrot.lane.b32.xlu1 %v5735_v21, %s5228_s21  ;;  %877 = vrot.lane.b32.xlu0 %v5741_v23, %s5228_s21  ;;  %v5828_v21 = vld [vmem:[#allocation2 + $0xe0] sm:$0xff] }
  0xb2   : > { %8580 = vst [vmem:[#allocation31_spill] sm:$0xff] %v5828_v21 }
  0xb3   : > { %v5745_v24 = vpop.permute.xlu1 %631  ;;  %v5749_v29 = vpop.permute.xlu0 %637 }
  0xb4   : > { %8565 = vst [vmem:[#allocation16_spill] sm:$0xff] %v5745_v24  ;;  %8566 = vst [vmem:[#allocation17_spill] sm:$0xff] %v5749_v29  ;;  %v5777_v29 = vld [vmem:[#allocation2 + $0x90] sm:$0xff]  ;;  %v5795_v24 = vld [vmem:[#allocation2 + $0x98] sm:$0xff] }
  0xb5   : > { %875 = vrot.lane.b32.xlu1 %v5747_v28, %s5228_s21  ;;  %881 = vrot.lane.b32.xlu0 %v5753_v33, %s5228_s21 }
  0xb7   : > { %v5757_v35 = vpop.permute.xlu1 %635  ;;  %v5761_v39 = vpop.permute.xlu0 %641 }
  0xb8   : > { %8567 = vst [vmem:[#allocation18_spill] sm:$0xff] %v5757_v35  ;;  %8568 = vst [vmem:[#allocation19_spill] sm:$0xff] %v5761_v39  ;;  %v5783_v35 = vld [vmem:[#allocation2 + $0x80] sm:$0xff] }
  0xb9   : > { %879 = vrot.lane.b32.xlu1 %v5759_v36, %s5228_s21  ;;  %885 = vrot.lane.b32.xlu0 %v5765_v62, %s5228_s21 }
  0xbb   : > { %v5769_v4 = vpop.permute.xlu1 %639  ;;  %v5773_v0 = vpop.permute.xlu0 %645 }
  0xbc   : > { %8569 = vst [vmem:[#allocation20_spill] sm:$0xff] %v5769_v4  ;;  %8570 = vst [vmem:[#allocation21_spill] sm:$0xff] %v5773_v0  ;;  %v5789_v4 = vld [vmem:[#allocation2 + $0xa8] sm:$0xff] }
  0xbd   : > { %883 = vrot.lane.b32.xlu1 %v5771_v16, %s5228_s21  ;;  %889 = vrot.lane.b32.xlu0 %v5777_v29, %s5228_s21 }
  0xbf   : > { %v5781_v39 = vpop.permute.xlu1 %643  ;;  %v5785_v22 = vpop.permute.xlu0 %649 }
  0xc0   : > { %8571 = vst [vmem:[#allocation22_spill] sm:$0xff] %v5781_v39  ;;  %8572 = vst [vmem:[#allocation23_spill] sm:$0xff] %v5785_v22  ;;  %v5801_v39 = vld [vmem:[#allocation2 + $0xc0] sm:$0xff] }
  0xc1   : > { %887 = vrot.lane.b32.xlu1 %v5783_v35, %s5228_s21  ;;  %893 = vrot.lane.b32.xlu0 %v5789_v4, %s5228_s21 }
  0xc3   : > { %v5793_v0 = vpop.permute.xlu1 %647  ;;  %v5797_v18 = vpop.permute.xlu0 %653 }
  0xc4   : > { %8573 = vst [vmem:[#allocation24_spill] sm:$0xff] %v5793_v0  ;;  %8574 = vst [vmem:[#allocation25_spill] sm:$0xff] %v5797_v18  ;;  %v5813_v0 = vld [vmem:[#allocation2 + $0xd8] sm:$0xff] }
  0xc5   : > { %891 = vrot.lane.b32.xlu1 %v5795_v24, %s5228_s21  ;;  %897 = vrot.lane.b32.xlu0 %v5801_v39, %s5228_s21 }
  0xc7   : > { %v5805_v22 = vpop.permute.xlu1 %651  ;;  %v5809_v14 = vpop.permute.xlu0 %657 }
  0xc8   : > { %8575 = vst [vmem:[#allocation26_spill] sm:$0xff] %v5805_v22  ;;  %8576 = vst [vmem:[#allocation27_spill] sm:$0xff] %v5809_v14  ;;  %v312_v22 = vld [vmem:[#allocation2 + $0xf0] sm:$0xff] }
  0xc9   : > { %895 = vrot.lane.b32.xlu1 %v5807_v20, %s5228_s21  ;;  %901 = vrot.lane.b32.xlu0 %v5813_v0, %s5228_s21 }
  0xcb   : > { %v5817_v18 = vpop.permute.xlu1 %655  ;;  %v5821_v1 = vpop.permute.xlu0 %661 }
  0xcc   : > { %8577 = vst [vmem:[#allocation28_spill] sm:$0xff] %v5817_v18  ;;  %8578 = vst [vmem:[#allocation29_spill] sm:$0xff] %v5821_v1  ;;  %v314_v18 = vld [vmem:[#allocation2 + $0x108] sm:$0xff]  ;;  %v313_v1 = vld [vmem:[#allocation2 + $0xf8] sm:$0xff] }
  0xcd   : > { %899 = vrot.lane.b32.xlu1 %v5819_v17, %s5228_s21  ;;  %905 = vrot.lane.b32.xlu0 %v312_v22, %s5228_s21  ;;  %v316_v22 = vld [vmem:[#allocation2 + $0x120] sm:$0xff] }
  0xcf   : > { %v5826_v14 = vpop.permute.xlu1 %659  ;;  %v5830_v13 = vpop.permute.xlu0 %665 }
  0xd0   : > { %8579 = vst [vmem:[#allocation30_spill] sm:$0xff] %v5826_v14  ;;  %8581 = vst [vmem:[#allocation32_spill] sm:$0xff] %v5830_v13 }
  0xd1   : > { %903 = vrot.lane.b32.xlu1 %v5828_v21, %s5228_s21  ;;  %909 = vrot.lane.b32.xlu0 %v314_v18, %s5228_s21 }
  0xd3   : > { %v5835_v15 = vpop.permute.xlu1 %663  ;;  %v5837_v58 = vpop.permute.xlu0 %669 }
  0xd4   : > { %8582 = vst [vmem:[#allocation33_spill] sm:$0xff] %v5835_v15  ;;  %8583 = vst [vmem:[#allocation34_spill] sm:$0xff] %v5837_v58  ;;  %v317_v15 = vld [vmem:[#allocation2 + $0x128] sm:$0xff]  ;;  %v319_v58 = vld [vmem:[#allocation2 + $0x140] sm:$0xff] }
  0xd5   : > { %907 = vrot.lane.b32.xlu1 %v313_v1, %s5228_s21  ;;  %913 = vrot.lane.b32.xlu0 %v316_v22, %s5228_s21  ;;  %v320_v1 = vld [vmem:[#allocation2 + $0x150] sm:$0xff] }
  0xd7   : > { %v5841_v14 = vpop.permute.xlu1 %667  ;;  %v5843_v13 = vpop.permute.xlu0 %673 }
  0xd8   : > { %8584 = vst [vmem:[#allocation35_spill] sm:$0xff] %v5841_v14  ;;  %8585 = vst [vmem:[#allocation36_spill] sm:$0xff] %v5843_v13  ;;  %v321_v13 = vld [vmem:[#allocation2 + $0x158] sm:$0xff] }
  0xd9   : > { %911 = vrot.lane.b32.xlu1 %v315_v37, %s5228_s21  ;;  %917 = vrot.lane.b32.xlu0 %v318_v34, %s5228_s21  ;;  %v322_v37 = vld [vmem:[#allocation2 + $0x168] sm:$0xff] }
  0xdb   : > { %v5847_v18 = vpop.permute.xlu1 %671  ;;  %v5849_v21 = vpop.permute.xlu0 %741 }
  0xdc   : > { %8586 = vst [vmem:[#allocation37_spill] sm:$0xff] %v5847_v18  ;;  %8587 = vst [vmem:[#allocation38_spill] sm:$0xff] %v5849_v21  ;;  %v418_v18 = vld [vmem:[#allocation2 + $0x180] sm:$0xff] }
  0xdd   : > { %915 = vrot.lane.b32.xlu1 %v317_v15, %s5228_s21  ;;  %921 = vrot.lane.b32.xlu0 %v320_v1, %s5228_s21  ;;  %v323_v1 = vld [vmem:[#allocation2 + $0x170] sm:$0xff] }
  0xdf   : > { %v5853_v22 = vpop.permute.xlu1 %675  ;;  %v5855_v14 = vpop.permute.xlu0 %745 }
  0xe0   : > { %8588 = vst [vmem:[#allocation39_spill] sm:$0xff] %v5853_v22  ;;  %8589 = vst [vmem:[#allocation40_spill] sm:$0xff] %v5855_v14 }
  0xe1   : > { %919 = vrot.lane.b32.xlu1 %v319_v58, %s5228_s21  ;;  %925 = vrot.lane.b32.xlu0 %v322_v37, %s5228_s21  ;;  %v419_v58 = vld [vmem:[#allocation2 + $0x188] sm:$0xff] }
  0xe3   : > { %v5859_v34 = vpop.permute.xlu1 %743  ;;  %v5861_v21 = vpop.permute.xlu0 %749 }
  0xe5   : > { %923 = vrot.lane.b32.xlu1 %v321_v13, %s5228_s21  ;;  %929 = vrot.lane.b32.xlu0 %v418_v18, %s5228_s21 }
  0xe7   : > { %v5865_v15 = vpop.permute.xlu1 %747  ;;  %v5867_v22 = vpop.permute.xlu0 %753 }
  0xe9   : > { %927 = vrot.lane.b32.xlu1 %v323_v1, %s5228_s21  ;;  %997 = vrot.lane.b32.xlu0 %v5435_v25, %s5229_s22 }
  0xeb   : > { %v5872_v37 = vpop.permute.xlu1 %751  ;;  %v5874_v14 = vpop.permute.xlu0 %757 }
  0xed   : > { %931 = vrot.lane.b32.xlu1 %v419_v58, %s5228_s21  ;;  %1001 = vrot.lane.b32.xlu0 %v5437_v26, %s5229_s22  ;;  %s5235_s21 = smov 48  }
  0xef   : > { %v5879_v13 = vpop.permute.xlu1 %755  ;;  %v5881_v18 = vpop.permute.xlu0 %761 }
  0xf1   : > { %999 = vrot.lane.b32.xlu1 %v5444_v27, %s5229_s22  ;;  %1005 = vrot.lane.b32.xlu0 %v5452_v30, %s5229_s22 }
  0xf3   : > { %v5887_v25 = vpop.permute.xlu1 %759  ;;  %v5889_v1 = vpop.permute.xlu0 %765 }
  0xf4   : > { %8590 = vst [vmem:[#allocation41_spill] sm:$0xff] %v5889_v1 }
  0xf5   : > { %1003 = vrot.lane.b32.xlu1 %v5456_v31, %s5229_s22  ;;  %1009 = vrot.lane.b32.xlu0 %v5460_v32, %s5229_s22 }
  0xf7   : > { %v5895_v26 = vpop.permute.xlu1 %763  ;;  %v5897_v58 = vpop.permute.xlu0 %769 }
  0xf8   : > { %8591 = vst [vmem:[#allocation42_spill] sm:$0xff] %v5895_v26  ;;  %8592 = vst [vmem:[#allocation43_spill] sm:$0xff] %v5897_v58  ;;  %v292_v58 = vld [vmem:[#allocation2] sm:$0xff] }
  0xf9   : > { %1007 = vrot.lane.b32.xlu1 %v5472_v38, %s5229_s22  ;;  %1013 = vrot.lane.b32.xlu0 %v5480_v40, %s5229_s22 }
  0xfb   : > { %v5903_v27 = vpop.permute.xlu1 %767  ;;  %v5905_v30 = vpop.permute.xlu0 %773 }
  0xfc   : > { %8593 = vst [vmem:[#allocation44_spill] sm:$0xff] %v5903_v27  ;;  %8594 = vst [vmem:[#allocation45_spill] sm:$0xff] %v5905_v30  ;;  %v558_v30 = vld [vmem:[#allocation2 + $0x9a] sm:$0xff]  ;;  %v565_v27 = vld [vmem:[#allocation2 + $0xf2] sm:$0xff] }
  0xfd   : > { %1011 = vrot.lane.b32.xlu1 %v5484_v41, %s5229_s22  ;;  %1017 = vrot.lane.b32.xlu0 %v5488_v42, %s5229_s22 }
  0xff   : > { %v5911_v31 = vpop.permute.xlu1 %771  ;;  %v5913_v32 = vpop.permute.xlu0 %777 }
 0x100   : > { %8595 = vst [vmem:[#allocation46_spill] sm:$0xff] %v5911_v31  ;;  %8596 = vst [vmem:[#allocation47_spill] sm:$0xff] %v5913_v32  ;;  %v525_v32 = vld [vmem:[#allocation2 + $0x91] sm:$0xff] }
 0x101   : > { %1015 = vrot.lane.b32.xlu1 %v5492_v43, %s5229_s22  ;;  %1021 = vrot.lane.b32.xlu0 %v5496_v44, %s5229_s22 }
 0x103   : > { %v5919_v38 = vpop.permute.xlu1 %775  ;;  %v5921_v40 = vpop.permute.xlu0 %781 }
 0x104   : > { %8597 = vst [vmem:[#allocation48_spill] sm:$0xff] %v5919_v38  ;;  %8598 = vst [vmem:[#allocation49_spill] sm:$0xff] %v5921_v40  ;;  %v557_v38 = vld [vmem:[#allocation2 + $0x92] sm:$0xff] }
 0x105   : > { %1019 = vrot.lane.b32.xlu1 %v5500_v45, %s5229_s22  ;;  %1025 = vrot.lane.b32.xlu0 %v5504_v46, %s5229_s22 }
 0x107   : > { %v5927_v41 = vpop.permute.xlu1 %779  ;;  %v5929_v42 = vpop.permute.xlu0 %785 }
 0x108   : > { %8599 = vst [vmem:[#allocation50_spill] sm:$0xff] %v5927_v41  ;;  %8600 = vst [vmem:[#allocation51_spill] sm:$0xff] %v5929_v42  ;;  %v517_v42 = vld [vmem:[#allocation2 + $0x31] sm:$0xff] }
 0x109   : > { %1023 = vrot.lane.b32.xlu1 %v5508_v47, %s5229_s22  ;;  %1029 = vrot.lane.b32.xlu0 %v5512_v48, %s5229_s22 }
 0x10b   : > { %v5935_v43 = vpop.permute.xlu1 %783  ;;  %v5937_v44 = vpop.permute.xlu0 %789 }
 0x10c   : > { %8601 = vst [vmem:[#allocation52_spill] sm:$0xff] %v5935_v43  ;;  %8602 = vst [vmem:[#allocation53_spill] sm:$0xff] %v5937_v44 }
 0x10d   : > { %1027 = vrot.lane.b32.xlu1 %v5516_v49, %s5229_s22  ;;  %1033 = vrot.lane.b32.xlu0 %v5520_v50, %s5229_s22 }
 0x10f   : > { %v5943_v45 = vpop.permute.xlu1 %787  ;;  %v5945_v46 = vpop.permute.xlu0 %793 }
 0x110   : > { %8603 = vst [vmem:[#allocation54_spill] sm:$0xff] %v5943_v45  ;;  %8604 = vst [vmem:[#allocation55_spill] sm:$0xff] %v5945_v46 }
 0x111   : > { %1031 = vrot.lane.b32.xlu1 %v5524_v51, %s5229_s22  ;;  %1037 = vrot.lane.b32.xlu0 %v5528_v52, %s5229_s22 }
 0x113   : > { %v5951_v47 = vpop.permute.xlu1 %791  ;;  %v5953_v48 = vpop.permute.xlu0 %797 }
 0x114   : > { %8605 = vst [vmem:[#allocation56_spill] sm:$0xff] %v5951_v47  ;;  %8606 = vst [vmem:[#allocation57_spill] sm:$0xff] %v5953_v48 }
 0x115   : > { %1035 = vrot.lane.b32.xlu1 %v5532_v53, %s5229_s22  ;;  %1041 = vrot.lane.b32.xlu0 %v5536_v54, %s5229_s22 }
 0x117   : > { %v5959_v49 = vpop.permute.xlu1 %795  ;;  %v5961_v50 = vpop.permute.xlu0 %801 }
 0x118   : > { %8607 = vst [vmem:[#allocation58_spill] sm:$0xff] %v5959_v49  ;;  %8608 = vst [vmem:[#allocation59_spill] sm:$0xff] %v5961_v50 }
 0x119   : > { %1039 = vrot.lane.b32.xlu1 %v5540_v55, %s5229_s22  ;;  %1045 = vrot.lane.b32.xlu0 %v5544_v56, %s5229_s22  ;;  %v5985_v56 = vld [vmem:[#allocation2 + $0x181] sm:$0xff] }
 0x11a   : > { %8611 = vst [vmem:[#allocation62_spill] sm:$0xff] %v5985_v56 }
 0x11b   : > { %v5967_v51 = vpop.permute.xlu1 %799  ;;  %v5969_v52 = vpop.permute.xlu0 %869 }
 0x11c   : > { %8609 = vst [vmem:[#allocation60_spill] sm:$0xff] %v5967_v51 }
 0x11d   : > { %1043 = vrot.lane.b32.xlu1 %v5620_v57, %s5229_s22  ;;  %1049 = vrot.lane.b32.xlu0 %v5626_v59, %s5229_s22 }
 0x11f   : > { %v5975_v53 = vpop.permute.xlu1 %803  ;;  %v5977_v54 = vpop.permute.xlu0 %873 }
 0x120   : > { %8610 = vst [vmem:[#allocation61_spill] sm:$0xff] %v5975_v53 }
 0x121   : > { %1047 = vrot.lane.b32.xlu1 %v5630_v60, %s5229_s22  ;;  %1053 = vrot.lane.b32.xlu0 %v5634_v61, %s5229_s22  ;;  %v5999_v60 = vld [vmem:[#allocation2 + $0x189] sm:$0xff] }
 0x122   : > { %8612 = vst [vmem:[#allocation63_spill] sm:$0xff] %v5999_v60 }
 0x123   : > { %v5983_v55 = vpop.permute.xlu1 %871  ;;  %v5987_v50 = vpop.permute.xlu0 %877 }
 0x125   : > { %1051 = vrot.lane.b32.xlu1 %v5640_v63, %s5229_s22  ;;  %1057 = vrot.lane.b32.xlu0 %v5985_v56, %s5229_s22 }
 0x127   : > { %v5993_v57 = vpop.permute.xlu1 %875  ;;  %v5995_v59 = vpop.permute.xlu0 %881 }
 0x129   : > { %1055 = vrot.lane.b32.xlu1 %v5646_v2, %s5229_s22  ;;  %1125 = vrot.lane.b32.xlu0 %v5649_v3, %s5230_s23  ;;  %v1868_v2 = vld [vmem:[%s8537_s1] sm:$0xff]  ;;  %v1869_v3 = vld [vmem:[%s8537_s1 + $0x8] sm:$0xff] }
 0x12a   : > { %v5138_v48 = vpack.c.bf16 %v1869_v3, %v1868_v2  ;;  %v1871_v2 = vld [vmem:[%s8537_s1 + $0x18] sm:$0xff] }
 0x12b   : > { %v6003_v61 = vpop.permute.xlu1 %879  ;;  %v6005_v53 = vpop.permute.xlu0 %885 }
 0x12c   : > { %5139 = vmatprep.subr.bf16.mxu0 %v5138_v48 }
 0x12d   : > { %1059 = vrot.lane.b32.xlu1 %v5999_v60, %s5229_s22  ;;  %1129 = vrot.lane.b32.xlu0 %v5655_v5, %s5230_s23 }
 0x12e   : > { %5141 = vmatpush3.bf16.msra.mxu0 %v5138_v48 }
 0x12f   : > { %v6011_v63 = vpop.permute.xlu1 %883  ;;  %v6013_v51 = vpop.permute.xlu0 %889 }
 0x131   : > { %1127 = vrot.lane.b32.xlu1 %v5658_v6, %s5230_s23  ;;  %1133 = vrot.lane.b32.xlu0 %v5662_v7, %s5230_s23  ;;  %v1870_v6 = vld [vmem:[%s8537_s1 + $0x10] sm:$0xff] }
 0x132   : > { %v5142_v3 = vpack.c.bf16 %v1871_v2, %v1870_v6  ;;  %v1872_v6 = vld [vmem:[%s8537_s1 + $0x20] sm:$0xf] }
 0x133   : > { %v6025_v49 = vpop.permute.xlu1 %887  ;;  %v6027_v46 = vpop.permute.xlu0 %893 }
 0x134   : > { %8613 = vst [vmem:[#allocation64_spill] sm:$0xff] %v6027_v46  ;;  %5143 = vmatprep.subr.bf16.mxu0 %v5142_v3 }
 0x135   : > { %1131 = vrot.lane.b32.xlu1 %v5666_v8, %s5230_s23  ;;  %1137 = vrot.lane.b32.xlu0 %v5670_v9, %s5230_s23 }
 0x136   : > { %5145 = vmatpush3.bf16.msra.mxu0 %v5142_v3 }
 0x137   : > { %v6039_v47 = vpop.permute.xlu1 %891  ;;  %v6041_v44 = vpop.permute.xlu0 %897  ;;  %5022 = vmatprep.subr.msk.mxu0 %vm1970_vm3, %v1872_v6 }
 0x138   : > { %8614 = vst [vmem:[#allocation65_spill] sm:$0xff] %v6039_v47  ;;  %8615 = vst [vmem:[#allocation66_spill] sm:$0xff] %v6041_v44  ;;  %v534_v47 = vld [vmem:[#allocation2 + $0xf9] sm:$0xff] }
 0x139   : > { %1135 = vrot.lane.b32.xlu1 %v5674_v10, %s5230_s23  ;;  %1141 = vrot.lane.b32.xlu0 %v5678_v11, %s5230_s23  ;;  %v518_v11 = vld [vmem:[#allocation2 + $0x39] sm:$0xff] }
 0x13a   : > { %5023 = vmatpush3.msk.msra.mxu0 %vm1970_vm3, %v1872_v6 }
 0x13b   : > { %v6047_v48 = vpop.permute.xlu1 %895  ;;  %v6052_v2 = vpop.permute.xlu0 %901 }
 0x13c   : > { %8616 = vst [vmem:[#allocation67_spill] sm:$0xff] %v6047_v48  ;;  %8617 = vst [vmem:[#allocation68_spill] sm:$0xff] %v6052_v2 }
 0x13d   : > { %1139 = vrot.lane.b32.xlu1 %v5682_v12, %s5230_s23  ;;  %1255 = vrot.lane.b32.xlu0 %v5747_v28, %s5231_s7 }
 0x13f   : > { %v6058_v3 = vpop.permute.xlu1 %899  ;;  %v6060_v45 = vpop.permute.xlu0 %905 }
 0x140   : > { %8618 = vst [vmem:[#allocation69_spill] sm:$0xff] %v6058_v3  ;;  %8619 = vst [vmem:[#allocation70_spill] sm:$0xff] %v6060_v45  ;;  %v520_v45 = vld [vmem:[#allocation2 + $0x51] sm:$0xff]  ;;  %v527_v3 = vld [vmem:[#allocation2 + $0xa9] sm:$0xff] }
 0x141   : > { %1253 = vrot.lane.b32.xlu1 %v5729_v19, %s5231_s7  ;;  %1383 = vrot.lane.b32.xlu0 %v518_v11, %s5232_s8 }
 0x143   : > { %v6065_v43 = vpop.permute.xlu1 %903  ;;  %v6067_v40 = vpop.permute.xlu0 %909 }
 0x144   : > { %8620 = vst [vmem:[#allocation71_spill] sm:$0xff] %v6065_v43  ;;  %8621 = vst [vmem:[#allocation72_spill] sm:$0xff] %v6067_v40 }
 0x145   : > { %1381 = vrot.lane.b32.xlu1 %v517_v42, %s5232_s8  ;;  %1511 = vrot.lane.b32.xlu0 %v5666_v8, %s5233_s9  ;;  %v519_v42 = vld [vmem:[#allocation2 + $0x49] sm:$0xff] }
 0x147   : > { %v6072_v6 = vpop.permute.xlu1 %907  ;;  %v6074_v41 = vpop.permute.xlu0 %913 }
 0x148   : > { %8622 = vst [vmem:[#allocation73_spill] sm:$0xff] %v6072_v6  ;;  %8623 = vst [vmem:[#allocation74_spill] sm:$0xff] %v6074_v41 }
 0x149   : > { %1509 = vrot.lane.b32.xlu1 %v5655_v5, %s5233_s9  ;;  %1259 = vrot.lane.b32.xlu0 %v5759_v36, %s5231_s7 }
 0x14b   : > { %v6080_v11 = vpop.permute.xlu1 %911  ;;  %v6082_v40 = vpop.permute.xlu0 %917 }
 0x14c   : > { %8624 = vst [vmem:[#allocation75_spill] sm:$0xff] %v6080_v11  ;;  %8625 = vst [vmem:[#allocation76_spill] sm:$0xff] %v6082_v40  ;;  %v522_v40 = vld [vmem:[#allocation2 + $0x69] sm:$0xff] }
 0x14d   : > { %1257 = vrot.lane.b32.xlu1 %v5741_v23, %s5231_s7  ;;  %1387 = vrot.lane.b32.xlu0 %v520_v45, %s5232_s8 }
 0x14f   : > { %v6087_v8 = vpop.permute.xlu1 %915  ;;  %v6089_v41 = vpop.permute.xlu0 %921 }
 0x150   : > { %8626 = vst [vmem:[#allocation77_spill] sm:$0xff] %v6087_v8  ;;  %8627 = vst [vmem:[#allocation78_spill] sm:$0xff] %v6089_v41 }
 0x151   : > { %1385 = vrot.lane.b32.xlu1 %v519_v42, %s5232_s8  ;;  %1515 = vrot.lane.b32.xlu0 %v5674_v10, %s5233_s9  ;;  %v521_v42 = vld [vmem:[#allocation2 + $0x61] sm:$0xff] }
 0x153   : > { %v6094_v5 = vpop.permute.xlu1 %919  ;;  %v6096_v11 = vpop.permute.xlu0 %925 }
 0x154   : > { %8628 = vst [vmem:[#allocation79_spill] sm:$0xff] %v6094_v5  ;;  %8629 = vst [vmem:[#allocation80_spill] sm:$0xff] %v6096_v11 }
 0x155   : > { %1513 = vrot.lane.b32.xlu1 %v5662_v7, %s5233_s9  ;;  %1263 = vrot.lane.b32.xlu0 %v5771_v16, %s5231_s7 }
 0x157   : > { %v6102_v45 = vpop.permute.xlu1 %923  ;;  %v6104_v8 = vpop.permute.xlu0 %929 }
 0x158   : > { %8630 = vst [vmem:[#allocation81_spill] sm:$0xff] %v6102_v45  ;;  %8631 = vst [vmem:[#allocation82_spill] sm:$0xff] %v6104_v8  ;;  %v524_v8 = vld [vmem:[#allocation2 + $0x81] sm:$0xff] }
 0x159   : > { %1261 = vrot.lane.b32.xlu1 %v5753_v33, %s5231_s7  ;;  %1391 = vrot.lane.b32.xlu0 %v522_v40, %s5232_s8 }
 0x15b   : > { %v6109_v10 = vpop.permute.xlu1 %927  ;;  %v6111_v11 = vpop.permute.xlu0 %997 }
 0x15c   : > { %8632 = vst [vmem:[#allocation83_spill] sm:$0xff] %v6109_v10 }
 0x15d   : > { %1389 = vrot.lane.b32.xlu1 %v521_v42, %s5232_s8  ;;  %1519 = vrot.lane.b32.xlu0 %v5682_v12, %s5233_s9  ;;  %v523_v42 = vld [vmem:[#allocation2 + $0x79] sm:$0xff] }
 0x15f   : > { %v6116_v7 = vpop.permute.xlu1 %931  ;;  %v6118_v45 = vpop.permute.xlu0 %1001 }
 0x160   : > { %8633 = vst [vmem:[#allocation84_spill] sm:$0xff] %v6116_v7  ;;  %v556_v7 = vld [vmem:[#allocation2 + $0x82] sm:$0xff] }
 0x161   : > { %1517 = vrot.lane.b32.xlu1 %v5670_v9, %s5233_s9  ;;  %1267 = vrot.lane.b32.xlu0 %v5783_v35, %s5231_s7  ;;  %v555_v9 = vld [vmem:[#allocation2 + $0x7a] sm:$0xff] }
 0x163   : > { %v6124_v40 = vpop.permute.xlu1 %999  ;;  %v6126_v10 = vpop.permute.xlu0 %1005 }
 0x165   : > { %1265 = vrot.lane.b32.xlu1 %v5765_v62, %s5231_s7  ;;  %1395 = vrot.lane.b32.xlu0 %v524_v8, %s5232_s8 }
 0x167   : > { %v6131_v12 = vpop.permute.xlu1 %1003  ;;  %v6133_v41 = vpop.permute.xlu0 %1009 }
 0x169   : > { %1393 = vrot.lane.b32.xlu1 %v523_v42, %s5232_s8  ;;  %1523 = vrot.lane.b32.xlu0 %v556_v7, %s5233_s9 }
 0x16b   : > { %v6137_v5 = vpop.permute.xlu1 %1007  ;;  %v6139_v6 = vpop.permute.xlu0 %1013 }
 0x16d   : > { %1521 = vrot.lane.b32.xlu1 %v555_v9, %s5233_s9  ;;  %1269 = vrot.lane.b32.xlu0 %v5777_v29, %s5231_s7  ;;  %v526_v9 = vld [vmem:[#allocation2 + $0x99] sm:$0xff] }
 0x16f   : > { %v6144_v8 = vpop.permute.xlu1 %1011  ;;  %v6146_v43 = vpop.permute.xlu0 %1017 }
 0x171   : > { %1143 = vrot.lane.b32.xlu1 %v556_v7, %s5230_s23  ;;  %1397 = vrot.lane.b32.xlu0 %v525_v32, %s5232_s8 }
 0x173   : > { %v6150_v42 = vpop.permute.xlu1 %1015  ;;  %v6152_v2 = vpop.permute.xlu0 %1021 }
 0x174   : > { %8634 = vst [vmem:[#allocation85_spill] sm:$0xff] %v6152_v2  ;;  %v8656_v2 = vld [vmem:[#allocation4_spill] sm:$0xff] }
 0x175   : > { %1271 = vrot.lane.b32.xlu1 %v5795_v24, %s5231_s7  ;;  %1525 = vrot.lane.b32.xlu0 %v557_v38, %s5233_s9  ;;  %v1605_v46 = vsel %vm171_vm0, %v292_v58, %v8656_v2 }
 0x177   : > { %v6157_v29 = vpop.permute.xlu1 %1019  ;;  %v6159_v60 = vpop.permute.xlu0 %1025 }
 0x178   : > { %8635 = vst [vmem:[#allocation86_spill] sm:$0xff] %v6157_v29  ;;  %8636 = vst [vmem:[#allocation87_spill] sm:$0xff] %v6159_v60  ;;  %v559_v60 = vld [vmem:[#allocation2 + $0xaa] sm:$0xff] }
 0x179   : > { %1399 = vrot.lane.b32.xlu1 %v526_v9, %s5232_s8  ;;  %1527 = vrot.lane.b32.xlu0 %v558_v30, %s5233_s9  ;;  %v8658_v29 = vld [vmem:[#allocation38_spill] sm:$0xff] }
 0x17b   : > { %v6163_v32 = vpop.permute.xlu1 %1023  ;;  %v6165_v7 = vpop.permute.xlu0 %1029 }
 0x17c   : > { %8637 = vst [vmem:[#allocation88_spill] sm:$0xff] %v6163_v32  ;;  %8638 = vst [vmem:[#allocation89_spill] sm:$0xff] %v6165_v7  ;;  %v560_v7 = vld [vmem:[#allocation2 + $0xb2] sm:$0xff] }
 0x17d   : > { %1145 = vrot.lane.b32.xlu1 %v557_v38, %s5230_s23  ;;  %1273 = vrot.lane.b32.xlu0 %v5789_v4, %s5231_s7  ;;  %v528_v38 = vld [vmem:[#allocation2 + $0xb1] sm:$0xff] }
 0x17e   : > { %v502_v32 = vld [vmem:[#allocation2 + $0xf8] sm:$0xff] }
 0x17f   : > { %v6170_v24 = vpop.permute.xlu1 %1027  ;;  %v6172_v31 = vpop.permute.xlu0 %1033 }
 0x180   : > { %8639 = vst [vmem:[#allocation90_spill] sm:$0xff] %v6170_v24  ;;  %8640 = vst [vmem:[#allocation91_spill] sm:$0xff] %v6172_v31 }
 0x181   : > { %1147 = vrot.lane.b32.xlu1 %v558_v30, %s5230_s23  ;;  %1401 = vrot.lane.b32.xlu0 %v527_v3, %s5232_s8 }
 0x183   : > { %v6176_v9 = vpop.permute.xlu1 %1031  ;;  %v6178_v56 = vpop.permute.xlu0 %1037 }
 0x184   : > { %8641 = vst [vmem:[#allocation92_spill] sm:$0xff] %v6176_v9  ;;  %8642 = vst [vmem:[#allocation93_spill] sm:$0xff] %v6178_v56  ;;  %v529_v56 = vld [vmem:[#allocation2 + $0xc1] sm:$0xff]  ;;  %v533_v9 = vld [vmem:[#allocation2 + $0xf1] sm:$0xff] }
 0x185   : > { %1275 = vrot.lane.b32.xlu1 %v5807_v20, %s5231_s7  ;;  %1529 = vrot.lane.b32.xlu0 %v559_v60, %s5233_s9 }
 0x187   : > { %v6183_v4 = vpop.permute.xlu1 %1035  ;;  %v6185_v24 = vpop.permute.xlu0 %1041 }
 0x188   : > { %8643 = vst [vmem:[#allocation94_spill] sm:$0xff] %v6183_v4  ;;  %8644 = vst [vmem:[#allocation95_spill] sm:$0xff] %v6185_v24  ;;  %v561_v24 = vld [vmem:[#allocation2 + $0xc2] sm:$0xff] }
 0x189   : > { %1403 = vrot.lane.b32.xlu1 %v528_v38, %s5232_s8  ;;  %1531 = vrot.lane.b32.xlu0 %v560_v7, %s5233_s9 }
 0x18b   : > { %v6189_v30 = vpop.permute.xlu1 %1039  ;;  %v6191_v3 = vpop.permute.xlu0 %1045 }
 0x18c   : > { %8645 = vst [vmem:[#allocation96_spill] sm:$0xff] %v6189_v30  ;;  %8646 = vst [vmem:[#allocation97_spill] sm:$0xff] %v6191_v3  ;;  %v562_v3 = vld [vmem:[#allocation2 + $0xca] sm:$0xff] }
 0x18d   : > { %1149 = vrot.lane.b32.xlu1 %v559_v60, %s5230_s23  ;;  %1277 = vrot.lane.b32.xlu0 %v5801_v39, %s5231_s7  ;;  %v530_v60 = vld [vmem:[#allocation2 + $0xc9] sm:$0xff] }
 0x18f   : > { %v6196_v20 = vpop.permute.xlu1 %1043  ;;  %v6198_v4 = vpop.permute.xlu0 %1049 }
 0x190   : > { %8647 = vst [vmem:[#allocation98_spill] sm:$0xff] %v6196_v20  ;;  %8648 = vst [vmem:[#allocation99_spill] sm:$0xff] %v6198_v4 }
 0x191   : > { %1151 = vrot.lane.b32.xlu1 %v560_v7, %s5230_s23  ;;  %1405 = vrot.lane.b32.xlu0 %v529_v56, %s5232_s8 }
 0x193   : > { %v6202_v38 = vpop.permute.xlu1 %1047  ;;  %v6204_v30 = vpop.permute.xlu0 %1053 }
 0x194   : > { %8649 = vst [vmem:[#allocation100_spill] sm:$0xff] %v6202_v38  ;;  %8650 = vst [vmem:[#allocation101_spill] sm:$0xff] %v6204_v30  ;;  %v531_v30 = vld [vmem:[#allocation2 + $0xd9] sm:$0xff] }
 0x195   : > { %1279 = vrot.lane.b32.xlu1 %v5819_v17, %s5231_s7  ;;  %1533 = vrot.lane.b32.xlu0 %v561_v24, %s5233_s9 }
 0x197   : > { %v6209_v39 = vpop.permute.xlu1 %1051  ;;  %v6211_v20 = vpop.permute.xlu0 %1057 }
 0x198   : > { %8651 = vst [vmem:[#allocation102_spill] sm:$0xff] %v6209_v39  ;;  %8652 = vst [vmem:[#allocation103_spill] sm:$0xff] %v6211_v20  ;;  %v563_v20 = vld [vmem:[#allocation2 + $0xda] sm:$0xff] }
 0x199   : > { %1407 = vrot.lane.b32.xlu1 %v530_v60, %s5232_s8  ;;  %1535 = vrot.lane.b32.xlu0 %v562_v3, %s5233_s9 }
 0x19b   : > { %v6215_v56 = vpop.permute.xlu1 %1055  ;;  %v1126_v7 = vpop.permute.xlu0 %1125 }
 0x19c   : > { %8653 = vst [vmem:[#allocation104_spill] sm:$0xff] %v6215_v56  ;;  %v8655_v56 = vld [vmem:[#allocation31_spill] sm:$0xff] }
 0x19d   : > { %1153 = vrot.lane.b32.xlu1 %v561_v24, %s5230_s23  ;;  %1281 = vrot.lane.b32.xlu0 %v5813_v0, %s5231_s7  ;;  %v532_v24 = vld [vmem:[#allocation2 + $0xe1] sm:$0xff] }
 0x19f   : > { %v6220_v17 = vpop.permute.xlu1 %1059  ;;  %v6222_v4 = vpop.permute.xlu0 %1129 }
 0x1a0   : > { %8654 = vst [vmem:[#allocation105_spill] sm:$0xff] %v6220_v17  ;;  %v564_v17 = vld [vmem:[#allocation2 + $0xe2] sm:$0xff] }
 0x1a1   : > { %1155 = vrot.lane.b32.xlu1 %v562_v3, %s5230_s23  ;;  %1409 = vrot.lane.b32.xlu0 %v531_v30, %s5232_s8  ;;  %v501_v3 = vld [vmem:[#allocation2 + $0xf0] sm:$0xff] }
 0x1a3   : > { %v1128_v60 = vpop.permute.xlu1 %1127  ;;  %v6226_v39 = vpop.permute.xlu0 %1133 }
 0x1a5   : > { %1283 = vrot.lane.b32.xlu1 %v8655_v56, %s5231_s7  ;;  %1537 = vrot.lane.b32.xlu0 %v563_v20, %s5233_s9 }
 0x1a7   : > { %v6231_v0 = vpop.permute.xlu1 %1131  ;;  %v6233_v38 = vpop.permute.xlu0 %1137 }
 0x1a9   : > { %1411 = vrot.lane.b32.xlu1 %v532_v24, %s5232_s8  ;;  %1539 = vrot.lane.b32.xlu0 %v564_v17, %s5233_s9  ;;  %v293_v24 = vld [vmem:[#allocation2 + $0x8] sm:$0xff] }
 0x1ab   : > { %v6237_v30 = vpop.permute.xlu1 %1135  ;;  %v6239_v31 = vpop.permute.xlu0 %1141 }
 0x1ad   : > { %1157 = vrot.lane.b32.xlu1 %v563_v20, %s5230_s23  ;;  %1285 = vrot.lane.b32.xlu0 %v501_v3, %s5231_s7  ;;  %v8657_v3 = vld [vmem:[#allocation5_spill] sm:$0xff] }
 0x1ae   : > { %v1606_v1 = vsel %vm171_vm0, %v293_v24, %v8657_v3  ;;  %v566_v24 = vld [vmem:[#allocation2 + $0xfa] sm:$0xff]  ;;  %v503_v3 = vld [vmem:[#allocation2 + $0x108] sm:$0xff] }
 0x1af   : > { %v6243_v56 = vpop.permute.xlu1 %1139  ;;  %v1256_v44 = vpop.permute.xlu0 %1255 }
 0x1b1   : > { %1159 = vrot.lane.b32.xlu1 %v564_v17, %s5230_s23  ;;  %1413 = vrot.lane.b32.xlu0 %v533_v9, %s5232_s8  ;;  %v1638_v17 = vsel %vm1637_vm2, %v1605_v46, %v8658_v29  ;;  %v1639_v9 = vsel %vm1637_vm2, %v1606_v1, %v5859_v34 }
 0x1b2   : > { %v1671_v26 = vsel %vm1670_vm4, %v1638_v17, %v5969_v52  ;;  %v1672_v2 = vsel %vm1670_vm4, %v1639_v9, %v5983_v55  ;;  %v8660_v9 = vld [vmem:[#allocation10_spill] sm:$0xff] }
 0x1b3   : > { %v1254_v48 = vpop.permute.xlu1 %1253  ;;  %v1384_v20 = vpop.permute.xlu0 %1383  ;;  %v1705_v46 = vsel %vm1703_vm5, %v1672_v2, %v6124_v40  ;;  %v8661_v2 = vld [vmem:[#allocation8_spill] sm:$0xff] }
 0x1b4   : > { %v1738_v1 = vsel %vm1736_vm6, %v1705_v46, %v1128_v60  ;;  %v8659_v60 = vld [vmem:[#allocation6_spill] sm:$0xff] }
 0x1b5   : > { %1287 = vrot.lane.b32.xlu1 %v502_v32, %s5231_s7  ;;  %1541 = vrot.lane.b32.xlu0 %v565_v27, %s5233_s9  ;;  %v1704_v32 = vsel %vm1703_vm5, %v1671_v26, %v6111_v11  ;;  %v1771_v55 = vsel %vm1769_vm7, %v1738_v1, %v1256_v44 }
 0x1b6   : > { %v1737_v29 = vsel %vm1736_vm6, %v1704_v32, %v1126_v7  ;;  %v1804_v40 = vsel %vm1802_vm8, %v1771_v55, %v1384_v20  ;;  %v1607_v20 = vsel %vm171_vm0, %v8660_v9, %v8659_v60  ;;  %v8662_v32 = vld [vmem:[#allocation14_spill] sm:$0xff] }
 0x1b7   : > { %v1382_v58 = vpop.permute.xlu1 %1381  ;;  %v1512_v34 = vpop.permute.xlu0 %1511  ;;  %v1770_v52 = vsel %vm1769_vm7, %v1737_v29, %v1254_v48  ;;  %v535_v48 = vld [vmem:[#allocation2 + $0x109] sm:$0xff]  ;;  %v1608_v46 = vsel %vm171_vm0, %v8662_v32, %v8661_v2  ;;  %v568_v60 = vld [vmem:[#allocation2 + $0x112] sm:$0xff] }
 0x1b8   : > { %v1803_v26 = vsel %vm1802_vm8, %v1770_v52, %v1382_v58  ;;  %v1641_v1 = vsel %vm1637_vm2, %v1608_v46, %v5865_v15  ;;  %v8665_v32 = vld [vmem:[#allocation11_spill] sm:$0xff] }
 0x1b9   : > { %1415 = vrot.lane.b32.xlu1 %v534_v47, %s5232_s8  ;;  %1543 = vrot.lane.b32.xlu0 %v566_v24, %s5233_s9  ;;  %v1837_v47 = vsel %vm1835_vm9, %v1804_v40, %v1512_v34  ;;  %v504_v34 = vld [vmem:[#allocation2 + $0x110] sm:$0xff]  ;;  %v1610_v46 = vsel %vm171_vm0, %v5747_v28, %v8665_v32 }
 0x1bb   : > { %v1510_v11 = vpop.permute.xlu1 %1509  ;;  %v1260_v17 = vpop.permute.xlu0 %1259 }
 0x1bc   : > { %v1836_v7 = vsel %vm1835_vm9, %v1803_v26, %v1510_v11  ;;  %v567_v11 = vld [vmem:[#allocation2 + $0x10a] sm:$0xff] }
 0x1bd   : > { %1161 = vrot.lane.b32.xlu1 %v565_v27, %s5230_s23  ;;  %5024 = vmatprep.mubr.msk.f32.mxu0 %vm1873_vm10, %v1836_v7  ;;  %v8663_v27 = vld [vmem:[#allocation40_spill] sm:$0xff] }
 0x1be   : > { %5025 = vmatmul.mubr.msk.f32.vlgmr.msra.gmra.mrb[0].mxu0 %vm1873_vm10, %v1837_v47  ;;  %1289 = vrot.lane.b32.xlu0 %v503_v3, %s5231_s7  ;;  %v1640_v29 = vsel %vm1637_vm2, %v1607_v20, %v8663_v27  ;;  %v536_v47 = vld [vmem:[#allocation2 + $0x111] sm:$0xff] }
 0x1bf   : > { %v1258_v44 = vpop.permute.xlu1 %1257  ;;  %v1388_v58 = vpop.permute.xlu0 %1387  ;;  %v1673_v52 = vsel %vm1670_vm4, %v1640_v29, %v5977_v54  ;;  %v1643_v29 = vsel %vm1637_vm2, %v1610_v46, %v5872_v37 }
 0x1c0   : > { %v1706_v26 = vsel %vm1703_vm5, %v1673_v52, %v6118_v45 }
 0x1c1   : > { %1163 = vrot.lane.b32.xlu1 %v566_v24, %s5230_s23  ;;  %v1674_v24 = vsel %vm1670_vm4, %v1641_v1, %v5993_v57  ;;  %v1739_v7 = vsel %vm1736_vm6, %v1706_v26, %v6222_v4  ;;  %v506_v26 = vld [vmem:[#allocation2 + $0x128] sm:$0xff] }
 0x1c2   : > { %1417 = vrot.lane.b32.xlu0 %v535_v48, %s5232_s8  ;;  %v1707_v40 = vsel %vm1703_vm5, %v1674_v24, %v6131_v12  ;;  %v1772_v3 = vsel %vm1769_vm7, %v1739_v7, %v1258_v44  ;;  %v8664_v44 = vld [vmem:[#allocation7_spill] sm:$0xff] }
 0x1c3   : > { %v1386_v55 = vpop.permute.xlu1 %1385  ;;  %v1516_v15 = vpop.permute.xlu0 %1515  ;;  %v1740_v54 = vsel %vm1736_vm6, %v1707_v40, %v6231_v0  ;;  %v569_v40 = vld [vmem:[#allocation2 + $0x122] sm:$0xff] }
 0x1c4   : > { %v1773_v57 = vsel %vm1769_vm7, %v1740_v54, %v1260_v17  ;;  %v1805_v45 = vsel %vm1802_vm8, %v1772_v3, %v1386_v55  ;;  %v505_v17 = vld [vmem:[#allocation2 + $0x120] sm:$0xff]  ;;  %v570_v3 = vld [vmem:[#allocation2 + $0x12a] sm:$0xff] }
 0x1c5   : > { %1291 = vrot.lane.b32.xlu1 %v504_v34, %s5231_s7  ;;  %v1806_v12 = vsel %vm1802_vm8, %v1773_v57, %v1388_v58  ;;  %v1609_v58 = vsel %vm171_vm0, %v5729_v19, %v8664_v44  ;;  %v1676_v19 = vsel %vm1670_vm4, %v1643_v29, %v6003_v61  ;;  %v537_v55 = vld [vmem:[#allocation2 + $0x121] sm:$0xff] }
 0x1c6   : > { %1545 = vrot.lane.b32.xlu0 %v567_v11, %s5233_s9  ;;  %v1839_v9 = vsel %vm1835_vm9, %v1806_v12, %v1516_v15  ;;  %v1642_v27 = vsel %vm1637_vm2, %v1609_v58, %v5861_v21  ;;  %v1709_v28 = vsel %vm1703_vm5, %v1676_v19, %v6137_v5  ;;  %v571_v19 = vld [vmem:[#allocation2 + $0x13a] sm:$0xff] }
 0x1c7   : > { %v1514_v48 = vpop.permute.xlu1 %1513  ;;  %v1264_v20 = vpop.permute.xlu0 %1263  ;;  %v1675_v34 = vsel %vm1670_vm4, %v1642_v27, %v5987_v50  ;;  %v1742_v50 = vsel %vm1736_vm6, %v1709_v28, %v6237_v30  ;;  %v538_v30 = vld [vmem:[#allocation2 + $0x129] sm:$0xff]  ;;  %v8668_v27 = vld [vmem:[#allocation12_spill] sm:$0xff] }
 0x1c8   : > { %v1838_v4 = vsel %vm1835_vm9, %v1805_v45, %v1514_v48  ;;  %v1708_v52 = vsel %vm1703_vm5, %v1675_v34, %v6126_v10  ;;  %v1775_v61 = vsel %vm1769_vm7, %v1742_v50, %v1264_v20  ;;  %v8667_v48 = vld [vmem:[#allocation13_spill] sm:$0xff]  ;;  %v1613_v29 = vsel %vm171_vm0, %v5753_v33, %v8668_v27  ;;  %v8669_v28 = vld [vmem:[#allocation16_spill] sm:$0xff] }
 0x1c9   : > { %1419 = vrot.lane.b32.xlu1 %v536_v47, %s5232_s8  ;;  %5027 = vmatprep.mubr.msk.f32.mxu0 %vm1873_vm10, %v1838_v4  ;;  %v1741_v21 = vsel %vm1736_vm6, %v1708_v52, %v6226_v39  ;;  %v8666_v47 = vld [vmem:[#allocation9_spill] sm:$0xff]  ;;  %v1612_v12 = vsel %vm171_vm0, %v5759_v36, %v8667_v48 }
 0x1ca   : > { %5028 = vmatmul.mubr.msk.f32.gmra.mrb[2].mxu0 %vm1873_vm10, %v1839_v9  ;;  %1547 = vrot.lane.b32.xlu0 %v568_v60, %s5233_s9  ;;  %v1611_v57 = vsel %vm171_vm0, %v5741_v23, %v8666_v47  ;;  %v543_v27 = vld [vmem:[#allocation2 + $0x169] sm:$0xff] }
 0x1cb   : > { %v1262_v0 = vpop.permute.xlu1 %1261  ;;  %v1392_v2 = vpop.permute.xlu0 %1391  ;;  %v1644_v4 = vsel %vm1637_vm2, %v1611_v57, %v5867_v22  ;;  %v510_v57 = vld [vmem:[#allocation2 + $0x158] sm:$0xff] }
 0x1cc   : > { %v1774_v24 = vsel %vm1769_vm7, %v1741_v21, %v1262_v0  ;;  %v1808_v5 = vsel %vm1802_vm8, %v1775_v61, %v1392_v2  ;;  %v1677_v9 = vsel %vm1670_vm4, %v1644_v4, %v5995_v59  ;;  %v1614_v21 = vsel %vm171_vm0, %v5771_v16, %v8669_v28  ;;  %v572_v61 = vld [vmem:[#allocation2 + $0x142] sm:$0xff]  ;;  %v573_v4 = vld [vmem:[#allocation2 + $0x152] sm:$0xff] }
 0x1cd   : > { %1165 = vrot.lane.b32.xlu1 %v567_v11, %s5230_s23  ;;  %v1710_v0 = vsel %vm1703_vm5, %v1677_v9, %v6133_v41  ;;  %v1647_v50 = vsel %vm1637_vm2, %v1614_v21, %v5887_v25  ;;  %v8671_v9 = vld [vmem:[#allocation18_spill] sm:$0xff]  ;;  %v8677_v21 = vld [vmem:[#allocation64_spill] sm:$0xff] }
 0x1ce   : > { %1293 = vrot.lane.b32.xlu0 %v505_v17, %s5231_s7  ;;  %v507_v17 = vld [vmem:[#allocation2 + $0x138] sm:$0xff]  ;;  %v1743_v22 = vsel %vm1736_vm6, %v1710_v0, %v6233_v38  ;;  %v512_v28 = vld [vmem:[#allocation2 + $0x170] sm:$0xff] }
 0x1cf   : > { %v1390_v1 = vpop.permute.xlu1 %1389  ;;  %v1520_v37 = vpop.permute.xlu0 %1519  ;;  %v539_v38 = vld [vmem:[#allocation2 + $0x139] sm:$0xff] }
 0x1d0   : > { %v1807_v10 = vsel %vm1802_vm8, %v1774_v24, %v1390_v1  ;;  %v1841_v7 = vsel %vm1835_vm9, %v1808_v5, %v1520_v37  ;;  %v1646_v1 = vsel %vm1637_vm2, %v1613_v29, %v5874_v14  ;;  %v540_v37 = vld [vmem:[#allocation2 + $0x141] sm:$0xff]  ;;  %v1680_v24 = vsel %vm1670_vm4, %v1647_v50, %v6025_v49  ;;  %v5197_v29 = vld [vmem:[#allocation2 + $0x90] sm:$0xff] }
 0x1d1   : > { %1167 = vrot.lane.b32.xlu1 %v568_v60, %s5230_s23  ;;  %v1645_v60 = vsel %vm1637_vm2, %v1612_v12, %v5879_v13  ;;  %v1679_v52 = vsel %vm1670_vm4, %v1646_v1, %v6005_v53  ;;  %v1713_v16 = vsel %vm1703_vm5, %v1680_v24, %v6150_v42  ;;  %v8678_v50 = vld [vmem:[#allocation85_spill] sm:$0xff] }
 0x1d2   : > { %1421 = vrot.lane.b32.xlu0 %v537_v55, %s5232_s8  ;;  %v1678_v23 = vsel %vm1670_vm4, %v1645_v60, %v6011_v63  ;;  %v1712_v33 = vsel %vm1703_vm5, %v1679_v52, %v6139_v6  ;;  %v8676_v52 = vld [vmem:[#allocation41_spill] sm:$0xff] }
 0x1d3   : > { %v1518_v11 = vpop.permute.xlu1 %1517  ;;  %v1268_v15 = vpop.permute.xlu0 %1267  ;;  %v1711_v36 = vsel %vm1703_vm5, %v1678_v23, %v6144_v8  ;;  %v1745_v14 = vsel %vm1736_vm6, %v1712_v33, %v6239_v31  ;;  %v8672_v23 = vld [vmem:[#allocation42_spill] sm:$0xff] }
 0x1d4   : > { %v1840_v39 = vsel %vm1835_vm9, %v1807_v10, %v1518_v11  ;;  %v1744_v59 = vsel %vm1736_vm6, %v1711_v36, %v6243_v56  ;;  %v508_v56 = vld [vmem:[#allocation2 + $0x140] sm:$0xff] }
 0x1d5   : > { %1295 = vrot.lane.b32.xlu1 %v506_v26, %s5231_s7  ;;  %5030 = vmatprep.mubr.msk.f32.mxu0 %vm1873_vm10, %v1840_v39  ;;  %v1777_v63 = vsel %vm1769_vm7, %v1744_v59, %v1268_v15  ;;  %v509_v39 = vld [vmem:[#allocation2 + $0x150] sm:$0xff] }
 0x1d6   : > { %5031 = vmatmul.mubr.msk.f32.gmra.mrb[4].mxu0 %vm1873_vm10, %v1841_v7  ;;  %1549 = vrot.lane.b32.xlu0 %v569_v40, %s5233_s9  ;;  %v541_v15 = vld [vmem:[#allocation2 + $0x151] sm:$0xff] }
 0x1d7   : > { %v1266_v54 = vpop.permute.xlu1 %1265  ;;  %v1396_v45 = vpop.permute.xlu0 %1395 }
 0x1d8   : > { %v1776_v44 = vsel %vm1769_vm7, %v1743_v22, %v1266_v54  ;;  %v1810_v8 = vsel %vm1802_vm8, %v1777_v63, %v1396_v45  ;;  %v574_v22 = vld [vmem:[#allocation2 + $0x15a] sm:$0xff] }
 0x1d9   : > { %1423 = vrot.lane.b32.xlu1 %v538_v30, %s5232_s8  ;;  %v8670_v30 = vld [vmem:[#allocation15_spill] sm:$0xff] }
 0x1da   : > { %1551 = vrot.lane.b32.xlu0 %v570_v3, %s5233_s9  ;;  %v1615_v54 = vsel %vm171_vm0, %v5765_v62, %v8670_v30 }
 0x1db   : > { %v1394_v20 = vpop.permute.xlu1 %1393  ;;  %v1524_v13 = vpop.permute.xlu0 %1523  ;;  %v1648_v47 = vsel %vm1637_vm2, %v1615_v54, %v5881_v18  ;;  %v1616_v18 = vsel %vm171_vm0, %v5783_v35, %v8671_v9  ;;  %v8683_v9 = vld [vmem:[#allocation19_spill] sm:$0xff] }
 0x1dc   : > { %v1809_v58 = vsel %vm1802_vm8, %v1776_v44, %v1394_v20  ;;  %v1843_v32 = vsel %vm1835_vm9, %v1810_v8, %v1524_v13  ;;  %v1681_v45 = vsel %vm1670_vm4, %v1648_v47, %v6013_v51  ;;  %v542_v20 = vld [vmem:[#allocation2 + $0x159] sm:$0xff]  ;;  %v1649_v51 = vsel %vm1637_vm2, %v1616_v18, %v8672_v23  ;;  %v8674_v13 = vld [vmem:[#allocation86_spill] sm:$0xff] }
 0x1dd   : > { %1169 = vrot.lane.b32.xlu1 %v569_v40, %s5230_s23  ;;  %v1714_v12 = vsel %vm1703_vm5, %v1681_v45, %v6146_v43  ;;  %v8684_v23 = vld [vmem:[#allocation43_spill] sm:$0xff] }
 0x1de   : > { %1297 = vrot.lane.b32.xlu0 %v507_v17, %s5231_s7  ;;  %v8673_v17 = vld [vmem:[#allocation65_spill] sm:$0xff] }
 0x1df   : > { %v1522_v41 = vpop.permute.xlu1 %1521  ;;  %v1270_v46 = vpop.permute.xlu0 %1269  ;;  %v1682_v43 = vsel %vm1670_vm4, %v1649_v51, %v8673_v17  ;;  %v8685_v17 = vld [vmem:[#allocation66_spill] sm:$0xff] }
 0x1e0   : > { %v1842_v2 = vsel %vm1835_vm9, %v1809_v58, %v1522_v41  ;;  %v1778_v26 = vsel %vm1769_vm7, %v1745_v14, %v1270_v46  ;;  %v1715_v59 = vsel %vm1703_vm5, %v1682_v43, %v8674_v13  ;;  %v8687_v13 = vld [vmem:[#allocation87_spill] sm:$0xff] }
 0x1e1   : > { %1171 = vrot.lane.b32.xlu1 %v570_v3, %s5230_s23  ;;  %5033 = vmatprep.mubr.msk.f32.mxu0 %vm1873_vm10, %v1842_v2 }
 0x1e2   : > { %5034 = vmatmul.mubr.msk.f32.gmra.mrb[6].mxu0 %vm1873_vm10, %v1843_v32  ;;  %1425 = vrot.lane.b32.xlu0 %v539_v38, %s5232_s8  ;;  %v511_v38 = vld [vmem:[#allocation2 + $0x168] sm:$0xff] }
 0x1e3   : > { %v1144_v34 = vpop.permute.xlu1 %1143  ;;  %v1398_v55 = vpop.permute.xlu0 %1397 }
 0x1e4   : > { %v1811_v6 = vsel %vm1802_vm8, %v1778_v26, %v1398_v55  ;;  %v1746_v25 = vsel %vm1736_vm6, %v1713_v16, %v1144_v34  ;;  %v8675_v34 = vld [vmem:[#allocation17_spill] sm:$0xff]  ;;  %v8679_v16 = vld [vmem:[#allocation20_spill] sm:$0xff] }
 0x1e5   : > { %1299 = vrot.lane.b32.xlu1 %v508_v56, %s5231_s7  ;;  %v1617_v1 = vsel %vm171_vm0, %v5197_v29, %v8675_v34  ;;  %v578_v34 = vld [vmem:[#allocation2 + $0x18a] sm:$0xff] }
 0x1e6   : > { %1553 = vrot.lane.b32.xlu0 %v571_v19, %s5233_s9  ;;  %v1650_v55 = vsel %vm1637_vm2, %v1617_v1, %v8676_v52  ;;  %v8692_v1 = vld [vmem:[#allocation90_spill] sm:$0xff] }
 0x1e7   : > { %v1272_v53 = vpop.permute.xlu1 %1271  ;;  %v1526_v10 = vpop.permute.xlu0 %1525  ;;  %v1683_v33 = vsel %vm1670_vm4, %v1650_v55, %v8677_v21 }
 0x1e8   : > { %v1844_v31 = vsel %vm1835_vm9, %v1811_v6, %v1526_v10  ;;  %v1779_v11 = vsel %vm1769_vm7, %v1746_v25, %v1272_v53  ;;  %v1716_v14 = vsel %vm1703_vm5, %v1683_v33, %v8678_v50  ;;  %v575_v53 = vld [vmem:[#allocation2 + $0x16a] sm:$0xff]  ;;  %v8680_v25 = vld [vmem:[#allocation44_spill] sm:$0xff] }
 0x1e9   : > { %1427 = vrot.lane.b32.xlu1 %v540_v37, %s5232_s8  ;;  %5036 = vmatprep.mubr.msk.f32.mxu0 %vm1873_vm10, %v1844_v31  ;;  %v544_v10 = vld [vmem:[#allocation2 + $0x171] sm:$0xff] }
 0x1ea   : > { %1555 = vrot.lane.b32.xlu0 %v572_v61, %s5233_s9 }
 0x1eb   : > { %v1400_v49 = vpop.permute.xlu1 %1399  ;;  %v1528_v42 = vpop.permute.xlu0 %1527 }
 0x1ec   : > { %v1812_v5 = vsel %vm1802_vm8, %v1779_v11, %v1400_v49  ;;  %v8681_v49 = vld [vmem:[#allocation67_spill] sm:$0xff] }
 0x1ed   : > { %1173 = vrot.lane.b32.xlu1 %v571_v19, %s5230_s23  ;;  %v1845_v40 = vsel %vm1835_vm9, %v1812_v5, %v1528_v42  ;;  %v576_v42 = vld [vmem:[#allocation2 + $0x172] sm:$0xff] }
 0x1ee   : > { %1301 = vrot.lane.b32.xlu0 %v509_v39, %s5231_s7  ;;  %5037 = vmatmul.mubr.msk.f32.gmra.mrb[8].mxu0 %vm1873_vm10, %v1845_v40  ;;  %v8682_v40 = vld [vmem:[#allocation88_spill] sm:$0xff] }
 0x1ef   : > { %v1146_v7 = vpop.permute.xlu1 %1145  ;;  %v1274_v3 = vpop.permute.xlu0 %1273 }
 0x1f0   : > { %v1747_v60 = vsel %vm1736_vm6, %v1714_v12, %v1146_v7 }
 0x1f1   : > { %1175 = vrot.lane.b32.xlu1 %v572_v61, %s5230_s23  ;;  %v1780_v36 = vsel %vm1769_vm7, %v1747_v60, %v1274_v3  ;;  %v5198_v61 = vld [vmem:[#allocation2 + $0x98] sm:$0xff] }
 0x1f2   : > { %1429 = vrot.lane.b32.xlu0 %v541_v15, %s5232_s8  ;;  %v1618_v6 = vsel %vm171_vm0, %v5198_v61, %v8679_v16  ;;  %v547_v16 = vld [vmem:[#allocation2 + $0x199] sm:$0xff] }
 0x1f3   : > { %v1148_v48 = vpop.permute.xlu1 %1147  ;;  %v1402_v62 = vpop.permute.xlu0 %1401  ;;  %v1651_v31 = vsel %vm1637_vm2, %v1618_v6, %v8680_v25  ;;  %v5201_v6 = vld [vmem:[#allocation2 + $0xc0] sm:$0xff] }
 0x1f4   : > { %v1813_v44 = vsel %vm1802_vm8, %v1780_v36, %v1402_v62  ;;  %v1748_v35 = vsel %vm1736_vm6, %v1715_v59, %v1148_v48  ;;  %v1684_v5 = vsel %vm1670_vm4, %v1651_v31, %v8681_v49  ;;  %v513_v48 = vld [vmem:[#allocation2 + $0x180] sm:$0xff]  ;;  %v5199_v62 = vld [vmem:[#allocation2 + $0xa8] sm:$0xff]  ;;  %v8686_v36 = vld [vmem:[#allocation62_spill] sm:$0xff] }
 0x1f5   : > { %1303 = vrot.lane.b32.xlu1 %v510_v57, %s5231_s7  ;;  %v1717_v7 = vsel %vm1703_vm5, %v1684_v5, %v8682_v40  ;;  %v1619_v18 = vsel %vm171_vm0, %v5199_v62, %v8683_v9  ;;  %v516_v5 = vld [vmem:[#allocation2 + $0x1a0] sm:$0xff]  ;;  %v8700_v62 = vld [vmem:[#allocation71_spill] sm:$0xff] }
 0x1f6   : > { %1557 = vrot.lane.b32.xlu0 %v573_v4, %s5233_s9  ;;  %v1652_v51 = vsel %vm1637_vm2, %v1619_v18, %v8684_v23 }
 0x1f7   : > { %v1276_v0 = vpop.permute.xlu1 %1275  ;;  %v1530_v63 = vpop.permute.xlu0 %1529  ;;  %v1685_v43 = vsel %vm1670_vm4, %v1652_v51, %v8685_v17 }
 0x1f8   : > { %v1846_v58 = vsel %vm1835_vm9, %v1813_v44, %v1530_v63  ;;  %v1781_v41 = vsel %vm1769_vm7, %v1748_v35, %v1276_v0  ;;  %v514_v0 = vld [vmem:[#allocation2 + $0x188] sm:$0xff]  ;;  %v1718_v59 = vsel %vm1703_vm5, %v1685_v43, %v8687_v13 }
 0x1f9   : > { %1431 = vrot.lane.b32.xlu1 %v542_v20, %s5232_s8  ;;  %5039 = vmatprep.mubr.msk.f32.mxu0 %vm1873_vm10, %v1846_v58  ;;  %v577_v44 = vld [vmem:[#allocation2 + $0x182] sm:$0xff]  ;;  %v8688_v58 = vmov 0.0  }
 0x1fa   : > { %1559 = vrot.lane.b32.xlu0 %v574_v22, %s5233_s9  ;;  %2478 = vst.msk [vmem:[#allocation3 + $0x28] sm:$0x3] %vm2474_vm11, %v8688_v58  ;;  %2475 = vst.msk [vmem:[#allocation3 + $0x10] sm:$0x3] %vm2474_vm11, %v8688_v58 }
 0x1fb   : > { %v1404_v8 = vpop.permute.xlu1 %1403  ;;  %v1532_v32 = vpop.permute.xlu0 %1531  ;;  %2481 = vst.msk [vmem:[#allocation3 + $0x40] sm:$0x3] %vm2474_vm11, %v8688_v58  ;;  %2484 = vst.msk [vmem:[#allocation3 + $0x58] sm:$0x3] %vm2474_vm11, %v8688_v58 }
 0x1fc   : > { %v1814_v2 = vsel %vm1802_vm8, %v1781_v41, %v1404_v8  ;;  %2487 = vst.msk [vmem:[#allocation3 + $0x70] sm:$0x3] %vm2474_vm11, %v8688_v58  ;;  %2490 = vst.msk [vmem:[#allocation3 + $0x88] sm:$0x3] %vm2474_vm11, %v8688_v58  ;;  %v5200_v41 = vld [vmem:[#allocation2 + $0xb0] sm:$0xff] }
 0x1fd   : > { %1177 = vrot.lane.b32.xlu1 %v573_v4, %s5230_s23  ;;  %v1847_v46 = vsel %vm1835_vm9, %v1814_v2, %v1532_v32  ;;  %2493 = vst.msk [vmem:[#allocation3 + $0xa0] sm:$0x3] %vm2474_vm11, %v8688_v58  ;;  %2496 = vst.msk [vmem:[#allocation3 + $0xb8] sm:$0x3] %vm2474_vm11, %v8688_v58  ;;  %v8689_v8 = vld [vmem:[#allocation22_spill] sm:$0xff] }
 0x1fe   : > { %1305 = vrot.lane.b32.xlu0 %v511_v38, %s5231_s7  ;;  %5040 = vmatmul.mubr.msk.f32.gmra.mrb[10].mxu0 %vm1873_vm10, %v1847_v46  ;;  %2499 = vst.msk [vmem:[#allocation3 + $0xd0] sm:$0x3] %vm2474_vm11, %v8688_v58  ;;  %2502 = vst.msk [vmem:[#allocation3 + $0xe8] sm:$0x3] %vm2474_vm11, %v8688_v58  ;;  %v1620_v2 = vsel %vm171_vm0, %v5200_v41, %v8689_v8  ;;  %v8690_v38 = vld [vmem:[#allocation46_spill] sm:$0xff]  ;;  %v8702_v41 = vld [vmem:[#allocation23_spill] sm:$0xff] }
 0x1ff   : > { %v1150_v56 = vpop.permute.xlu1 %1149  ;;  %v1278_v19 = vpop.permute.xlu0 %1277  ;;  %2505 = vst.msk [vmem:[#allocation3 + $0x100] sm:$0x3] %vm2474_vm11, %v8688_v58  ;;  %2508 = vst.msk [vmem:[#allocation3 + $0x118] sm:$0x3] %vm2474_vm11, %v8688_v58  ;;  %v1653_v32 = vsel %vm1637_vm2, %v1620_v2, %v8690_v38  ;;  %v8703_v38 = vld [vmem:[#allocation47_spill] sm:$0xff] }
 0x200   : > { %v1749_v24 = vsel %vm1736_vm6, %v1716_v14, %v1150_v56  ;;  %2511 = vst.msk [vmem:[#allocation3 + $0x130] sm:$0x3] %vm2474_vm11, %v8688_v58  ;;  %2514 = vst.msk [vmem:[#allocation3 + $0x148] sm:$0x3] %vm2474_vm11, %v8688_v58  ;;  %v8691_v56 = vld [vmem:[#allocation69_spill] sm:$0xff] }
 0x201   : > { %1179 = vrot.lane.b32.xlu1 %v574_v22, %s5230_s23  ;;  %v1782_v39 = vsel %vm1769_vm7, %v1749_v24, %v1278_v19  ;;  %2517 = vst.msk [vmem:[#allocation3 + $0x160] sm:$0x3] %vm2474_vm11, %v8688_v58  ;;  %2520 = vst.msk [vmem:[#allocation3 + $0x178] sm:$0x3] %vm2474_vm11, %v8688_v58 }
 0x202   : > { %1433 = vrot.lane.b32.xlu0 %v543_v27, %s5232_s8  ;;  %2523 = vst.msk [vmem:[#allocation3 + $0x190] sm:$0x3] %vm2474_vm11, %v8688_v58  ;;  %2526 = vst.msk [vmem:[#allocation3 + $0x1a8] sm:$0x3] %vm2474_vm11, %v8688_v58  ;;  %v1686_v27 = vsel %vm1670_vm4, %v1653_v32, %v8691_v56  ;;  %v5203_v58 = vld [vmem:[#allocation2 + $0xd8] sm:$0xff] }
 0x203   : > { %v1152_v37 = vpop.permute.xlu1 %1151  ;;  %v1406_v26 = vpop.permute.xlu0 %1405  ;;  %v1719_v19 = vsel %vm1703_vm5, %v1686_v27, %v8692_v1  ;;  %v1623_v8 = vsel %vm171_vm0, %v5203_v58, %v8702_v41 }
 0x204   : > { %v1815_v15 = vsel %vm1802_vm8, %v1782_v39, %v1406_v26  ;;  %v1750_v54 = vsel %vm1736_vm6, %v1717_v7, %v1152_v37  ;;  %v8696_v39 = vld [vmem:[#allocation68_spill] sm:$0xff]  ;;  %v8697_v7 = vld [vmem:[#allocation89_spill] sm:$0xff]  ;;  %v1656_v32 = vsel %vm1637_vm2, %v1623_v8, %v8703_v38 }
 0x205   : > { %1307 = vrot.lane.b32.xlu1 %v512_v28, %s5231_s7  ;;  %v8693_v28 = vld [vmem:[#allocation63_spill] sm:$0xff]  ;;  %v5207_v38 = vld [vmem:[#allocation2 + $0x108] sm:$0xff] }
 0x206   : > { %1561 = vrot.lane.b32.xlu0 %v575_v53, %s5233_s9 }
 0x207   : > { %v1280_v11 = vpop.permute.xlu1 %1279  ;;  %v1534_v30 = vpop.permute.xlu0 %1533 }
 0x208   : > { %v1848_v3 = vsel %vm1835_vm9, %v1815_v15, %v1534_v30  ;;  %v1783_v47 = vsel %vm1769_vm7, %v1750_v54, %v1280_v11  ;;  %v8695_v11 = vld [vmem:[#allocation45_spill] sm:$0xff]  ;;  %v579_v30 = vld [vmem:[#allocation2 + $0x19a] sm:$0xff] }
 0x209   : > { %1435 = vrot.lane.b32.xlu1 %v544_v10, %s5232_s8  ;;  %5042 = vmatprep.mubr.msk.f32.mxu0 %vm1873_vm10, %v1848_v3  ;;  %v8694_v10 = vld [vmem:[#allocation21_spill] sm:$0xff] }
 0x20a   : > { %1563 = vrot.lane.b32.xlu0 %v576_v42, %s5233_s9  ;;  %v1621_v25 = vsel %vm171_vm0, %v5201_v6, %v8694_v10 }
 0x20b   : > { %v1408_v57 = vpop.permute.xlu1 %1407  ;;  %v1536_v12 = vpop.permute.xlu0 %1535  ;;  %v1654_v49 = vsel %vm1637_vm2, %v1621_v25, %v8695_v11 }
 0x20c   : > { %v1816_v45 = vsel %vm1802_vm8, %v1783_v47, %v1408_v57  ;;  %v5202_v47 = vld [vmem:[#allocation2 + $0xc8] sm:$0xff]  ;;  %v8698_v57 = vld [vmem:[#allocation24_spill] sm:$0xff] }
 0x20d   : > { %1181 = vrot.lane.b32.xlu1 %v575_v53, %s5230_s23  ;;  %v1849_v4 = vsel %vm1835_vm9, %v1816_v45, %v1536_v12  ;;  %v515_v53 = vld [vmem:[#allocation2 + $0x198] sm:$0xff]  ;;  %v1622_v45 = vsel %vm171_vm0, %v5202_v47, %v8698_v57  ;;  %v8699_v12 = vld [vmem:[#allocation48_spill] sm:$0xff] }
 0x20e   : > { %1309 = vrot.lane.b32.xlu0 %v513_v48, %s5231_s7  ;;  %5043 = vmatmul.mubr.msk.f32.gmra.mrb[12].mxu0 %vm1873_vm10, %v1849_v4  ;;  %v548_v48 = vld [vmem:[#allocation2 + $0x1a1] sm:$0xff]  ;;  %v1655_v4 = vsel %vm1637_vm2, %v1622_v45, %v8699_v12 }
 0x20f   : > { %v1154_v60 = vpop.permute.xlu1 %1153  ;;  %v1282_v20 = vpop.permute.xlu0 %1281  ;;  %v1688_v9 = vsel %vm1670_vm4, %v1655_v4, %v8700_v62  ;;  %v8713_v45 = vld [vmem:[#allocation93_spill] sm:$0xff]  ;;  %v8714_v62 = vld [vmem:[#allocation28_spill] sm:$0xff] }
 0x210   : > { %v1751_v63 = vsel %vm1736_vm6, %v1718_v59, %v1154_v60 }
 0x211   : > { %1183 = vrot.lane.b32.xlu1 %v576_v42, %s5230_s23  ;;  %v1784_v29 = vsel %vm1769_vm7, %v1751_v63, %v1282_v20  ;;  %v1687_v42 = vsel %vm1670_vm4, %v1654_v49, %v8696_v39  ;;  %v8701_v20 = vld [vmem:[#allocation92_spill] sm:$0xff] }
 0x212   : > { %1437 = vrot.lane.b32.xlu0 %v8686_v36, %s5232_s8  ;;  %v1720_v15 = vsel %vm1703_vm5, %v1687_v42, %v8697_v7  ;;  %v1721_v23 = vsel %vm1703_vm5, %v1688_v9, %v8701_v20  ;;  %v580_v36 = vld [vmem:[#allocation2 + $0x1a2] sm:$0xff]  ;;  %v5205_v42 = vld [vmem:[#allocation2 + $0xf0] sm:$0xff] }
 0x213   : > { %v1156_v22 = vpop.permute.xlu1 %1155  ;;  %v1410_v35 = vpop.permute.xlu0 %1409 }
 0x214   : > { %v1817_v52 = vsel %vm1802_vm8, %v1784_v29, %v1410_v35  ;;  %v1752_v21 = vsel %vm1736_vm6, %v1719_v19, %v1156_v22  ;;  %v8705_v29 = vld [vmem:[#allocation91_spill] sm:$0xff] }
 0x215   : > { %1311 = vrot.lane.b32.xlu1 %v514_v0, %s5231_s7 }
 0x216   : > { %1565 = vrot.lane.b32.xlu0 %v577_v44, %s5233_s9 }
 0x217   : > { %v1284_v46 = vpop.permute.xlu1 %1283  ;;  %v1538_v55 = vpop.permute.xlu0 %1537 }
 0x218   : > { %v1850_v33 = vsel %vm1835_vm9, %v1817_v52, %v1538_v55  ;;  %v1785_v37 = vsel %vm1769_vm7, %v1752_v21, %v1284_v46  ;;  %v8704_v46 = vld [vmem:[#allocation70_spill] sm:$0xff]  ;;  %v5204_v52 = vld [vmem:[#allocation2 + $0xe0] sm:$0xff] }
 0x219   : > { %1439 = vrot.lane.b32.xlu1 %v8693_v28, %s5232_s8  ;;  %5045 = vmatprep.mubr.msk.f32.mxu0 %vm1873_vm10, %v1850_v33  ;;  %v1689_v56 = vsel %vm1670_vm4, %v1656_v32, %v8704_v46  ;;  %v8706_v55 = vld [vmem:[#allocation26_spill] sm:$0xff]  ;;  %v8718_v32 = vld [vmem:[#allocation27_spill] sm:$0xff] }
 0x21a   : > { %1567 = vrot.lane.b32.xlu0 %v578_v34, %s5233_s9  ;;  %v1624_v28 = vsel %vm171_vm0, %v5204_v52, %v8706_v55  ;;  %v8707_v21 = vld [vmem:[#allocation50_spill] sm:$0xff]  ;;  %v1627_v46 = vsel %vm171_vm0, %v5207_v38, %v8718_v32  ;;  %v8721_v52 = vld [vmem:[#allocation95_spill] sm:$0xff] }
 0x21b   : > { %v1412_v50 = vpop.permute.xlu1 %1411  ;;  %v1540_v24 = vpop.permute.xlu0 %1539  ;;  %v1657_v33 = vsel %vm1637_vm2, %v1624_v28, %v8707_v21 }
 0x21c   : > { %v1818_v14 = vsel %vm1802_vm8, %v1785_v37, %v1412_v50  ;;  %v8708_v50 = vld [vmem:[#allocation73_spill] sm:$0xff] }
 0x21d   : > { %1185 = vrot.lane.b32.xlu1 %v577_v44, %s5230_s23  ;;  %v1851_v26 = vsel %vm1835_vm9, %v1818_v14, %v1540_v24  ;;  %v1690_v14 = vsel %vm1670_vm4, %v1657_v33, %v8708_v50  ;;  %v8709_v24 = vld [vmem:[#allocation94_spill] sm:$0xff] }
 0x21e   : > { %1313 = vrot.lane.b32.xlu0 %v515_v53, %s5231_s7  ;;  %5046 = vmatmul.mubr.msk.f32.gmra.mrb[14].mxu0 %vm1873_vm10, %v1851_v26  ;;  %v1723_v26 = vsel %vm1703_vm5, %v1690_v14, %v8709_v24  ;;  %v5208_v33 = vld [vmem:[#allocation2 + $0x110] sm:$0xff] }
 0x21f   : > { %v1158_v61 = vpop.permute.xlu1 %1157  ;;  %v1286_v31 = vpop.permute.xlu0 %1285  ;;  %v8723_v14 = vld [vmem:[#allocation54_spill] sm:$0xff] }
 0x220   : > { %v1753_v54 = vsel %vm1736_vm6, %v1720_v15, %v1158_v61 }
 0x221   : > { %1187 = vrot.lane.b32.xlu1 %v578_v34, %s5230_s23  ;;  %v1786_v18 = vsel %vm1769_vm7, %v1753_v54, %v1286_v31  ;;  %v1722_v34 = vsel %vm1703_vm5, %v1689_v56, %v8705_v29 }
 0x222   : > { %1441 = vrot.lane.b32.xlu0 %v547_v16, %s5232_s8 }
 0x223   : > { %v1160_v40 = vpop.permute.xlu1 %1159  ;;  %v1414_v3 = vpop.permute.xlu0 %1413 }
 0x224   : > { %v1819_v51 = vsel %vm1802_vm8, %v1786_v18, %v1414_v3  ;;  %v1754_v17 = vsel %vm1736_vm6, %v1721_v23, %v1160_v40  ;;  %v8710_v40 = vld [vmem:[#allocation25_spill] sm:$0xff]  ;;  %v8712_v3 = vld [vmem:[#allocation72_spill] sm:$0xff] }
 0x225   : > { %1315 = vrot.lane.b32.xlu1 %v516_v5, %s5231_s7  ;;  %v1625_v7 = vsel %vm171_vm0, %v5205_v42, %v8710_v40  ;;  %v8715_v18 = vld [vmem:[#allocation52_spill] sm:$0xff] }
 0x226   : > { %1569 = vrot.lane.b32.xlu0 %v579_v30, %s5233_s9  ;;  %v8711_v30 = vld [vmem:[#allocation49_spill] sm:$0xff] }
 0x227   : > { %v1288_v60 = vpop.permute.xlu1 %1287  ;;  %v1542_v0 = vpop.permute.xlu0 %1541  ;;  %v1658_v54 = vsel %vm1637_vm2, %v1625_v7, %v8711_v30  ;;  %v5209_v30 = vld [vmem:[#allocation2 + $0x120] sm:$0xff] }
 0x228   : > { %v1852_v43 = vsel %vm1835_vm9, %v1819_v51, %v1542_v0  ;;  %v1787_v22 = vsel %vm1769_vm7, %v1754_v17, %v1288_v60  ;;  %v1691_v47 = vsel %vm1670_vm4, %v1658_v54, %v8712_v3  ;;  %v5206_v60 = vld [vmem:[#allocation2 + $0xf8] sm:$0xff]  ;;  %v8726_v54 = vld [vmem:[#allocation29_spill] sm:$0xff] }
 0x229   : > { %1443 = vrot.lane.b32.xlu1 %v548_v48, %s5232_s8  ;;  %5048 = vmatprep.mubr.msk.f32.mxu0 %vm1873_vm10, %v1852_v43  ;;  %v1724_v48 = vsel %vm1703_vm5, %v1691_v47, %v8713_v45  ;;  %v1626_v9 = vsel %vm171_vm0, %v5206_v60, %v8714_v62  ;;  %v8716_v51 = vld [vmem:[#allocation75_spill] sm:$0xff]  ;;  %v8717_v43 = vld [vmem:[#allocation96_spill] sm:$0xff]  ;;  %v1629_v3 = vsel %vm171_vm0, %v5209_v30, %v8726_v54  ;;  %v8729_v60 = vld [vmem:[#allocation97_spill] sm:$0xff] }
 0x22a   : > { %v1659_v20 = vsel %vm1637_vm2, %v1626_v9, %v8715_v18 }
 0x22b   : > { %v1416_v13 = vpop.permute.xlu1 %1415  ;;  %v1544_v44 = vpop.permute.xlu0 %1543  ;;  %v1692_v0 = vsel %vm1670_vm4, %v1659_v20, %v8716_v51  ;;  %v5210_v20 = vld [vmem:[#allocation2 + $0x128] sm:$0xff] }
 0x22c   : > { %v1820_v59 = vsel %vm1802_vm8, %v1787_v22, %v1416_v13 }
 0x22d   : > { %1571 = vrot.lane.b32.xlu1 %v580_v36, %s5233_s9  ;;  %v1853_v63 = vsel %vm1835_vm9, %v1820_v59, %v1544_v44  ;;  %v1725_v36 = vsel %vm1703_vm5, %v1692_v0, %v8717_v43  ;;  %v8731_v0 = vld [vmem:[#allocation56_spill] sm:$0xff] }
 0x22e   : > { %5049 = vmatmul.mubr.msk.f32.gmra.mrb[16].mxu0 %vm1873_vm10, %v1853_v63 }
 0x22f   : > { %v1162_v35 = vpop.permute.xlu1 %1161 }
 0x230   : > { %v1290_v2 = vpop.permute.xlu0 %1289  ;;  %v1755_v1 = vsel %vm1736_vm6, %v1722_v34, %v1162_v35  ;;  %v8720_v34 = vld [vmem:[#allocation74_spill] sm:$0xff] }
 0x231   : > { %v1788_v53 = vsel %vm1769_vm7, %v1755_v1, %v1290_v2 }
 0x233   : > { %v1164_v27 = vpop.permute.xlu1 %1163 }
 0x234   : > { %v1418_v19 = vpop.permute.xlu0 %1417  ;;  %v1756_v6 = vsel %vm1736_vm6, %v1723_v26, %v1164_v27  ;;  %v8719_v27 = vld [vmem:[#allocation51_spill] sm:$0xff]  ;;  %v8724_v26 = vld [vmem:[#allocation77_spill] sm:$0xff] }
 0x235   : > { %v1821_v61 = vsel %vm1802_vm8, %v1788_v53, %v1418_v19  ;;  %v1660_v29 = vsel %vm1637_vm2, %v1627_v46, %v8719_v27  ;;  %v5211_v27 = vld [vmem:[#allocation2 + $0x138] sm:$0xff] }
 0x236   : > { %v1693_v1 = vsel %vm1670_vm4, %v1660_v29, %v8720_v34  ;;  %v8734_v29 = vld [vmem:[#allocation32_spill] sm:$0xff] }
 0x237   : > { %v1292_v37 = vpop.permute.xlu1 %1291  ;;  %v1726_v55 = vsel %vm1703_vm5, %v1693_v1, %v8721_v52  ;;  %v1631_v34 = vsel %vm171_vm0, %v5211_v27, %v8734_v29 }
 0x238   : > { %v1546_v16 = vpop.permute.xlu0 %1545  ;;  %v1789_v25 = vsel %vm1769_vm7, %v1756_v6, %v1292_v37  ;;  %v8722_v37 = vld [vmem:[#allocation30_spill] sm:$0xff] }
 0x239   : > { %v1854_v10 = vsel %vm1835_vm9, %v1821_v61, %v1546_v16  ;;  %v1628_v50 = vsel %vm171_vm0, %v5208_v33, %v8722_v37  ;;  %v8725_v6 = vld [vmem:[#allocation98_spill] sm:$0xff]  ;;  %v8737_v33 = vld [vmem:[#allocation99_spill] sm:$0xff] }
 0x23a   : > { %5051 = vmatprep.mubr.msk.f32.mxu0 %vm1873_vm10, %v1854_v10  ;;  %v1661_v53 = vsel %vm1637_vm2, %v1628_v50, %v8723_v14 }
 0x23b   : > { %v1420_v31 = vpop.permute.xlu1 %1419  ;;  %v1694_v61 = vsel %vm1670_vm4, %v1661_v53, %v8724_v26  ;;  %v5212_v53 = vld [vmem:[#allocation2 + $0x140] sm:$0xff] }
 0x23c   : > { %v1822_v11 = vsel %vm1802_vm8, %v1789_v25, %v1420_v31  ;;  %v1548_v49 = vpop.permute.xlu0 %1547  ;;  %v1727_v10 = vsel %vm1703_vm5, %v1694_v61, %v8725_v6  ;;  %v8739_v61 = vld [vmem:[#allocation58_spill] sm:$0xff] }
 0x23d   : > { %v1855_v5 = vsel %vm1835_vm9, %v1822_v11, %v1548_v49 }
 0x23e   : > { %5052 = vmatmul.mubr.msk.f32.gmra.mrb[18].mxu0 %vm1873_vm10, %v1855_v5 }
 0x23f   : > { %v1166_v39 = vpop.permute.xlu1 %1165 }
 0x240   : > { %v1294_v15 = vpop.permute.xlu0 %1293  ;;  %v1757_v12 = vsel %vm1736_vm6, %v1724_v48, %v1166_v39  ;;  %v8728_v48 = vld [vmem:[#allocation76_spill] sm:$0xff] }
 0x241   : > { %v1790_v17 = vsel %vm1769_vm7, %v1757_v12, %v1294_v15 }
 0x243   : > { %v1168_v57 = vpop.permute.xlu1 %1167 }
 0x244   : > { %v1422_v4 = vpop.permute.xlu0 %1421  ;;  %v1758_v59 = vsel %vm1736_vm6, %v1725_v36, %v1168_v57  ;;  %v8727_v57 = vld [vmem:[#allocation53_spill] sm:$0xff]  ;;  %v8732_v36 = vld [vmem:[#allocation79_spill] sm:$0xff] }
 0x245   : > { %v1823_v22 = vsel %vm1802_vm8, %v1790_v17, %v1422_v4  ;;  %v1662_v45 = vsel %vm1637_vm2, %v1629_v3, %v8727_v57  ;;  %v5213_v57 = vld [vmem:[#allocation2 + $0x150] sm:$0xff] }
 0x246   : > { %v1695_v12 = vsel %vm1670_vm4, %v1662_v45, %v8728_v48  ;;  %v8742_v45 = vld [vmem:[#allocation34_spill] sm:$0xff] }
 0x247   : > { %v1296_v23 = vpop.permute.xlu1 %1295  ;;  %v1728_v62 = vsel %vm1703_vm5, %v1695_v12, %v8729_v60  ;;  %v1633_v48 = vsel %vm171_vm0, %v5213_v57, %v8742_v45  ;;  %v8755_v57 = vld [vmem:[#allocation61_spill] sm:$0xff] }
 0x248   : > { %v1550_v13 = vpop.permute.xlu0 %1549  ;;  %v1791_v63 = vsel %vm1769_vm7, %v1758_v59, %v1296_v23  ;;  %v8730_v23 = vld [vmem:[#allocation33_spill] sm:$0xff]  ;;  %v8733_v59 = vld [vmem:[#allocation100_spill] sm:$0xff] }
 0x249   : > { %v1856_v44 = vsel %vm1835_vm9, %v1823_v22, %v1550_v13  ;;  %v1630_v51 = vsel %vm171_vm0, %v5210_v20, %v8730_v23  ;;  %v8745_v20 = vld [vmem:[#allocation101_spill] sm:$0xff] }
 0x24a   : > { %5054 = vmatprep.mubr.msk.f32.mxu0 %vm1873_vm10, %v1856_v44  ;;  %v1663_v17 = vsel %vm1637_vm2, %v1630_v51, %v8731_v0 }
 0x24b   : > { %v1424_v35 = vpop.permute.xlu1 %1423  ;;  %v1696_v22 = vsel %vm1670_vm4, %v1663_v17, %v8732_v36  ;;  %v5214_v17 = vld [vmem:[#allocation2 + $0x158] sm:$0xff] }
 0x24c   : > { %v1824_v58 = vsel %vm1802_vm8, %v1791_v63, %v1424_v35  ;;  %v1552_v41 = vpop.permute.xlu0 %1551  ;;  %v1729_v44 = vsel %vm1703_vm5, %v1696_v22, %v8733_v59  ;;  %v8747_v22 = vld [vmem:[#allocation60_spill] sm:$0xff] }
 0x24d   : > { %v1857_v8 = vsel %vm1835_vm9, %v1824_v58, %v1552_v41 }
 0x24e   : > { %5055 = vmatmul.mubr.msk.f32.gmra.mrb[20].mxu0 %vm1873_vm10, %v1857_v8 }
 0x24f   : > { %v1170_v2 = vpop.permute.xlu1 %1169 }
 0x250   : > { %v1298_v56 = vpop.permute.xlu0 %1297  ;;  %v1759_v28 = vsel %vm1736_vm6, %v1726_v55, %v1170_v2  ;;  %v8736_v55 = vld [vmem:[#allocation78_spill] sm:$0xff] }
 0x251   : > { %v1792_v16 = vsel %vm1769_vm7, %v1759_v28, %v1298_v56 }
 0x253   : > { %v1172_v19 = vpop.permute.xlu1 %1171 }
 0x254   : > { %v1426_v21 = vpop.permute.xlu0 %1425  ;;  %v1760_v11 = vsel %vm1736_vm6, %v1727_v10, %v1172_v19  ;;  %v8735_v19 = vld [vmem:[#allocation55_spill] sm:$0xff]  ;;  %v8740_v10 = vld [vmem:[#allocation81_spill] sm:$0xff] }
 0x255   : > { %v1825_v25 = vsel %vm1802_vm8, %v1792_v16, %v1426_v21  ;;  %v1664_v52 = vsel %vm1637_vm2, %v1631_v34, %v8735_v19  ;;  %v5215_v19 = vld [vmem:[#allocation2 + $0x168] sm:$0xff] }
 0x256   : > { %v1697_v28 = vsel %vm1670_vm4, %v1664_v52, %v8736_v55  ;;  %v8750_v52 = vld [vmem:[#allocation36_spill] sm:$0xff] }
 0x257   : > { %v1300_v24 = vpop.permute.xlu1 %1299  ;;  %v1730_v37 = vsel %vm1703_vm5, %v1697_v28, %v8737_v33  ;;  %v1635_v55 = vsel %vm171_vm0, %v5215_v19, %v8750_v52  ;;  %v8751_v33 = vld [vmem:[#allocation59_spill] sm:$0xff] }
 0x258   : > { %v1554_v31 = vpop.permute.xlu0 %1553  ;;  %v1793_v5 = vsel %vm1769_vm7, %v1760_v11, %v1300_v24  ;;  %v8738_v24 = vld [vmem:[#allocation35_spill] sm:$0xff]  ;;  %v8741_v11 = vld [vmem:[#allocation102_spill] sm:$0xff] }
 0x259   : > { %v1858_v49 = vsel %vm1835_vm9, %v1825_v25, %v1554_v31  ;;  %v1632_v26 = vsel %vm171_vm0, %v5212_v53, %v8738_v24  ;;  %v8752_v24 = vld [vmem:[#allocation82_spill] sm:$0xff] }
 0x25a   : > { %5057 = vmatprep.mubr.msk.f32.mxu0 %vm1873_vm10, %v1858_v49  ;;  %v1665_v16 = vsel %vm1637_vm2, %v1632_v26, %v8739_v61 }
 0x25b   : > { %v1428_v39 = vpop.permute.xlu1 %1427  ;;  %v1698_v25 = vsel %vm1670_vm4, %v1665_v16, %v8740_v10  ;;  %v8753_v10 = vld [vmem:[#allocation103_spill] sm:$0xff] }
 0x25c   : > { %v1826_v42 = vsel %vm1802_vm8, %v1793_v5, %v1428_v39  ;;  %v1556_v40 = vpop.permute.xlu0 %1555  ;;  %v1731_v49 = vsel %vm1703_vm5, %v1698_v25, %v8741_v11 }
 0x25d   : > { %v1859_v7 = vsel %vm1835_vm9, %v1826_v42, %v1556_v40 }
 0x25e   : > { %5058 = vmatmul.mubr.msk.f32.gmra.mrb[22].mxu0 %vm1873_vm10, %v1859_v7 }
 0x25f   : > { %v1174_v15 = vpop.permute.xlu1 %1173 }
 0x260   : > { %v1302_v47 = vpop.permute.xlu0 %1301  ;;  %v1761_v9 = vsel %vm1736_vm6, %v1728_v62, %v1174_v15  ;;  %v8744_v62 = vld [vmem:[#allocation80_spill] sm:$0xff] }
 0x261   : > { %v1794_v13 = vsel %vm1769_vm7, %v1761_v9, %v1302_v47 }
 0x263   : > { %v1176_v4 = vpop.permute.xlu1 %1175 }
 0x264   : > { %v1430_v18 = vpop.permute.xlu0 %1429  ;;  %v1762_v58 = vsel %vm1736_vm6, %v1729_v44, %v1176_v4  ;;  %v8743_v4 = vld [vmem:[#allocation57_spill] sm:$0xff]  ;;  %v8748_v44 = vld [vmem:[#allocation83_spill] sm:$0xff] }
 0x265   : > { %v1827_v63 = vsel %vm1802_vm8, %v1794_v13, %v1430_v18  ;;  %v1666_v60 = vsel %vm1637_vm2, %v1633_v48, %v8743_v4 }
 0x266   : > { %v1699_v9 = vsel %vm1670_vm4, %v1666_v60, %v8744_v62  ;;  %v8757_v62 = vld [vmem:[#allocation105_spill] sm:$0xff] }
 0x267   : > { %v1304_v43 = vpop.permute.xlu1 %1303  ;;  %v1732_v23 = vsel %vm1703_vm5, %v1699_v9, %v8745_v20 }
 0x268   : > { %v1558_v35 = vpop.permute.xlu0 %1557  ;;  %v1795_v8 = vsel %vm1769_vm7, %v1762_v58, %v1304_v43  ;;  %v8746_v43 = vld [vmem:[#allocation37_spill] sm:$0xff]  ;;  %v8749_v58 = vld [vmem:[#allocation104_spill] sm:$0xff] }
 0x269   : > { %v1860_v41 = vsel %vm1835_vm9, %v1827_v63, %v1558_v35  ;;  %v1634_v36 = vsel %vm171_vm0, %v5214_v17, %v8746_v43 }
 0x26a   : > { %5060 = vmatprep.mubr.msk.f32.mxu0 %vm1873_vm10, %v1860_v41  ;;  %v1667_v13 = vsel %vm1637_vm2, %v1634_v36, %v8747_v22 }
 0x26b   : > { %v1432_v2 = vpop.permute.xlu1 %1431  ;;  %v1700_v63 = vsel %vm1670_vm4, %v1667_v13, %v8748_v44 }
 0x26c   : > { %v1828_v38 = vsel %vm1802_vm8, %v1795_v8, %v1432_v2  ;;  %v1560_v32 = vpop.permute.xlu0 %1559  ;;  %v1733_v41 = vsel %vm1703_vm5, %v1700_v63, %v8749_v58 }
 0x26d   : > { %v1861_v46 = vsel %vm1835_vm9, %v1828_v38, %v1560_v32 }
 0x26e   : > { %5061 = vmatmul.mubr.msk.f32.gmra.mrb[24].mxu0 %vm1873_vm10, %v1861_v46 }
 0x26f   : > { %v1178_v56 = vpop.permute.xlu1 %1177 }
 0x270   : > { %v1306_v1 = vpop.permute.xlu0 %1305  ;;  %v1763_v50 = vsel %vm1736_vm6, %v1730_v37, %v1178_v56  ;;  %v1668_v37 = vsel %vm1637_vm2, %v1635_v55, %v8751_v33 }
 0x271   : > { %v1796_v31 = vsel %vm1769_vm7, %v1763_v50, %v1306_v1  ;;  %v1701_v26 = vsel %vm1670_vm4, %v1668_v37, %v8752_v24 }
 0x272   : > { %v1734_v25 = vsel %vm1703_vm5, %v1701_v26, %v8753_v10 }
 0x273   : > { %v1180_v21 = vpop.permute.xlu1 %1179 }
 0x274   : > { %v1434_v14 = vpop.permute.xlu0 %1433  ;;  %v1764_v42 = vsel %vm1736_vm6, %v1731_v49, %v1180_v21 }
 0x275   : > { %v1829_v5 = vsel %vm1802_vm8, %v1796_v31, %v1434_v14 }
 0x277   : > { %v1308_v6 = vpop.permute.xlu1 %1307 }
 0x278   : > { %v1562_v39 = vpop.permute.xlu0 %1561  ;;  %v1797_v7 = vsel %vm1769_vm7, %v1764_v42, %v1308_v6 }
 0x279   : > { %v1862_v40 = vsel %vm1835_vm9, %v1829_v5, %v1562_v39 }
 0x27a   : > { %5063 = vmatprep.mubr.msk.f32.mxu0 %vm1873_vm10, %v1862_v40 }
 0x27b   : > { %v1436_v15 = vpop.permute.xlu1 %1435 }
 0x27c   : > { %v1830_v30 = vsel %vm1802_vm8, %v1797_v7, %v1436_v15  ;;  %v1564_v54 = vpop.permute.xlu0 %1563  ;;  %v5216_v15 = vld [vmem:[#allocation2 + $0x170] sm:$0xff] }
 0x27d   : > { %v1863_v3 = vsel %vm1835_vm9, %v1830_v30, %v1564_v54  ;;  %v8754_v30 = vld [vmem:[#allocation39_spill] sm:$0xff] }
 0x27e   : > { %5064 = vmatmul.mubr.msk.f32.gmra.mrb[26].mxu0 %vm1873_vm10, %v1863_v3  ;;  %v1636_v54 = vsel %vm171_vm0, %v5216_v15, %v8754_v30  ;;  %vm4142_vm0 = vcmask 588800  }
 0x27f   : > { %v1182_v47 = vpop.permute.xlu1 %1181  ;;  %v1669_v45 = vsel %vm1637_vm2, %v1636_v54, %v8755_v57 }
 0x280   : > { %v1310_v12 = vpop.permute.xlu0 %1309  ;;  %v1765_v51 = vsel %vm1736_vm6, %v1732_v23, %v1182_v47 }
 0x281   : > { %v1798_v35 = vsel %vm1769_vm7, %v1765_v51, %v1310_v12  ;;  %v8756_v12 = vld [vmem:[#allocation84_spill] sm:$0xff] }
 0x282   : > { %v1702_v4 = vsel %vm1670_vm4, %v1669_v45, %v8756_v12 }
 0x283   : > { %v1184_v18 = vpop.permute.xlu1 %1183  ;;  %v1735_v9 = vsel %vm1703_vm5, %v1702_v4, %v8757_v62 }
 0x284   : > { %v1438_v0 = vpop.permute.xlu0 %1437  ;;  %v1766_v38 = vsel %vm1736_vm6, %v1733_v41, %v1184_v18 }
 0x285   : > { %v1831_v8 = vsel %vm1802_vm8, %v1798_v35, %v1438_v0 }
 0x287   : > { %v1312_v59 = vpop.permute.xlu1 %1311 }
 0x288   : > { %v1566_v2 = vpop.permute.xlu0 %1565  ;;  %v1799_v46 = vsel %vm1769_vm7, %v1766_v38, %v1312_v59 }
 0x289   : > { %v1864_v32 = vsel %vm1835_vm9, %v1831_v8, %v1566_v2 }
 0x28a   : > { %5066 = vmatprep.mubr.msk.f32.mxu0 %vm1873_vm10, %v1864_v32 }
 0x28b   : > { %v1440_v56 = vpop.permute.xlu1 %1439 }
 0x28c   : > { %v1832_v27 = vsel %vm1802_vm8, %v1799_v46, %v1440_v56  ;;  %v1568_v29 = vpop.permute.xlu0 %1567 }
 0x28d   : > { %v1865_v34 = vsel %vm1835_vm9, %v1832_v27, %v1568_v29 }
 0x28e   : > { %5067 = vmatmul.mubr.msk.f32.gmra.mrb[28].mxu0 %vm1873_vm10, %v1865_v34 }
 0x28f   : > { %v1186_v1 = vpop.permute.xlu1 %1185 }
 0x290   : > { %v1314_v28 = vpop.permute.xlu0 %1313  ;;  %v1767_v49 = vsel %vm1736_vm6, %v1734_v25, %v1186_v1 }
 0x291   : > { %v6754_v21 = vpop.f32.mrb[0].mxu0  ;;  %v1800_v7 = vsel %vm1769_vm7, %v1767_v49, %v1314_v28 }
 0x292   : > { %v2200_v50 = vsel %vm1637_vm2, %v6754_v21, 0.0  ;;  %v2270_v14 = vmul.f32 %v6754_v21, %v6754_v21  ;;  %v6762_v53 = vpop.f32.mrb[1].mxu0 }
 0x293   : > { %v2199_v61 = vsel %vm1637_vm2, %v6762_v53, 0.0  ;;  %v2269_v16 = vmul.f32 %v6762_v53, %v6762_v53  ;;  %v1188_v6 = vpop.permute.xlu1 %1187 }
 0x294   : > { %v2302_v31 = vsel %vm1637_vm2, %v2270_v14, 0.0  ;;  %v2201_v11 = vadd.f32 %v2200_v50, %v2199_v61  ;;  %v1442_v39 = vpop.permute.xlu0 %1441  ;;  %v1768_v18 = vsel %vm1736_vm6, %v1735_v9, %v1188_v6 }
 0x295   : > { %v2301_v5 = vsel %vm1637_vm2, %v2269_v16, 0.0  ;;  %v1833_v3 = vsel %vm1802_vm8, %v1800_v7, %v1442_v39 }
 0x296   : > { %v2303_v42 = vadd.f32 %v2302_v31, %v2301_v5 }
 0x297   : > { %v1316_v40 = vpop.permute.xlu1 %1315 }
 0x298   : > { %v1570_v47 = vpop.permute.xlu0 %1569  ;;  %v1801_v23 = vsel %vm1769_vm7, %v1768_v18, %v1316_v40 }
 0x299   : > { %v1866_v48 = vsel %vm1835_vm9, %v1833_v3, %v1570_v47 }
 0x29a   : > { %5069 = vmatprep.mubr.msk.f32.mxu0 %vm1873_vm10, %v1866_v48 }
 0x29b   : > { %v1444_v60 = vpop.permute.xlu1 %1443 }
 0x29c   : > { %v1834_v0 = vsel %vm1802_vm8, %v1801_v23, %v1444_v60 }
 0x29d   : > { %v6788_v20 = vpop.f32.mrb[2].mxu0 }
 0x29e   : > { %v6791_v51 = vpop.f32.mrb[3].mxu0  ;;  %v2272_v17 = vmul.f32 %v6788_v20, %v6788_v20  ;;  %v2204_v44 = vsel %vm1637_vm2, %v6788_v20, 0.0 }
 0x29f   : > { %v2202_v43 = vsel %vm1637_vm2, %v6791_v51, 0.0  ;;  %v2271_v36 = vmul.f32 %v6791_v51, %v6791_v51  ;;  %v1572_v22 = vpop.permute.xlu1 %1571 }
 0x2a0   : > { %v2203_v13 = vadd.f32 %v2202_v43, %v2201_v11  ;;  %v1867_v59 = vsel %vm1835_vm9, %v1834_v0, %v1572_v22  ;;  %v2306_v41 = vsel %vm1637_vm2, %v2272_v17, 0.0 }
 0x2a1   : > { %v2304_v63 = vsel %vm1637_vm2, %v2271_v36, 0.0  ;;  %5070 = vmatmul.mubr.msk.f32.gmra.mrb[30].mxu0 %vm1873_vm10, %v1867_v59 }
 0x2a2   : > { %v2305_v35 = vadd.f32 %v2304_v63, %v2303_v42  ;;  %v2205_v58 = vadd.f32 %v2204_v44, %v2203_v13 }
 0x2a4   : > { %v2307_v8 = vadd.f32 %v2306_v41, %v2305_v35 }
 0x2a9   : > { %v6806_v2 = vpop.f32.mrb[4].mxu0 }
 0x2aa   : > { %v6808_v38 = vpop.f32.mrb[5].mxu0  ;;  %v2274_v32 = vmul.f32 %v6806_v2, %v6806_v2  ;;  %v2208_v29 = vsel %vm1637_vm2, %v6806_v2, 0.0 }
 0x2ab   : > { %v2206_v46 = vsel %vm1637_vm2, %v6808_v38, 0.0  ;;  %v2273_v56 = vmul.f32 %v6808_v38, %v6808_v38 }
 0x2ac   : > { %v2207_v27 = vadd.f32 %v2206_v46, %v2205_v58  ;;  %v2310_v52 = vsel %vm1637_vm2, %v2274_v32, 0.0 }
 0x2ad   : > { %v2308_v34 = vsel %vm1637_vm2, %v2273_v56, 0.0 }
 0x2ae   : > { %v2309_v1 = vadd.f32 %v2308_v34, %v2307_v8  ;;  %v2209_v19 = vadd.f32 %v2208_v29, %v2207_v27 }
 0x2b0   : > { %v2311_v55 = vadd.f32 %v2310_v52, %v2309_v1 }
 0x2b5   : > { %v6820_v28 = vpop.f32.mrb[6].mxu0 }
 0x2b6   : > { %v6822_v33 = vpop.f32.mrb[7].mxu0  ;;  %v2276_v37 = vmul.f32 %v6820_v28, %v6820_v28  ;;  %v2212_v26 = vsel %vm1637_vm2, %v6820_v28, 0.0 }
 0x2b7   : > { %v2210_v50 = vsel %vm1637_vm2, %v6822_v33, 0.0  ;;  %v2275_v14 = vmul.f32 %v6822_v33, %v6822_v33 }
 0x2b8   : > { %v2211_v24 = vadd.f32 %v2210_v50, %v2209_v19  ;;  %v2314_v10 = vsel %vm1637_vm2, %v2276_v37, 0.0 }
 0x2b9   : > { %v2312_v61 = vsel %vm1637_vm2, %v2275_v14, 0.0 }
 0x2ba   : > { %v2313_v16 = vadd.f32 %v2312_v61, %v2311_v55  ;;  %v2213_v6 = vadd.f32 %v2212_v26, %v2211_v24 }
 0x2bc   : > { %v2315_v25 = vadd.f32 %v2314_v10, %v2313_v16 }
 0x2c1   : > { %v6834_v31 = vpop.f32.mrb[8].mxu0 }
 0x2c2   : > { %v6836_v11 = vpop.f32.mrb[9].mxu0  ;;  %v2278_v49 = vmul.f32 %v6834_v31, %v6834_v31  ;;  %v2216_v40 = vsel %vm1637_vm2, %v6834_v31, 0.0 }
 0x2c3   : > { %v2214_v5 = vsel %vm1637_vm2, %v6836_v11, 0.0  ;;  %v2277_v39 = vmul.f32 %v6836_v11, %v6836_v11 }
 0x2c4   : > { %v2215_v42 = vadd.f32 %v2214_v5, %v2213_v6  ;;  %v2318_v54 = vsel %vm1637_vm2, %v2278_v49, 0.0 }
 0x2c5   : > { %v2316_v7 = vsel %vm1637_vm2, %v2277_v39, 0.0 }
 0x2c6   : > { %v2317_v15 = vadd.f32 %v2316_v7, %v2315_v25  ;;  %v2217_v30 = vadd.f32 %v2216_v40, %v2215_v42 }
 0x2c8   : > { %v2319_v3 = vadd.f32 %v2318_v54, %v2317_v15 }
 0x2d1   : > { %v6848_v47 = vpop.f32.mrb[10].mxu0 }
 0x2d2   : > { %v6850_v57 = vpop.f32.mrb[11].mxu0  ;;  %v2280_v45 = vmul.f32 %v6848_v47, %v6848_v47  ;;  %v2220_v60 = vsel %vm1637_vm2, %v6848_v47, 0.0 }
 0x2d3   : > { %v2218_v48 = vsel %vm1637_vm2, %v6850_v57, 0.0  ;;  %v2279_v12 = vmul.f32 %v6850_v57, %v6850_v57 }
 0x2d4   : > { %v2219_v4 = vadd.f32 %v2218_v48, %v2217_v30  ;;  %v2322_v23 = vsel %vm1637_vm2, %v2280_v45, 0.0 }
 0x2d5   : > { %v2320_v62 = vsel %vm1637_vm2, %v2279_v12, 0.0 }
 0x2d6   : > { %v2321_v9 = vadd.f32 %v2320_v62, %v2319_v3  ;;  %v2221_v18 = vadd.f32 %v2220_v60, %v2219_v4 }
 0x2d8   : > { %v2323_v0 = vadd.f32 %v2322_v23, %v2321_v9  ;;  %v2592_v9 = vld [vmem:[#allocation3 + $0x1] sm:$0xff] }
 0x2d9   : > { %2881 = vrot.lane.b32.xlu0 %v2592_v9, %s5227_s20 }
 0x2e1   : > { %v6862_v17 = vpop.f32.mrb[12].mxu0 }
 0x2e2   : > { %v6864_v43 = vpop.f32.mrb[13].mxu0  ;;  %v2282_v36 = vmul.f32 %v6862_v17, %v6862_v17  ;;  %v2224_v44 = vsel %vm1637_vm2, %v6862_v17, 0.0 }
 0x2e3   : > { %v2222_v22 = vsel %vm1637_vm2, %v6864_v43, 0.0  ;;  %v2281_v13 = vmul.f32 %v6864_v43, %v6864_v43 }
 0x2e4   : > { %v2223_v59 = vadd.f32 %v2222_v22, %v2221_v18  ;;  %v2326_v41 = vsel %vm1637_vm2, %v2282_v36, 0.0 }
 0x2e5   : > { %v2324_v63 = vsel %vm1637_vm2, %v2281_v13, 0.0  ;;  %v2593_v13 = vld [vmem:[#allocation3 + $0x9] sm:$0xff] }
 0x2e6   : > { %v2325_v35 = vadd.f32 %v2324_v63, %v2323_v0  ;;  %v2225_v58 = vadd.f32 %v2224_v44, %v2223_v59  ;;  %2883 = vrot.lane.b32.xlu1 %v2593_v13, %s5227_s20 }
 0x2e8   : > { %v2327_v8 = vadd.f32 %v2326_v41, %v2325_v35 }
 0x2f1   : > { %v6876_v32 = vpop.f32.mrb[14].mxu0 }
 0x2f2   : > { %v6878_v46 = vpop.f32.mrb[15].mxu0  ;;  %v2284_v56 = vmul.f32 %v6876_v32, %v6876_v32  ;;  %v2228_v1 = vsel %vm1637_vm2, %v6876_v32, 0.0 }
 0x2f3   : > { %v2226_v27 = vsel %vm1637_vm2, %v6878_v46, 0.0  ;;  %v2283_v29 = vmul.f32 %v6878_v46, %v6878_v46 }
 0x2f4   : > { %v2227_v34 = vadd.f32 %v2226_v27, %v2225_v58  ;;  %v2330_v37 = vsel %vm1637_vm2, %v2284_v56, 0.0 }
 0x2f5   : > { %v2328_v19 = vsel %vm1637_vm2, %v2283_v29, 0.0 }
 0x2f6   : > { %v2329_v52 = vadd.f32 %v2328_v19, %v2327_v8  ;;  %v2229_v55 = vadd.f32 %v2228_v1, %v2227_v34 }
 0x2f8   : > { %v2331_v50 = vadd.f32 %v2330_v37, %v2329_v52 }
 0x301   : > { %v6890_v14 = vpop.f32.mrb[16].mxu0 }
 0x302   : > { %v6892_v24 = vpop.f32.mrb[17].mxu0  ;;  %v2286_v26 = vmul.f32 %v6890_v14, %v6890_v14  ;;  %v2232_v10 = vsel %vm1637_vm2, %v6890_v14, 0.0 }
 0x303   : > { %v2230_v61 = vsel %vm1637_vm2, %v6892_v24, 0.0  ;;  %v2285_v16 = vmul.f32 %v6892_v24, %v6892_v24 }
 0x304   : > { %v2231_v6 = vadd.f32 %v2230_v61, %v2229_v55  ;;  %v2334_v39 = vsel %vm1637_vm2, %v2286_v26, 0.0 }
 0x305   : > { %v2332_v25 = vsel %vm1637_vm2, %v2285_v16, 0.0 }
 0x306   : > { %v2333_v49 = vadd.f32 %v2332_v25, %v2331_v50  ;;  %v2233_v5 = vadd.f32 %v2232_v10, %v2231_v6 }
 0x308   : > { %v2335_v42 = vadd.f32 %v2334_v39, %v2333_v49 }
 0x311   : > { %v6904_v40 = vpop.f32.mrb[18].mxu0 }
 0x312   : > { %v6906_v7 = vpop.f32.mrb[19].mxu0  ;;  %v2288_v15 = vmul.f32 %v6904_v40, %v6904_v40  ;;  %v2236_v45 = vsel %vm1637_vm2, %v6904_v40, 0.0 }
 0x313   : > { %v2234_v30 = vsel %vm1637_vm2, %v6906_v7, 0.0  ;;  %v2287_v54 = vmul.f32 %v6906_v7, %v6906_v7 }
 0x314   : > { %v2235_v3 = vadd.f32 %v2234_v30, %v2233_v5  ;;  %v2338_v60 = vsel %vm1637_vm2, %v2288_v15, 0.0 }
 0x315   : > { %v2336_v48 = vsel %vm1637_vm2, %v2287_v54, 0.0 }
 0x316   : > { %v2337_v12 = vadd.f32 %v2336_v48, %v2335_v42  ;;  %v2237_v4 = vadd.f32 %v2236_v45, %v2235_v3 }
 0x318   : > { %v2339_v62 = vadd.f32 %v2338_v60, %v2337_v12 }
 0x321   : > { %v6919_v18 = vpop.f32.mrb[20].mxu0 }
 0x322   : > { %v6921_v23 = vpop.f32.mrb[21].mxu0  ;;  %v2290_v0 = vmul.f32 %v6919_v18, %v6919_v18  ;;  %v2240_v44 = vsel %vm1637_vm2, %v6919_v18, 0.0 }
 0x323   : > { %v2238_v36 = vsel %vm1637_vm2, %v6921_v23, 0.0  ;;  %v2289_v22 = vmul.f32 %v6921_v23, %v6921_v23 }
 0x324   : > { %v2239_v59 = vadd.f32 %v2238_v36, %v2237_v4  ;;  %v2342_v41 = vsel %vm1637_vm2, %v2290_v0, 0.0 }
 0x325   : > { %v2340_v63 = vsel %vm1637_vm2, %v2289_v22, 0.0 }
 0x326   : > { %v2341_v35 = vadd.f32 %v2340_v63, %v2339_v62  ;;  %v2241_v58 = vadd.f32 %v2240_v44, %v2239_v59 }
 0x328   : > { %v2343_v8 = vadd.f32 %v2342_v41, %v2341_v35 }
 0x331   : > { %v6934_v56 = vpop.f32.mrb[22].mxu0 }
 0x332   : > { %v6936_v27 = vpop.f32.mrb[23].mxu0  ;;  %v2292_v29 = vmul.f32 %v6934_v56, %v6934_v56  ;;  %v2244_v52 = vsel %vm1637_vm2, %v6934_v56, 0.0 }
 0x333   : > { %v2242_v34 = vsel %vm1637_vm2, %v6936_v27, 0.0  ;;  %v2291_v1 = vmul.f32 %v6936_v27, %v6936_v27 }
 0x334   : > { %v2243_v19 = vadd.f32 %v2242_v34, %v2241_v58  ;;  %v2346_v26 = vsel %vm1637_vm2, %v2292_v29, 0.0 }
 0x335   : > { %v2344_v55 = vsel %vm1637_vm2, %v2291_v1, 0.0 }
 0x336   : > { %v2345_v37 = vadd.f32 %v2344_v55, %v2343_v8  ;;  %v2245_v50 = vadd.f32 %v2244_v52, %v2243_v19 }
 0x338   : > { %v2347_v61 = vadd.f32 %v2346_v26, %v2345_v37 }
 0x341   : > { %v6948_v16 = vpop.f32.mrb[24].mxu0 }
 0x342   : > { %v6950_v6 = vpop.f32.mrb[25].mxu0  ;;  %v2294_v10 = vmul.f32 %v6948_v16, %v6948_v16  ;;  %v2248_v39 = vsel %vm1637_vm2, %v6948_v16, 0.0 }
 0x343   : > { %v2246_v25 = vsel %vm1637_vm2, %v6950_v6, 0.0  ;;  %v2293_v49 = vmul.f32 %v6950_v6, %v6950_v6 }
 0x344   : > { %v2247_v5 = vadd.f32 %v2246_v25, %v2245_v50  ;;  %v2350_v54 = vsel %vm1637_vm2, %v2294_v10, 0.0 }
 0x345   : > { %v2348_v42 = vsel %vm1637_vm2, %v2293_v49, 0.0 }
 0x346   : > { %v2349_v15 = vadd.f32 %v2348_v42, %v2347_v61  ;;  %v2249_v30 = vadd.f32 %v2248_v39, %v2247_v5 }
 0x348   : > { %v2351_v3 = vadd.f32 %v2350_v54, %v2349_v15 }
 0x351   : > { %v6962_v45 = vpop.f32.mrb[26].mxu0 }
 0x352   : > { %v6964_v48 = vpop.f32.mrb[27].mxu0  ;;  %v2296_v12 = vmul.f32 %v6962_v45, %v6962_v45  ;;  %v2252_v9 = vsel %vm1637_vm2, %v6962_v45, 0.0 }
 0x353   : > { %v2250_v4 = vsel %vm1637_vm2, %v6964_v48, 0.0  ;;  %v2295_v60 = vmul.f32 %v6964_v48, %v6964_v48 }
 0x354   : > { %v2251_v62 = vadd.f32 %v2250_v4, %v2249_v30  ;;  %v2354_v13 = vsel %vm1637_vm2, %v2296_v12, 0.0 }
 0x355   : > { %v2352_v0 = vsel %vm1637_vm2, %v2295_v60, 0.0 }
 0x356   : > { %v2353_v36 = vadd.f32 %v2352_v0, %v2351_v3  ;;  %v2253_v22 = vadd.f32 %v2252_v9, %v2251_v62 }
 0x358   : > { %v2355_v59 = vadd.f32 %v2354_v13, %v2353_v36 }
 0x361   : > { %v6976_v44 = vpop.f32.mrb[28].mxu0 }
 0x362   : > { %v6978_v63 = vpop.f32.mrb[29].mxu0  ;;  %v2298_v35 = vmul.f32 %v6976_v44, %v6976_v44  ;;  %v2256_v29 = vsel %vm1637_vm2, %v6976_v44, 0.0 }
 0x363   : > { %v2254_v58 = vsel %vm1637_vm2, %v6978_v63, 0.0  ;;  %v2297_v41 = vmul.f32 %v6978_v63, %v6978_v63 }
 0x364   : > { %v2255_v8 = vadd.f32 %v2254_v58, %v2253_v22  ;;  %v2358_v52 = vsel %vm1637_vm2, %v2298_v35, 0.0 }
 0x365   : > { %v2356_v34 = vsel %vm1637_vm2, %v2297_v41, 0.0 }
 0x366   : > { %v2357_v1 = vadd.f32 %v2356_v34, %v2355_v59  ;;  %v2257_v19 = vadd.f32 %v2256_v29, %v2255_v8 }
 0x368   : > { %v2359_v55 = vadd.f32 %v2358_v52, %v2357_v1 }
 0x374   : > { %v6990_v37 = vpop.f32.mrb[30].mxu0 }
 0x375   : > { %v6992_v50 = vpop.f32.mrb[31].mxu0  ;;  %v2300_v26 = vmul.f32 %v6990_v37, %v6990_v37  ;;  %v2260_v49 = vsel %vm1637_vm2, %v6990_v37, 0.0 }
 0x376   : > { %v2258_v61 = vsel %vm1637_vm2, %v6992_v50, 0.0  ;;  %v2299_v10 = vmul.f32 %v6992_v50, %v6992_v50 }
 0x377   : > { %v2259_v25 = vadd.f32 %v2258_v61, %v2257_v19  ;;  %v2362_v15 = vsel %vm1637_vm2, %v2300_v26, 0.0 }
 0x378   : > { %v2360_v5 = vsel %vm1637_vm2, %v2299_v10, 0.0 }
 0x379   : > { %v2261_v39 = vadd.f32 %v2260_v49, %v2259_v25  ;;  %v2361_v42 = vadd.f32 %v2360_v5, %v2359_v55 }
 0x37b   : > { %v2262_v30 = vrot.slane %v2261_v39, 4  ;;  %v2363_v54 = vadd.f32 %v2362_v15, %v2361_v42 }
 0x37d   : > { %v2263_v3 = vadd.f32 %v2262_v30, %v2261_v39  ;;  %v2364_v12 = vrot.slane %v2363_v54, 4 }
 0x37f   : > { %v2264_v4 = vrot.slane %v2263_v3, 2  ;;  %v2365_v60 = vadd.f32 %v2364_v12, %v2363_v54 }
 0x381   : > { %v2265_v62 = vadd.f32 %v2264_v4, %v2263_v3  ;;  %v2366_v9 = vrot.slane %v2365_v60, 2 }
 0x383   : > { %v2266_v0 = vrot.slane %v2265_v62, 1  ;;  %v2367_v36 = vadd.f32 %v2366_v9, %v2365_v60 }
 0x385   : > { %v2267_v22 = vadd.f32 %v2266_v0, %v2265_v62  ;;  %v2368_v13 = vrot.slane %v2367_v36, 1 }
 0x387   : > { %v7004_v59 = vmul.f32 0.00390625, %v2267_v22  ;;  %v2369_v35 = vadd.f32 %v2368_v13, %v2367_v36 }
 0x389   : > { %v2370_v58 = vmul.f32 0.00390625, %v2369_v35  ;;  %v2371_v41 = vmul.f32 %v7004_v59, %v7004_v59  ;;  %v2404_v8 = vsub.f32 %v6992_v50, %v7004_v59  ;;  %v2374_v29 = vsub.f32 %v6762_v53, %v7004_v59 }
 0x38a   : > { %v2375_v34 = vsub.f32 %v6754_v21, %v7004_v59  ;;  %v2376_v1 = vsub.f32 %v6791_v51, %v7004_v59  ;;  %v2377_v19 = vsub.f32 %v6788_v20, %v7004_v59  ;;  %v2378_v52 = vsub.f32 %v6808_v38, %v7004_v59 }
 0x38b   : > { %v2372_v55 = vsub.f32 %v2370_v58, %v2371_v41  ;;  %v2379_v26 = vsub.f32 %v6806_v2, %v7004_v59  ;;  %v2380_v50 = vsub.f32 %v6822_v33, %v7004_v59  ;;  %v2381_v53 = vsub.f32 %v6820_v28, %v7004_v59 }
 0x38c   : > { %v2382_v21 = vsub.f32 %v6836_v11, %v7004_v59  ;;  %v2383_v51 = vsub.f32 %v6834_v31, %v7004_v59  ;;  %v2384_v20 = vsub.f32 %v6850_v57, %v7004_v59  ;;  %v2385_v38 = vsub.f32 %v6848_v47, %v7004_v59 }
 0x38d   : > { %v2373_v61 = vmax.f32 %v2372_v55, 0.0  ;;  %v2386_v2 = vsub.f32 %v6864_v43, %v7004_v59  ;;  %v2387_v33 = vsub.f32 %v6862_v17, %v7004_v59  ;;  %v2388_v28 = vsub.f32 %v6878_v46, %v7004_v59 }
 0x38e   : > { %v2389_v11 = vsub.f32 %v6876_v32, %v7004_v59  ;;  %v2390_v31 = vsub.f32 %v6892_v24, %v7004_v59  ;;  %v2391_v57 = vsub.f32 %v6890_v14, %v7004_v59  ;;  %v2392_v47 = vsub.f32 %v6906_v7, %v7004_v59 }
 0x38f   : > { %v2406_v10 = vadd.f32 1e-05, %v2373_v61  ;;  %v2393_v43 = vsub.f32 %v6904_v40, %v7004_v59  ;;  %v2394_v17 = vsub.f32 %v6921_v23, %v7004_v59  ;;  %v2395_v46 = vsub.f32 %v6919_v18, %v7004_v59 }
 0x390   : > { %v2396_v32 = vsub.f32 %v6936_v27, %v7004_v59  ;;  %v2397_v24 = vsub.f32 %v6934_v56, %v7004_v59  ;;  %v2398_v14 = vsub.f32 %v6950_v6, %v7004_v59  ;;  %v2399_v7 = vsub.f32 %v6948_v16, %v7004_v59 }
 0x391   : > { %5193 = vrsqrt.f32 %v2406_v10  ;;  %v2400_v40 = vsub.f32 %v6964_v48, %v7004_v59  ;;  %v2401_v23 = vsub.f32 %v6962_v45, %v7004_v59  ;;  %v2402_v18 = vsub.f32 %v6978_v63, %v7004_v59 }
 0x392   : > { %v2403_v27 = vsub.f32 %v6976_v44, %v7004_v59  ;;  %v2405_v56 = vsub.f32 %v6990_v37, %v7004_v59 }
 0x39b   : > { %v5194_v6 = vpop.eup %5193 }
 0x39c   : > { %v2438_v25 = vmul.f32 %v5194_v6, %v2404_v8  ;;  %v2408_v49 = vmul.f32 %v5194_v6, %v2374_v29  ;;  %v2409_v16 = vmul.f32 %v5194_v6, %v2375_v34  ;;  %v2410_v5 = vmul.f32 %v5194_v6, %v2376_v1 }
 0x39d   : > { %v2411_v39 = vmul.f32 %v5194_v6, %v2377_v19  ;;  %v2412_v42 = vmul.f32 %v5194_v6, %v2378_v52  ;;  %v2413_v48 = vmul.f32 %v5194_v6, %v2379_v26  ;;  %v2414_v15 = vmul.f32 %v5194_v6, %v2380_v50 }
 0x39e   : > { %v2470_v30 = vmax.f32 %v2438_v25, 0.0  ;;  %v2415_v45 = vmul.f32 %v5194_v6, %v2381_v53  ;;  %v2416_v54 = vmul.f32 %v5194_v6, %v2382_v21  ;;  %v2417_v3 = vmul.f32 %v5194_v6, %v2383_v51 }
 0x39f   : > { %v2418_v63 = vmul.f32 %v5194_v6, %v2384_v20  ;;  %v2419_v12 = vmul.f32 %v5194_v6, %v2385_v38  ;;  %v2420_v4 = vmul.f32 %v5194_v6, %v2386_v2  ;;  %v2421_v44 = vmul.f32 %v5194_v6, %v2387_v33 }
 0x3a0   : > { %2558 = vst.msk [vmem:[#allocation3 + $0x181] sm:$0xff] %vm1637_vm2, %v2470_v30  ;;  %v2422_v37 = vmul.f32 %v5194_v6, %v2388_v28  ;;  %v2423_v60 = vmul.f32 %v5194_v6, %v2389_v11  ;;  %v2424_v62 = vmul.f32 %v5194_v6, %v2390_v31  ;;  %v2425_v9 = vmul.f32 %v5194_v6, %v2391_v57 }
 0x3a1   : > { %v2426_v0 = vmul.f32 %v5194_v6, %v2392_v47  ;;  %v7073_v36 = vmul.f32 %v5194_v6, %v2393_v43  ;;  %v7075_v22 = vmul.f32 %v5194_v6, %v2394_v17  ;;  %v7077_v13 = vmul.f32 %v5194_v6, %v2395_v46 }
 0x3a2   : > { %v7079_v59 = vmul.f32 %v5194_v6, %v2396_v32  ;;  %v7081_v35 = vmul.f32 %v5194_v6, %v2397_v24  ;;  %v7083_v58 = vmul.f32 %v5194_v6, %v2398_v14  ;;  %v7085_v41 = vmul.f32 %v5194_v6, %v2399_v7 }
 0x3a3   : > { %v7087_v8 = vmul.f32 %v5194_v6, %v2400_v40  ;;  %v7089_v29 = vmul.f32 %v5194_v6, %v2401_v23  ;;  %v7091_v34 = vmul.f32 %v5194_v6, %v2402_v18  ;;  %v7093_v1 = vmul.f32 %v5194_v6, %v2403_v27 }
 0x3a4   : > { %v7095_v19 = vmul.f32 %v5194_v6, %v2405_v56  ;;  %v2440_v52 = vmax.f32 %v2408_v49, 0.0  ;;  %v2441_v55 = vmax.f32 %v2409_v16, 0.0  ;;  %v2442_v26 = vmax.f32 %v2410_v5, 0.0 }
 0x3a5   : > { %v2443_v50 = vmax.f32 %v2411_v39, 0.0  ;;  %v2444_v53 = vmax.f32 %v2412_v42, 0.0  ;;  %v2445_v21 = vmax.f32 %v2413_v48, 0.0  ;;  %v2446_v51 = vmax.f32 %v2414_v15, 0.0 }
 0x3a6   : > { %v2447_v20 = vmax.f32 %v2415_v45, 0.0  ;;  %v2448_v38 = vmax.f32 %v2416_v54, 0.0  ;;  %v2449_v61 = vmax.f32 %v2417_v3, 0.0  ;;  %v2450_v2 = vmax.f32 %v2418_v63, 0.0  ;;  %2529 = vst.msk [vmem:[#allocation3 + $0x21] sm:$0xff] %vm1637_vm2, %v2441_v55  ;;  %2528 = vst.msk [vmem:[#allocation3 + $0x19] sm:$0xff] %vm1637_vm2, %v2440_v52 }
 0x3a7   : > { %2530 = vst.msk [vmem:[#allocation3 + $0x31] sm:$0xff] %vm1637_vm2, %v2442_v26  ;;  %v2451_v33 = vmax.f32 %v2419_v12, 0.0  ;;  %v2452_v28 = vmax.f32 %v2420_v4, 0.0  ;;  %v2453_v11 = vmax.f32 %v2421_v44, 0.0  ;;  %v2454_v31 = vmax.f32 %v2422_v37, 0.0  ;;  %2531 = vst.msk [vmem:[#allocation3 + $0x39] sm:$0xff] %vm1637_vm2, %v2443_v50 }
 0x3a8   : > { %2532 = vst.msk [vmem:[#allocation3 + $0x49] sm:$0xff] %vm1637_vm2, %v2444_v53  ;;  %2533 = vst.msk [vmem:[#allocation3 + $0x51] sm:$0xff] %vm1637_vm2, %v2445_v21  ;;  %v2455_v57 = vmax.f32 %v2423_v60, 0.0  ;;  %v2456_v47 = vmax.f32 %v2424_v62, 0.0  ;;  %v2457_v10 = vmax.f32 %v2425_v9, 0.0  ;;  %v2458_v43 = vmax.f32 %v2426_v0, 0.0 }
 0x3a9   : > { %2534 = vst.msk [vmem:[#allocation3 + $0x61] sm:$0xff] %vm1637_vm2, %v2446_v51  ;;  %2535 = vst.msk [vmem:[#allocation3 + $0x69] sm:$0xff] %vm1637_vm2, %v2447_v20  ;;  %v2459_v17 = vmax.f32 %v7073_v36, 0.0  ;;  %v2460_v46 = vmax.f32 %v7075_v22, 0.0  ;;  %v2461_v32 = vmax.f32 %v7077_v13, 0.0  ;;  %v2462_v24 = vmax.f32 %v7079_v59, 0.0 }
 0x3aa   : > { %2536 = vst.msk [vmem:[#allocation3 + $0x79] sm:$0xff] %vm1637_vm2, %v2448_v38  ;;  %2537 = vst.msk [vmem:[#allocation3 + $0x81] sm:$0xff] %vm1637_vm2, %v2449_v61  ;;  %v2463_v14 = vmax.f32 %v7081_v35, 0.0  ;;  %v2464_v7 = vmax.f32 %v7083_v58, 0.0  ;;  %v2465_v40 = vmax.f32 %v7085_v41, 0.0  ;;  %v2466_v23 = vmax.f32 %v7087_v8, 0.0 }
 0x3ab   : > { %2538 = vst.msk [vmem:[#allocation3 + $0x91] sm:$0xff] %vm1637_vm2, %v2450_v2  ;;  %2539 = vst.msk [vmem:[#allocation3 + $0x99] sm:$0xff] %vm1637_vm2, %v2451_v33  ;;  %v2467_v18 = vmax.f32 %v7089_v29, 0.0  ;;  %v2468_v27 = vmax.f32 %v7091_v34, 0.0  ;;  %v2469_v56 = vmax.f32 %v7093_v1, 0.0  ;;  %v2471_v6 = vmax.f32 %v7095_v19, 0.0 }
 0x3ac   : > { %2540 = vst.msk [vmem:[#allocation3 + $0xa9] sm:$0xff] %vm1637_vm2, %v2452_v28  ;;  %2541 = vst.msk [vmem:[#allocation3 + $0xb1] sm:$0xff] %vm1637_vm2, %v2453_v11  ;;  %v2625_v34 = vld [vmem:[#allocation3 + $0xa] sm:$0xff]  ;;  %v2624_v1 = vld [vmem:[#allocation3 + $0x2] sm:$0xff] }
 0x3ad   : > { %2542 = vst.msk [vmem:[#allocation3 + $0xc1] sm:$0xff] %vm1637_vm2, %v2454_v31  ;;  %2543 = vst.msk [vmem:[#allocation3 + $0xc9] sm:$0xff] %vm1637_vm2, %v2455_v57  ;;  %v7136_v25 = vld [vmem:[#allocation3 + $0x21] sm:$0xff]  ;;  %v7142_v49 = vld [vmem:[#allocation3 + $0x19] sm:$0xff] }
 0x3ae   : > { %2544 = vst.msk [vmem:[#allocation3 + $0xd9] sm:$0xff] %vm1637_vm2, %v2456_v47  ;;  %2545 = vst.msk [vmem:[#allocation3 + $0xe1] sm:$0xff] %vm1637_vm2, %v2457_v10  ;;  %2887 = vrot.lane.b32.xlu1 %v7136_v25, %s5227_s20  ;;  %2885 = vrot.lane.b32.xlu0 %v7142_v49, %s5227_s20  ;;  %v7148_v16 = vld [vmem:[#allocation3 + $0x39] sm:$0xff]  ;;  %v7150_v5 = vld [vmem:[#allocation3 + $0x31] sm:$0xff] }
 0x3af   : > { %2546 = vst.msk [vmem:[#allocation3 + $0xf1] sm:$0xff] %vm1637_vm2, %v2458_v43  ;;  %2547 = vst.msk [vmem:[#allocation3 + $0xf9] sm:$0xff] %vm1637_vm2, %v2459_v17  ;;  %v7156_v39 = vld [vmem:[#allocation3 + $0x51] sm:$0xff]  ;;  %v7158_v42 = vld [vmem:[#allocation3 + $0x49] sm:$0xff] }
 0x3b0   : > { %2548 = vst.msk [vmem:[#allocation3 + $0x109] sm:$0xff] %vm1637_vm2, %v2460_v46  ;;  %2549 = vst.msk [vmem:[#allocation3 + $0x111] sm:$0xff] %vm1637_vm2, %v2461_v32  ;;  %v7164_v48 = vld [vmem:[#allocation3 + $0x69] sm:$0xff]  ;;  %v7166_v15 = vld [vmem:[#allocation3 + $0x61] sm:$0xff] }
 0x3b1   : > { %2550 = vst.msk [vmem:[#allocation3 + $0x121] sm:$0xff] %vm1637_vm2, %v2462_v24  ;;  %2551 = vst.msk [vmem:[#allocation3 + $0x129] sm:$0xff] %vm1637_vm2, %v2463_v14  ;;  %v7172_v30 = vld [vmem:[#allocation3 + $0x81] sm:$0xff]  ;;  %v7174_v45 = vld [vmem:[#allocation3 + $0x79] sm:$0xff]  ;;  %v7292_v14 = vpop.permute.xlu0 %2881 }
 0x3b2   : > { %2552 = vst.msk [vmem:[#allocation3 + $0x139] sm:$0xff] %vm1637_vm2, %v2464_v7  ;;  %2553 = vst.msk [vmem:[#allocation3 + $0x141] sm:$0xff] %vm1637_vm2, %v2465_v40  ;;  %2891 = vrot.lane.b32.xlu1 %v7148_v16, %s5227_s20  ;;  %2889 = vrot.lane.b32.xlu0 %v7150_v5, %s5227_s20  ;;  %v7180_v54 = vld [vmem:[#allocation3 + $0x99] sm:$0xff]  ;;  %v7182_v3 = vld [vmem:[#allocation3 + $0x91] sm:$0xff]  ;;  %v7294_v7 = vpop.permute.xlu1 %2883 }
 0x3b3   : > { %2554 = vst.msk [vmem:[#allocation3 + $0x151] sm:$0xff] %vm1637_vm2, %v2466_v23  ;;  %2555 = vst.msk [vmem:[#allocation3 + $0x159] sm:$0xff] %vm1637_vm2, %v2467_v18  ;;  %v7188_v63 = vld [vmem:[#allocation3 + $0xb1] sm:$0xff]  ;;  %v7190_v12 = vld [vmem:[#allocation3 + $0xa9] sm:$0xff] }
 0x3b4   : > { %2556 = vst.msk [vmem:[#allocation3 + $0x169] sm:$0xff] %vm1637_vm2, %v2468_v27  ;;  %2557 = vst.msk [vmem:[#allocation3 + $0x171] sm:$0xff] %vm1637_vm2, %v2469_v56  ;;  %v2609_v4 = vld [vmem:[#allocation3 + $0xc9] sm:$0xff]  ;;  %v7196_v44 = vld [vmem:[#allocation3 + $0xc1] sm:$0xff] }
 0x3b5   : > { %2559 = vst.msk [vmem:[#allocation3 + $0x189] sm:$0xff] %vm1637_vm2, %v2471_v6  ;;  %v2611_v37 = vld [vmem:[#allocation3 + $0xe1] sm:$0xff]  ;;  %v2610_v60 = vld [vmem:[#allocation3 + $0xd9] sm:$0xff]  ;;  %v7235_v53 = vld [vmem:[#allocation3 + $0x4a] sm:$0xff] }
 0x3b6   : > { %2895 = vrot.lane.b32.xlu1 %v7156_v39, %s5227_s20  ;;  %2893 = vrot.lane.b32.xlu0 %v7158_v42, %s5227_s20  ;;  %v2613_v62 = vld [vmem:[#allocation3 + $0xf9] sm:$0xff]  ;;  %v2612_v9 = vld [vmem:[#allocation3 + $0xf1] sm:$0xff]  ;;  %v7217_v19 = vld [vmem:[#allocation3 + $0x22] sm:$0xff] }
 0x3b7   : > { %v2615_v0 = vld [vmem:[#allocation3 + $0x111] sm:$0xff]  ;;  %v2614_v36 = vld [vmem:[#allocation3 + $0x109] sm:$0xff]  ;;  %v7219_v52 = vld [vmem:[#allocation3 + $0x1a] sm:$0xff] }
 0x3b8   : > { %v2617_v22 = vld [vmem:[#allocation3 + $0x129] sm:$0xff]  ;;  %v2616_v13 = vld [vmem:[#allocation3 + $0x121] sm:$0xff]  ;;  %v7227_v26 = vld [vmem:[#allocation3 + $0x32] sm:$0xff] }
 0x3b9   : > { %v2619_v59 = vld [vmem:[#allocation3 + $0x141] sm:$0xff]  ;;  %v2618_v35 = vld [vmem:[#allocation3 + $0x139] sm:$0xff]  ;;  %v7241_v21 = vld [vmem:[#allocation3 + $0x6a] sm:$0xff] }
 0x3ba   : > { %2899 = vrot.lane.b32.xlu1 %v7164_v48, %s5227_s20  ;;  %2897 = vrot.lane.b32.xlu0 %v7166_v15, %s5227_s20  ;;  %v2621_v58 = vld [vmem:[#allocation3 + $0x159] sm:$0xff]  ;;  %v2620_v41 = vld [vmem:[#allocation3 + $0x151] sm:$0xff]  ;;  %v7243_v51 = vld [vmem:[#allocation3 + $0x62] sm:$0xff] }
 0x3bb   : > { %v2623_v8 = vld [vmem:[#allocation3 + $0x171] sm:$0xff]  ;;  %v2622_v29 = vld [vmem:[#allocation3 + $0x169] sm:$0xff]  ;;  %v7225_v55 = vld [vmem:[#allocation3 + $0x3a] sm:$0xff] }
 0x3bc   : > { %v7233_v50 = vld [vmem:[#allocation3 + $0x52] sm:$0xff]  ;;  %v7249_v20 = vld [vmem:[#allocation3 + $0x82] sm:$0xff]  ;;  %v7251_v38 = vld [vmem:[#allocation3 + $0x7a] sm:$0xff] }
 0x3bd   : > { %v7257_v61 = vld [vmem:[#allocation3 + $0x9a] sm:$0xff]  ;;  %v7259_v2 = vld [vmem:[#allocation3 + $0x92] sm:$0xff]  ;;  %v7267_v28 = vld [vmem:[#allocation3 + $0xaa] sm:$0xff] }
 0x3be   : > { %2903 = vrot.lane.b32.xlu1 %v7172_v30, %s5227_s20  ;;  %2901 = vrot.lane.b32.xlu0 %v7174_v45, %s5227_s20  ;;  %v7265_v33 = vld [vmem:[#allocation3 + $0xb2] sm:$0xff]  ;;  %v7273_v11 = vld [vmem:[#allocation3 + $0xca] sm:$0xff]  ;;  %v7275_v31 = vld [vmem:[#allocation3 + $0xc2] sm:$0xff] }
 0x3bf   : > { %v2643_v57 = vld [vmem:[#allocation3 + $0xe2] sm:$0xff]  ;;  %v7281_v47 = vld [vmem:[#allocation3 + $0xda] sm:$0xff]  ;;  %v2644_v43 = vld [vmem:[#allocation3 + $0xf2] sm:$0xff] }
 0x3c0   : > { %v2645_v10 = vld [vmem:[#allocation3 + $0xfa] sm:$0xff]  ;;  %v2647_v17 = vld [vmem:[#allocation3 + $0x112] sm:$0xff]  ;;  %v2646_v46 = vld [vmem:[#allocation3 + $0x10a] sm:$0xff] }
 0x3c1   : > { %v2649_v32 = vld [vmem:[#allocation3 + $0x12a] sm:$0xff]  ;;  %v2648_v24 = vld [vmem:[#allocation3 + $0x122] sm:$0xff]  ;;  %v2650_v23 = vld [vmem:[#allocation3 + $0x13a] sm:$0xff] }
 0x3c2   : > { %2907 = vrot.lane.b32.xlu1 %v7180_v54, %s5227_s20  ;;  %2905 = vrot.lane.b32.xlu0 %v7182_v3, %s5227_s20  ;;  %v2651_v40 = vld [vmem:[#allocation3 + $0x142] sm:$0xff]  ;;  %v2653_v56 = vld [vmem:[#allocation3 + $0x15a] sm:$0xff]  ;;  %v2652_v6 = vld [vmem:[#allocation3 + $0x152] sm:$0xff] }
 0x3c6   : > { %2911 = vrot.lane.b32.xlu1 %v7188_v63, %s5227_s20  ;;  %2909 = vrot.lane.b32.xlu0 %v7190_v12, %s5227_s20 }
 0x3ca   : > { %2915 = vrot.lane.b32.xlu1 %v2609_v4, %s5227_s20  ;;  %2913 = vrot.lane.b32.xlu0 %v7196_v44, %s5227_s20 }
 0x3ce   : > { %2919 = vrot.lane.b32.xlu1 %v2611_v37, %s5227_s20  ;;  %2917 = vrot.lane.b32.xlu0 %v2610_v60, %s5227_s20  ;;  %v2655_v60 = vld [vmem:[#allocation3 + $0x172] sm:$0xff] }
 0x3d2   : > { %2923 = vrot.lane.b32.xlu1 %v2613_v62, %s5227_s20  ;;  %2921 = vrot.lane.b32.xlu0 %v2612_v9, %s5227_s20  ;;  %v2654_v62 = vld [vmem:[#allocation3 + $0x16a] sm:$0xff] }
 0x3d6   : > { %2927 = vrot.lane.b32.xlu1 %v2615_v0, %s5227_s20  ;;  %2925 = vrot.lane.b32.xlu0 %v2614_v36, %s5227_s20  ;;  %v7314_v36 = vld [vmem:[#allocation3 + $0x20] sm:$0xff] }
 0x3da   : > { %2931 = vrot.lane.b32.xlu1 %v2617_v22, %s5227_s20  ;;  %2929 = vrot.lane.b32.xlu0 %v2616_v13, %s5227_s20  ;;  %v7316_v22 = vld [vmem:[#allocation3 + $0x18] sm:$0xff] }
 0x3de   : > { %2935 = vrot.lane.b32.xlu1 %v2619_v59, %s5227_s20  ;;  %2933 = vrot.lane.b32.xlu0 %v2618_v35, %s5227_s20  ;;  %v7326_v35 = vld [vmem:[#allocation3 + $0x38] sm:$0xff] }
 0x3e2   : > { %2939 = vrot.lane.b32.xlu1 %v2621_v58, %s5227_s20  ;;  %2937 = vrot.lane.b32.xlu0 %v2620_v41, %s5227_s20  ;;  %v7328_v58 = vld [vmem:[#allocation3 + $0x30] sm:$0xff] }
 0x3e6   : > { %2943 = vrot.lane.b32.xlu1 %v2623_v8, %s5227_s20  ;;  %2941 = vrot.lane.b32.xlu0 %v2622_v29, %s5227_s20  ;;  %v7338_v29 = vld [vmem:[#allocation3 + $0x50] sm:$0xff] }
 0x3ea   : > { %3011 = vrot.lane.b32.xlu1 %v2625_v34, %s5229_s22  ;;  %3009 = vrot.lane.b32.xlu0 %v2624_v1, %s5229_s22  ;;  %v7340_v34 = vld [vmem:[#allocation3 + $0x48] sm:$0xff] }
 0x3ee   : > { %3015 = vrot.lane.b32.xlu1 %v7217_v19, %s5229_s22  ;;  %3013 = vrot.lane.b32.xlu0 %v7219_v52, %s5229_s22 }
 0x3f2   : > { %3019 = vrot.lane.b32.xlu1 %v7225_v55, %s5229_s22  ;;  %3017 = vrot.lane.b32.xlu0 %v7227_v26, %s5229_s22 }
 0x3f6   : > { %3023 = vrot.lane.b32.xlu1 %v7233_v50, %s5229_s22  ;;  %3021 = vrot.lane.b32.xlu0 %v7235_v53, %s5229_s22 }
 0x3fa   : > { %3027 = vrot.lane.b32.xlu1 %v7241_v21, %s5229_s22  ;;  %3025 = vrot.lane.b32.xlu0 %v7243_v51, %s5229_s22 }
 0x3fe   : > { %3031 = vrot.lane.b32.xlu1 %v7249_v20, %s5229_s22  ;;  %3029 = vrot.lane.b32.xlu0 %v7251_v38, %s5229_s22 }
 0x402   : > { %3035 = vrot.lane.b32.xlu1 %v7257_v61, %s5229_s22  ;;  %3033 = vrot.lane.b32.xlu0 %v7259_v2, %s5229_s22 }
 0x406   : > { %3039 = vrot.lane.b32.xlu1 %v7265_v33, %s5229_s22  ;;  %3037 = vrot.lane.b32.xlu0 %v7267_v28, %s5229_s22 }
 0x40a   : > { %3043 = vrot.lane.b32.xlu1 %v7273_v11, %s5229_s22  ;;  %3041 = vrot.lane.b32.xlu0 %v7275_v31, %s5229_s22 }
 0x40e   : > { %3047 = vrot.lane.b32.xlu1 %v2643_v57, %s5229_s22  ;;  %3045 = vrot.lane.b32.xlu0 %v7281_v47, %s5229_s22 }
 0x412   : > { %3051 = vrot.lane.b32.xlu1 %v2645_v10, %s5229_s22  ;;  %3049 = vrot.lane.b32.xlu0 %v2644_v43, %s5229_s22  ;;  %v7350_v10 = vld [vmem:[#allocation3 + $0x68] sm:$0xff]  ;;  %v7352_v43 = vld [vmem:[#allocation3 + $0x60] sm:$0xff] }
 0x416   : > { %3055 = vrot.lane.b32.xlu1 %v2647_v17, %s5229_s22  ;;  %3053 = vrot.lane.b32.xlu0 %v2646_v46, %s5229_s22 }
 0x41a   : > { %3059 = vrot.lane.b32.xlu1 %v2649_v32, %s5229_s22  ;;  %3057 = vrot.lane.b32.xlu0 %v2648_v24, %s5229_s22  ;;  %v7362_v32 = vld [vmem:[#allocation3 + $0x80] sm:$0xff]  ;;  %v7364_v24 = vld [vmem:[#allocation3 + $0x78] sm:$0xff] }
 0x41b   : > { %8763 = vst [vmem:[#allocation10_spill] sm:$0xff] %v7362_v32 }
 0x41e   : > { %3063 = vrot.lane.b32.xlu1 %v2651_v40, %s5229_s22  ;;  %3061 = vrot.lane.b32.xlu0 %v2650_v23, %s5229_s22 }
 0x420   : > { %v7298_v18 = vpop.permute.xlu1 %2887  ;;  %v7300_v27 = vpop.permute.xlu0 %2885 }
 0x422   : > { %3067 = vrot.lane.b32.xlu1 %v2653_v56, %s5229_s22  ;;  %3065 = vrot.lane.b32.xlu0 %v2652_v6, %s5229_s22  ;;  %v4133_v56 = vld [vmem:[%s8538_s2] sm:$0xff]  ;;  %v4134_v6 = vld [vmem:[%s8538_s2 + $0x8] sm:$0xff] }
 0x424   : > { %v7304_v4 = vpop.permute.xlu1 %2891  ;;  %v7306_v37 = vpop.permute.xlu0 %2889 }
 0x426   : > { %3071 = vrot.lane.b32.xlu1 %v2655_v60, %s5229_s22  ;;  %3069 = vrot.lane.b32.xlu0 %v2654_v62, %s5229_s22  ;;  %v5146_v60 = vpack.c.bf16 %v4134_v6, %v4133_v56 }
 0x428   : > { %v7310_v9 = vpop.permute.xlu1 %2895  ;;  %v7312_v0 = vpop.permute.xlu0 %2893  ;;  %5147 = vmatprep.subr.bf16.mxu0 %v5146_v60  ;;  %5162 = vmatprep.subr.bf16.mxu1 %v5146_v60 }
 0x429   : > { %5149 = vmatpush3.bf16.msra.mxu0 %v5146_v60  ;;  %5167 = vmatpush3.bf16.msra.mxu1 %v5146_v60  ;;  %v4138_v60 = vld [vmem:[%s8538_s2 + $0x28] sm:$0xff] }
 0x42a   : > { %3139 = vrot.lane.b32.xlu1 %v7314_v36, %s5231_s7  ;;  %3137 = vrot.lane.b32.xlu0 %v7316_v22, %s5231_s7 }
 0x42c   : > { %v7322_v13 = vpop.permute.xlu1 %2899  ;;  %v7324_v59 = vpop.permute.xlu0 %2897 }
 0x42e   : > { %3143 = vrot.lane.b32.xlu1 %v7326_v35, %s5231_s7  ;;  %3141 = vrot.lane.b32.xlu0 %v7328_v58, %s5231_s7 }
 0x430   : > { %v7334_v41 = vpop.permute.xlu1 %2903  ;;  %v7336_v8 = vpop.permute.xlu0 %2901 }
 0x431   : > { %8758 = vst [vmem:[#allocation31_spill] sm:$0xff] %v7334_v41 }
 0x432   : > { %3147 = vrot.lane.b32.xlu1 %v7338_v29, %s5231_s7  ;;  %3145 = vrot.lane.b32.xlu0 %v7340_v34, %s5231_s7 }
 0x434   : > { %v7346_v1 = vpop.permute.xlu1 %2907  ;;  %v7348_v57 = vpop.permute.xlu0 %2905 }
 0x435   : > { %8759 = vst [vmem:[#allocation4_spill] sm:$0xff] %v7346_v1  ;;  %8760 = vst [vmem:[#allocation5_spill] sm:$0xff] %v7348_v57 }
 0x436   : > { %3151 = vrot.lane.b32.xlu1 %v7350_v10, %s5231_s7  ;;  %3149 = vrot.lane.b32.xlu0 %v7352_v43, %s5231_s7 }
 0x438   : > { %v7358_v17 = vpop.permute.xlu1 %2911  ;;  %v7360_v46 = vpop.permute.xlu0 %2909 }
 0x439   : > { %8761 = vst [vmem:[#allocation38_spill] sm:$0xff] %v7358_v17  ;;  %8762 = vst [vmem:[#allocation6_spill] sm:$0xff] %v7360_v46  ;;  %v7627_v17 = vld [vmem:[#allocation3 + $0xa8] sm:$0xff] }
 0x43a   : > { %3155 = vrot.lane.b32.xlu1 %v7362_v32, %s5231_s7  ;;  %3153 = vrot.lane.b32.xlu0 %v7364_v24, %s5231_s7  ;;  %8803 = vst [vmem:[#allocation92_spill] sm:$0xff] %v7627_v17 }
 0x43c   : > { %v7370_v40 = vpop.permute.xlu1 %2915  ;;  %v7372_v23 = vpop.permute.xlu0 %2913 }
 0x43d   : > { %8764 = vst [vmem:[#allocation8_spill] sm:$0xff] %v7370_v40  ;;  %8765 = vst [vmem:[#allocation14_spill] sm:$0xff] %v7372_v23 }
 0x43e   : > { %3267 = vrot.lane.b32.xlu1 %v7136_v25, %s5233_s9  ;;  %3265 = vrot.lane.b32.xlu0 %v7142_v49, %s5233_s9  ;;  %v4135_v25 = vld [vmem:[%s8538_s2 + $0x10] sm:$0xff]  ;;  %v4136_v49 = vld [vmem:[%s8538_s2 + $0x18] sm:$0xff] }
 0x43f   : > { %v5150_v56 = vpack.c.bf16 %v4136_v49, %v4135_v25 }
 0x440   : > { %v7384_v62 = vpop.permute.xlu1 %2919  ;;  %v7386_v40 = vpop.permute.xlu0 %2917 }
 0x441   : > { %8766 = vst [vmem:[#allocation40_spill] sm:$0xff] %v7384_v62  ;;  %8767 = vst [vmem:[#allocation7_spill] sm:$0xff] %v7386_v40  ;;  %5151 = vmatprep.subr.bf16.mxu0 %v5150_v56  ;;  %5163 = vmatprep.subr.bf16.mxu1 %v5150_v56 }
 0x442   : > { %3269 = vrot.lane.b32.xlu1 %v7150_v5, %s5233_s9  ;;  %3393 = vrot.lane.b32.xlu0 %v7219_v52, %s5234_s16  ;;  %v4137_v52 = vld [vmem:[%s8538_s2 + $0x20] sm:$0xff] }
 0x443   : > { %5153 = vmatpush3.bf16.msra.mxu0 %v5150_v56  ;;  %v5154_v25 = vpack.c.bf16 %v4138_v60, %v4137_v52  ;;  %5168 = vmatpush3.bf16.msra.mxu1 %v5150_v56  ;;  %v4140_v56 = vld [vmem:[%s8538_s2 + $0x38] sm:$0xff] }
 0x444   : > { %v7398_v6 = vpop.permute.xlu1 %2923  ;;  %v7400_v62 = vpop.permute.xlu0 %2921 }
 0x445   : > { %8768 = vst [vmem:[#allocation11_spill] sm:$0xff] %v7398_v6  ;;  %8769 = vst [vmem:[#allocation9_spill] sm:$0xff] %v7400_v62  ;;  %5155 = vmatprep.subr.bf16.mxu0 %v5154_v25  ;;  %5164 = vmatprep.subr.bf16.mxu1 %v5154_v25 }
 0x446   : > { %3521 = vrot.lane.b32.xlu1 %v7328_v58, %s5235_s21  ;;  %3395 = vrot.lane.b32.xlu0 %v7217_v19, %s5234_s16  ;;  %v4139_v19 = vld [vmem:[%s8538_s2 + $0x30] sm:$0xff] }
 0x447   : > { %5157 = vmatpush3.bf16.msra.mxu0 %v5154_v25  ;;  %5169 = vmatpush3.bf16.msra.mxu1 %v5154_v25 }
 0x448   : > { %v7412_v49 = vpop.permute.xlu1 %2927  ;;  %v7414_v6 = vpop.permute.xlu0 %2925 }
 0x449   : > { %8770 = vst [vmem:[#allocation13_spill] sm:$0xff] %v7412_v49  ;;  %8771 = vst [vmem:[#allocation12_spill] sm:$0xff] %v7414_v6  ;;  %v5158_v49 = vpack.c.bf16 %v4140_v56, %v4139_v19  ;;  %v4141_v6 = vld [vmem:[%s8538_s2 + $0x40] sm:$0xff] }
 0x44a   : > { %3397 = vrot.lane.b32.xlu1 %v7227_v26, %s5234_s16  ;;  %3271 = vrot.lane.b32.xlu0 %v7148_v16, %s5233_s9 }
 0x44b   : > { %5159 = vmatprep.subr.bf16.mxu0 %v5158_v49  ;;  %5165 = vmatprep.subr.bf16.mxu1 %v5158_v49 }
 0x44c   : > { %v7426_v52 = vpop.permute.xlu1 %2931  ;;  %v7428_v60 = vpop.permute.xlu0 %2929  ;;  %5161 = vmatpush3.bf16.msra.mxu0 %v5158_v49  ;;  %5170 = vmatpush3.bf16.msra.mxu1 %v5158_v49 }
 0x44d   : > { %8772 = vst [vmem:[#allocation16_spill] sm:$0xff] %v7426_v52  ;;  %8773 = vst [vmem:[#allocation15_spill] sm:$0xff] %v7428_v60  ;;  %5088 = vmatprep.subr.mxu0 %v4141_v6  ;;  %5166 = vmatprep.subr.mxu1 %v4141_v6 }
 0x44e   : > { %3649 = vrot.lane.b32.xlu1 %v7150_v5, %s5236_s30  ;;  %3523 = vrot.lane.b32.xlu0 %v7326_v35, %s5235_s21 }
 0x450   : > { %v7437_v62 = vpop.permute.xlu1 %2935  ;;  %v7439_v25 = vpop.permute.xlu0 %2933  ;;  %5089 = vmatpush3.msra.mxu0 %v4141_v6  ;;  %5171 = vmatpush3.msra.mxu1 %v4141_v6 }
 0x451   : > { %8774 = vst [vmem:[#allocation18_spill] sm:$0xff] %v7437_v62  ;;  %8775 = vst [vmem:[#allocation42_spill] sm:$0xff] %v7439_v25 }
 0x452   : > { %3525 = vrot.lane.b32.xlu1 %v7340_v34, %s5235_s21  ;;  %3399 = vrot.lane.b32.xlu0 %v7225_v55, %s5234_s16 }
 0x454   : > { %v7445_v5 = vpop.permute.xlu1 %2939  ;;  %v7447_v19 = vpop.permute.xlu0 %2937 }
 0x455   : > { %8776 = vst [vmem:[#allocation65_spill] sm:$0xff] %v7445_v5  ;;  %8777 = vst [vmem:[#allocation86_spill] sm:$0xff] %v7447_v19 }
 0x456   : > { %3777 = vrot.lane.b32.xlu1 %v7227_v26, %s5237_s6  ;;  %3651 = vrot.lane.b32.xlu0 %v7148_v16, %s5236_s30 }
 0x458   : > { %v7453_v49 = vpop.permute.xlu1 %2943  ;;  %v7455_v56 = vpop.permute.xlu0 %2941 }
 0x459   : > { %8778 = vst [vmem:[#allocation17_spill] sm:$0xff] %v7453_v49  ;;  %8779 = vst [vmem:[#allocation41_spill] sm:$0xff] %v7455_v56 }
 0x45a   : > { %3653 = vrot.lane.b32.xlu1 %v7158_v42, %s5236_s30  ;;  %3527 = vrot.lane.b32.xlu0 %v7338_v29, %s5235_s21 }
 0x45c   : > { %v7461_v5 = vpop.permute.xlu1 %3011  ;;  %v7463_v6 = vpop.permute.xlu0 %3009 }
 0x45e   : > { %3273 = vrot.lane.b32.xlu1 %v7158_v42, %s5233_s9  ;;  %3779 = vrot.lane.b32.xlu0 %v7225_v55, %s5237_s6 }
 0x460   : > { %v7469_v16 = vpop.permute.xlu1 %3015  ;;  %v7471_v26 = vpop.permute.xlu0 %3013 }
 0x462   : > { %3781 = vrot.lane.b32.xlu1 %v7235_v53, %s5237_s6  ;;  %3655 = vrot.lane.b32.xlu0 %v7156_v39, %s5236_s30 }
 0x464   : > { %v7477_v56 = vpop.permute.xlu1 %3019  ;;  %v7479_v49 = vpop.permute.xlu0 %3017 }
 0x466   : > { %3401 = vrot.lane.b32.xlu1 %v7235_v53, %s5234_s16  ;;  %3275 = vrot.lane.b32.xlu0 %v7156_v39, %s5233_s9 }
 0x468   : > { %v7485_v42 = vpop.permute.xlu1 %3023  ;;  %v7487_v55 = vpop.permute.xlu0 %3021 }
 0x46a   : > { %3403 = vrot.lane.b32.xlu1 %v7233_v50, %s5234_s16  ;;  %3783 = vrot.lane.b32.xlu0 %v7233_v50, %s5237_s6 }
 0x46c   : > { %v7493_v19 = vpop.permute.xlu1 %3027  ;;  %v7495_v62 = vpop.permute.xlu0 %3025 }
 0x46e   : > { %3531 = vrot.lane.b32.xlu1 %v7350_v10, %s5235_s21  ;;  %3529 = vrot.lane.b32.xlu0 %v7352_v43, %s5235_s21 }
 0x470   : > { %v7501_v39 = vpop.permute.xlu1 %3031  ;;  %v7503_v53 = vpop.permute.xlu0 %3029 }
 0x471   : > { %8780 = vst [vmem:[#allocation64_spill] sm:$0xff] %v7501_v39 }
 0x472   : > { %3277 = vrot.lane.b32.xlu1 %v7166_v15, %s5233_s9  ;;  %3657 = vrot.lane.b32.xlu0 %v7166_v15, %s5236_s30 }
 0x474   : > { %v7509_v50 = vpop.permute.xlu1 %3035  ;;  %v7511_v25 = vpop.permute.xlu0 %3033 }
 0x475   : > { %8781 = vst [vmem:[#allocation85_spill] sm:$0xff] %v7509_v50  ;;  %8782 = vst [vmem:[#allocation20_spill] sm:$0xff] %v7511_v25 }
 0x476   : > { %3785 = vrot.lane.b32.xlu1 %v7243_v51, %s5237_s6  ;;  %3659 = vrot.lane.b32.xlu0 %v7164_v48, %s5236_s30 }
 0x478   : > { %v7517_v52 = vpop.permute.xlu1 %3039  ;;  %v7519_v60 = vpop.permute.xlu0 %3037 }
 0x479   : > { %8783 = vst [vmem:[#allocation44_spill] sm:$0xff] %v7517_v52  ;;  %8784 = vst [vmem:[#allocation67_spill] sm:$0xff] %v7519_v60  ;;  %v7633_v60 = vld [vmem:[#allocation3 + $0xb0] sm:$0xff] }
 0x47a   : > { %3405 = vrot.lane.b32.xlu1 %v7243_v51, %s5234_s16  ;;  %3279 = vrot.lane.b32.xlu0 %v7164_v48, %s5233_s9  ;;  %8804 = vst [vmem:[#allocation23_spill] sm:$0xff] %v7633_v60 }
 0x47c   : > { %v7525_v15 = vpop.permute.xlu1 %3043  ;;  %v7527_v40 = vpop.permute.xlu0 %3041 }
 0x47d   : > { %8785 = vst [vmem:[#allocation88_spill] sm:$0xff] %v7525_v15  ;;  %8786 = vst [vmem:[#allocation19_spill] sm:$0xff] %v7527_v40 }
 0x47e   : > { %3407 = vrot.lane.b32.xlu1 %v7241_v21, %s5234_s16  ;;  %3787 = vrot.lane.b32.xlu0 %v7241_v21, %s5237_s6 }
 0x480   : > { %v7533_v23 = vpop.permute.xlu1 %3047  ;;  %v7535_v52 = vpop.permute.xlu0 %3045 }
 0x481   : > { %8787 = vst [vmem:[#allocation43_spill] sm:$0xff] %v7533_v23  ;;  %8788 = vst [vmem:[#allocation66_spill] sm:$0xff] %v7535_v52 }
 0x482   : > { %3535 = vrot.lane.b32.xlu1 %v7362_v32, %s5235_s21  ;;  %3533 = vrot.lane.b32.xlu0 %v7364_v24, %s5235_s21  ;;  %v7662_v32 = vld [vmem:[#allocation3 + $0xc0] sm:$0xff] }
 0x484   : > { %v7541_v48 = vpop.permute.xlu1 %3051  ;;  %v7543_v51 = vpop.permute.xlu0 %3049 }
 0x485   : > { %8789 = vst [vmem:[#allocation62_spill] sm:$0xff] %v7541_v48  ;;  %8790 = vst [vmem:[#allocation87_spill] sm:$0xff] %v7543_v51 }
 0x486   : > { %3281 = vrot.lane.b32.xlu1 %v7174_v45, %s5233_s9  ;;  %3661 = vrot.lane.b32.xlu0 %v7174_v45, %s5236_s30 }
 0x488   : > { %v7549_v21 = vpop.permute.xlu1 %3055  ;;  %v7551_v23 = vpop.permute.xlu0 %3053 }
 0x489   : > { %8791 = vst [vmem:[#allocation22_spill] sm:$0xff] %v7549_v21  ;;  %8792 = vst [vmem:[#allocation46_spill] sm:$0xff] %v7551_v23 }
 0x48a   : > { %3789 = vrot.lane.b32.xlu1 %v7251_v38, %s5237_s6  ;;  %3663 = vrot.lane.b32.xlu0 %v7172_v30, %s5236_s30 }
 0x48c   : > { %v7557_v52 = vpop.permute.xlu1 %3059  ;;  %v7559_v48 = vpop.permute.xlu0 %3057 }
 0x48d   : > { %8793 = vst [vmem:[#allocation69_spill] sm:$0xff] %v7557_v52  ;;  %8794 = vst [vmem:[#allocation90_spill] sm:$0xff] %v7559_v48  ;;  %v7577_v48 = vld [vmem:[#allocation3 + $0x90] sm:$0xff] }
 0x48e   : > { %3409 = vrot.lane.b32.xlu1 %v7251_v38, %s5234_s16  ;;  %3283 = vrot.lane.b32.xlu0 %v7172_v30, %s5233_s9  ;;  %8799 = vst [vmem:[#allocation89_spill] sm:$0xff] %v7577_v48 }
 0x490   : > { %v7565_v45 = vpop.permute.xlu1 %3063  ;;  %v7567_v21 = vpop.permute.xlu0 %3061 }
 0x491   : > { %8795 = vst [vmem:[#allocation63_spill] sm:$0xff] %v7565_v45  ;;  %8796 = vst [vmem:[#allocation21_spill] sm:$0xff] %v7567_v21  ;;  %v7587_v45 = vld [vmem:[#allocation3 + $0x98] sm:$0xff] }
 0x492   : > { %3411 = vrot.lane.b32.xlu1 %v7249_v20, %s5234_s16  ;;  %3791 = vrot.lane.b32.xlu0 %v7249_v20, %s5237_s6  ;;  %8802 = vst [vmem:[#allocation71_spill] sm:$0xff] %v7587_v45 }
 0x494   : > { %v7573_v23 = vpop.permute.xlu1 %3067  ;;  %v7575_v52 = vpop.permute.xlu0 %3065 }
 0x495   : > { %8797 = vst [vmem:[#allocation45_spill] sm:$0xff] %v7573_v23  ;;  %8798 = vst [vmem:[#allocation68_spill] sm:$0xff] %v7575_v52 }
 0x496   : > { %3157 = vrot.lane.b32.xlu1 %v7577_v48, %s5231_s7  ;;  %3537 = vrot.lane.b32.xlu0 %v7577_v48, %s5235_s21 }
 0x498   : > { %v7583_v30 = vpop.permute.xlu1 %3071  ;;  %v7585_v38 = vpop.permute.xlu0 %3069 }
 0x499   : > { %8800 = vst [vmem:[#allocation24_spill] sm:$0xff] %v7583_v30  ;;  %8801 = vst [vmem:[#allocation48_spill] sm:$0xff] %v7585_v38 }
 0x49a   : > { %3665 = vrot.lane.b32.xlu1 %v7182_v3, %s5236_s30  ;;  %3539 = vrot.lane.b32.xlu0 %v7587_v45, %s5235_s21 }
 0x49c   : > { %v7593_v20 = vpop.permute.xlu1 %3139  ;;  %v3138_v23 = vpop.permute.xlu0 %3137 }
 0x49e   : > { %3285 = vrot.lane.b32.xlu1 %v7182_v3, %s5233_s9  ;;  %3159 = vrot.lane.b32.xlu0 %v7587_v45, %s5231_s7 }
 0x4a0   : > { %v7599_v30 = vpop.permute.xlu1 %3143  ;;  %v7601_v38 = vpop.permute.xlu0 %3141 }
 0x4a2   : > { %3793 = vrot.lane.b32.xlu1 %v7259_v2, %s5237_s6  ;;  %3667 = vrot.lane.b32.xlu0 %v7180_v54, %s5236_s30 }
 0x4a4   : > { %v7607_v52 = vpop.permute.xlu1 %3147  ;;  %v7609_v21 = vpop.permute.xlu0 %3145 }
 0x4a6   : > { %3413 = vrot.lane.b32.xlu1 %v7259_v2, %s5234_s16  ;;  %3287 = vrot.lane.b32.xlu0 %v7180_v54, %s5233_s9 }
 0x4a8   : > { %v7615_v3 = vpop.permute.xlu1 %3151  ;;  %v7617_v51 = vpop.permute.xlu0 %3149 }
 0x4aa   : > { %3415 = vrot.lane.b32.xlu1 %v7257_v61, %s5234_s16  ;;  %3795 = vrot.lane.b32.xlu0 %v7257_v61, %s5237_s6 }
 0x4ac   : > { %v7623_v15 = vpop.permute.xlu1 %3155  ;;  %v7625_v40 = vpop.permute.xlu0 %3153 }
 0x4ae   : > { %3161 = vrot.lane.b32.xlu1 %v7627_v17, %s5231_s7  ;;  %3541 = vrot.lane.b32.xlu0 %v7627_v17, %s5235_s21 }
 0x4b0   : > { %v3268_v54 = vpop.permute.xlu1 %3267  ;;  %v3266_v2 = vpop.permute.xlu0 %3265 }
 0x4b2   : > { %3669 = vrot.lane.b32.xlu1 %v7190_v12, %s5236_s30  ;;  %3543 = vrot.lane.b32.xlu0 %v7633_v60, %s5235_s21 }
 0x4b4   : > { %v3270_v61 = vpop.permute.xlu1 %3269  ;;  %v3394_v46 = vpop.permute.xlu0 %3393 }
 0x4b6   : > { %3289 = vrot.lane.b32.xlu1 %v7190_v12, %s5233_s9  ;;  %3163 = vrot.lane.b32.xlu0 %v7633_v60, %s5231_s7  ;;  %v2560_v12 = vld [vmem:[#allocation3] sm:$0xff] }
 0x4b7   : > { %v3873_v48 = vsel %vm1637_vm2, %v2560_v12, %v7292_v14  ;;  %v7672_v12 = vld [vmem:[#allocation3 + $0xc8] sm:$0xff] }
 0x4b8   : > { %v3522_v50 = vpop.permute.xlu1 %3521  ;;  %v3396_v17 = vpop.permute.xlu0 %3395  ;;  %v3905_v57 = vsel %vm1703_vm5, %v3873_v48, %v7463_v6 }
 0x4ba   : > { %3797 = vrot.lane.b32.xlu1 %v7267_v28, %s5237_s6  ;;  %3671 = vrot.lane.b32.xlu0 %v7188_v63, %s5236_s30 }
 0x4bc   : > { %v3398_v45 = vpop.permute.xlu1 %3397  ;;  %v7647_v1 = vpop.permute.xlu0 %3271 }
 0x4be   : > { %3417 = vrot.lane.b32.xlu1 %v7267_v28, %s5234_s16  ;;  %3291 = vrot.lane.b32.xlu0 %v7188_v63, %s5233_s9  ;;  %v3937_v28 = vsel %vm1769_vm7, %v3905_v57, %v3138_v23 }
 0x4bf   : > { %v3969_v41 = vsel %vm1835_vm9, %v3937_v28, %v3266_v2 }
 0x4c0   : > { %v3650_v25 = vpop.permute.xlu1 %3649  ;;  %v3524_v60 = vpop.permute.xlu0 %3523  ;;  %v4002_v14 = vsel %vm4001_vm12, %v3969_v41, %v3394_v46 }
 0x4c1   : > { %v4035_v57 = vsel %vm4034_vm13, %v4002_v14, %v3522_v50 }
 0x4c2   : > { %3419 = vrot.lane.b32.xlu1 %v7265_v33, %s5234_s16  ;;  %3799 = vrot.lane.b32.xlu0 %v7265_v33, %s5237_s6  ;;  %v2561_v33 = vld [vmem:[#allocation3 + $0x8] sm:$0xff]  ;;  %v4068_v23 = vsel %vm4067_vm14, %v4035_v57, %v3650_v25 }
 0x4c3   : > { %v3874_v41 = vsel %vm1637_vm2, %v2561_v33, %v7294_v7  ;;  %v3875_v7 = vsel %vm1637_vm2, %v7316_v22, %v7300_v27 }
 0x4c4   : > { %v3526_v63 = vpop.permute.xlu1 %3525  ;;  %v3400_v39 = vpop.permute.xlu0 %3399  ;;  %v3906_v46 = vsel %vm1703_vm5, %v3874_v41, %v7461_v5  ;;  %v3907_v5 = vsel %vm1703_vm5, %v3875_v7, %v7471_v26  ;;  %v3877_v7 = vsel %vm1637_vm2, %v7328_v58, %v7306_v37 }
 0x4c5   : > { %v3938_v25 = vsel %vm1769_vm7, %v3906_v46, %v7593_v20 }
 0x4c6   : > { %3165 = vrot.lane.b32.xlu1 %v7662_v32, %s5231_s7  ;;  %3545 = vrot.lane.b32.xlu0 %v7662_v32, %s5235_s21  ;;  %v3970_v14 = vsel %vm1835_vm9, %v3938_v25, %v3268_v54  ;;  %v3939_v54 = vsel %vm1769_vm7, %v3907_v5, %v7601_v38 }
 0x4c7   : > { %v4003_v33 = vsel %vm4001_vm12, %v3970_v14, %v3396_v17  ;;  %v3971_v22 = vsel %vm1835_vm9, %v3939_v54, %v3270_v61 }
 0x4c8   : > { %v3778_v6 = vpop.permute.xlu1 %3777  ;;  %v3652_v48 = vpop.permute.xlu0 %3651  ;;  %v4036_v20 = vsel %vm4034_vm13, %v4003_v33, %v3524_v60  ;;  %v3909_v33 = vsel %vm1703_vm5, %v3877_v7, %v7479_v49 }
 0x4c9   : > { %v4101_v2 = vsel %vm4100_vm15, %v4068_v23, %v3778_v6  ;;  %v4069_v57 = vsel %vm4067_vm14, %v4036_v20, %v3652_v48  ;;  %v4004_v6 = vsel %vm4001_vm12, %v3971_v22, %v3398_v45  ;;  %v3941_v5 = vsel %vm1769_vm7, %v3909_v33, %v7609_v21  ;;  %v2800_v21 = vld [vmem:[#allocation3 + $0xe1] sm:$0xff] }
 0x4ca   : > { %3673 = vrot.lane.b32.xlu1 %v7196_v44, %s5236_s30  ;;  %3547 = vrot.lane.b32.xlu0 %v7672_v12, %s5235_s21  ;;  %v4037_v60 = vsel %vm4034_vm13, %v4004_v6, %v3526_v63 }
 0x4cb   : > { %5090 = vmatprep.mubr.msk.f32.mxu0 %vm4142_vm0, %v4101_v2  ;;  %v3876_v2 = vsel %vm1637_vm2, %v7314_v36, %v7298_v18 }
 0x4cc   : > { %v3654_v50 = vpop.permute.xlu1 %3653  ;;  %v3528_v28 = vpop.permute.xlu0 %3527  ;;  %v3908_v45 = vsel %vm1703_vm5, %v3876_v2, %v7469_v16 }
 0x4cd   : > { %v4070_v26 = vsel %vm4067_vm14, %v4037_v60, %v3654_v50  ;;  %v3940_v63 = vsel %vm1769_vm7, %v3908_v45, %v7599_v30  ;;  %v7731_v30 = vld [vmem:[#allocation3 + $0xd8] sm:$0xff] }
 0x4ce   : > { %3293 = vrot.lane.b32.xlu1 %v7196_v44, %s5233_s9  ;;  %3167 = vrot.lane.b32.xlu0 %v7672_v12, %s5231_s7  ;;  %v2798_v44 = vld [vmem:[#allocation3 + $0xc9] sm:$0xff]  ;;  %v3972_v25 = vsel %vm1835_vm9, %v3940_v63, %v7647_v1 }
 0x4cf   : > { %v4005_v18 = vsel %vm4001_vm12, %v3972_v25, %v3400_v39  ;;  %v7739_v39 = vld [vmem:[#allocation3 + $0xe0] sm:$0xff] }
 0x4d0   : > { %v3274_v23 = vpop.permute.xlu1 %3273  ;;  %v3780_v27 = vpop.permute.xlu0 %3779 }
 0x4d1   : > { %v4102_v17 = vsel %vm4100_vm15, %v4069_v57, %v3780_v27  ;;  %v3973_v57 = vsel %vm1835_vm9, %v3941_v5, %v3274_v23  ;;  %v3878_v23 = vsel %vm1637_vm2, %v7326_v35, %v7304_v4 }
 0x4d2   : > { %3801 = vrot.lane.b32.xlu1 %v7275_v31, %s5237_s6  ;;  %3675 = vrot.lane.b32.xlu0 %v2798_v44, %s5236_s30 }
 0x4d3   : > { %5091 = vmatmul.mubr.msk.f32.vlgmr.msra.gmra.mrb[32].mxu0 %vm4142_vm0, %v4102_v17 }
 0x4d4   : > { %v3782_v38 = vpop.permute.xlu1 %3781  ;;  %v3656_v48 = vpop.permute.xlu0 %3655 }
 0x4d5   : > { %v4103_v61 = vsel %vm4100_vm15, %v4070_v26, %v3782_v38 }
 0x4d6   : > { %3421 = vrot.lane.b32.xlu1 %v7275_v31, %s5234_s16  ;;  %3295 = vrot.lane.b32.xlu0 %v2798_v44, %s5233_s9  ;;  %v4038_v31 = vsel %vm4034_vm13, %v4005_v18, %v3528_v28  ;;  %v2799_v28 = vld [vmem:[#allocation3 + $0xd9] sm:$0xff]  ;;  %v3910_v44 = vsel %vm1703_vm5, %v3878_v23, %v7477_v56 }
 0x4d7   : > { %5093 = vmatprep.mubr.msk.f32.mxu1 %vm4142_vm0, %v4103_v61  ;;  %v4071_v36 = vsel %vm4067_vm14, %v4038_v31, %v3656_v48  ;;  %v3942_v6 = vsel %vm1769_vm7, %v3910_v44, %v7607_v52  ;;  %v2736_v48 = vld [vmem:[#allocation3 + $0xda] sm:$0xff]  ;;  %v2737_v52 = vld [vmem:[#allocation3 + $0xe2] sm:$0xff] }
 0x4d8   : > { %v3402_v41 = vpop.permute.xlu1 %3401  ;;  %v3276_v46 = vpop.permute.xlu0 %3275  ;;  %v7826_v44 = vld [vmem:[#allocation3 + $0x108] sm:$0xff] }
 0x4d9   : > { %v4006_v27 = vsel %vm4001_vm12, %v3973_v57, %v3402_v41  ;;  %v3974_v38 = vsel %vm1835_vm9, %v3942_v6, %v3276_v46  ;;  %v7780_v41 = vld [vmem:[#allocation3 + $0xf0] sm:$0xff]  ;;  %v3879_v46 = vsel %vm1637_vm2, %v7340_v34, %v7312_v0  ;;  %v3881_v6 = vsel %vm1637_vm2, %v7352_v43, %v7324_v59 }
 0x4da   : > { %3423 = vrot.lane.b32.xlu1 %v7273_v11, %s5234_s16  ;;  %3803 = vrot.lane.b32.xlu0 %v7273_v11, %s5237_s6  ;;  %v3911_v25 = vsel %vm1703_vm5, %v3879_v46, %v7487_v55  ;;  %v2833_v57 = vld [vmem:[#allocation3 + $0xf2] sm:$0xff]  ;;  %v2803_v59 = vld [vmem:[#allocation3 + $0x109] sm:$0xff] }
 0x4db   : > { %v3943_v18 = vsel %vm1769_vm7, %v3911_v25, %v7617_v51 }
 0x4dc   : > { %v3404_v16 = vpop.permute.xlu1 %3403  ;;  %v3784_v50 = vpop.permute.xlu0 %3783 }
 0x4dd   : > { %v4104_v14 = vsel %vm4100_vm15, %v4071_v36, %v3784_v50  ;;  %v4007_v4 = vsel %vm4001_vm12, %v3974_v38, %v3404_v16  ;;  %v7793_v16 = vld [vmem:[#allocation3 + $0xf8] sm:$0xff] }
 0x4de   : > { %3169 = vrot.lane.b32.xlu1 %v7731_v30, %s5231_s7  ;;  %3549 = vrot.lane.b32.xlu0 %v7731_v30, %s5235_s21 }
 0x4df   : > { %5094 = vmatmul.mubr.msk.f32.vlgmr.msra.gmra.mrb[0].mxu1 %vm4142_vm0, %v4104_v14  ;;  %v2801_v14 = vld [vmem:[#allocation3 + $0xf1] sm:$0xff] }
 0x4e0   : > { %v3532_v1 = vpop.permute.xlu1 %3531  ;;  %v3530_v11 = vpop.permute.xlu0 %3529 }
 0x4e1   : > { %v4039_v37 = vsel %vm4034_vm13, %v4006_v27, %v3530_v11  ;;  %v2802_v27 = vld [vmem:[#allocation3 + $0xf9] sm:$0xff] }
 0x4e2   : > { %3677 = vrot.lane.b32.xlu1 %v2799_v28, %s5236_s30  ;;  %3551 = vrot.lane.b32.xlu0 %v7739_v39, %s5235_s21 }
 0x4e4   : > { %v3278_v20 = vpop.permute.xlu1 %3277  ;;  %v3658_v54 = vpop.permute.xlu0 %3657 }
 0x4e5   : > { %v4072_v58 = vsel %vm4067_vm14, %v4039_v37, %v3658_v54  ;;  %v3975_v50 = vsel %vm1835_vm9, %v3943_v18, %v3278_v20  ;;  %v2835_v18 = vld [vmem:[#allocation3 + $0x10a] sm:$0xff] }
 0x4e6   : > { %3297 = vrot.lane.b32.xlu1 %v2799_v28, %s5233_s9  ;;  %3171 = vrot.lane.b32.xlu0 %v7739_v39, %s5231_s7  ;;  %v3880_v28 = vsel %vm1637_vm2, %v7338_v29, %v7310_v9 }
 0x4e7   : > { %v3912_v7 = vsel %vm1703_vm5, %v3880_v28, %v7485_v42 }
 0x4e8   : > { %v3786_v22 = vpop.permute.xlu1 %3785  ;;  %v3660_v49 = vpop.permute.xlu0 %3659  ;;  %v3944_v33 = vsel %vm1769_vm7, %v3912_v7, %v7615_v3 }
 0x4e9   : > { %v4105_v17 = vsel %vm4100_vm15, %v4072_v58, %v3786_v22 }
 0x4ea   : > { %3805 = vrot.lane.b32.xlu1 %v7281_v47, %s5237_s6  ;;  %3679 = vrot.lane.b32.xlu0 %v2800_v21, %s5236_s30  ;;  %v4040_v47 = vsel %vm4034_vm13, %v4007_v4, %v3532_v1  ;;  %v7841_v4 = vld [vmem:[#allocation3 + $0x110] sm:$0xff] }
 0x4eb   : > { %5096 = vmatprep.mubr.msk.f32.mxu1 %vm4142_vm0, %v4105_v17  ;;  %v4073_v35 = vsel %vm4067_vm14, %v4040_v47, %v3660_v49  ;;  %v2739_v17 = vld [vmem:[#allocation3 + $0xfa] sm:$0xff] }
 0x4ec   : > { %v3406_v60 = vpop.permute.xlu1 %3405  ;;  %v3280_v26 = vpop.permute.xlu0 %3279 }
 0x4ed   : > { %v4008_v0 = vsel %vm4001_vm12, %v3975_v50, %v3406_v60  ;;  %v3976_v54 = vsel %vm1835_vm9, %v3944_v33, %v3280_v26  ;;  %v3913_v60 = vsel %vm1703_vm5, %v3881_v6, %v7495_v62  ;;  %v2837_v6 = vld [vmem:[#allocation3 + $0x122] sm:$0xff] }
 0x4ee   : > { %3425 = vrot.lane.b32.xlu1 %v2736_v48, %s5234_s16  ;;  %3299 = vrot.lane.b32.xlu0 %v2800_v21, %s5233_s9  ;;  %v3945_v26 = vsel %vm1769_vm7, %v3913_v60, %v7625_v40  ;;  %v2806_v60 = vld [vmem:[#allocation3 + $0x129] sm:$0xff] }
 0x4f0   : > { %v3408_v56 = vpop.permute.xlu1 %3407  ;;  %v3788_v61 = vpop.permute.xlu0 %3787 }
 0x4f1   : > { %v4106_v2 = vsel %vm4100_vm15, %v4073_v35, %v3788_v61  ;;  %v4009_v9 = vsel %vm4001_vm12, %v3976_v54, %v3408_v56 }
 0x4f2   : > { %3427 = vrot.lane.b32.xlu1 %v2737_v52, %s5234_s16  ;;  %3807 = vrot.lane.b32.xlu0 %v2737_v52, %s5237_s6 }
 0x4f3   : > { %5097 = vmatmul.mubr.msk.f32.gmra.mrb[2].mxu1 %vm4142_vm0, %v4106_v2  ;;  %v3882_v2 = vsel %vm1637_vm2, %v7350_v10, %v7322_v13 }
 0x4f4   : > { %v3536_v45 = vpop.permute.xlu1 %3535  ;;  %v3534_v63 = vpop.permute.xlu0 %3533  ;;  %v3914_v52 = vsel %vm1703_vm5, %v3882_v2, %v7493_v19  ;;  %v2680_v2 = vld [vmem:[#allocation3 + $0x138] sm:$0xff] }
 0x4f5   : > { %v4041_v34 = vsel %vm4034_vm13, %v4008_v0, %v3534_v63  ;;  %v4042_v29 = vsel %vm4034_vm13, %v4009_v9, %v3536_v45  ;;  %v3946_v45 = vsel %vm1769_vm7, %v3914_v52, %v7623_v15  ;;  %v8808_v52 = vld [vmem:[#allocation5_spill] sm:$0xff] }
 0x4f6   : > { %3173 = vrot.lane.b32.xlu1 %v7780_v41, %s5231_s7  ;;  %3553 = vrot.lane.b32.xlu0 %v7780_v41, %s5235_s21 }
 0x4f8   : > { %v3282_v31 = vpop.permute.xlu1 %3281  ;;  %v3662_v36 = vpop.permute.xlu0 %3661 }
 0x4f9   : > { %v4074_v55 = vsel %vm4067_vm14, %v4041_v34, %v3662_v36  ;;  %v3977_v47 = vsel %vm1835_vm9, %v3945_v26, %v3282_v31  ;;  %v2804_v31 = vld [vmem:[#allocation3 + $0x111] sm:$0xff] }
 0x4fa   : > { %3681 = vrot.lane.b32.xlu1 %v2801_v14, %s5236_s30  ;;  %3555 = vrot.lane.b32.xlu0 %v7793_v16, %s5235_s21  ;;  %v2741_v34 = vld [vmem:[#allocation3 + $0x112] sm:$0xff] }
 0x4fc   : > { %v3790_v1 = vpop.permute.xlu1 %3789  ;;  %v3664_v51 = vpop.permute.xlu0 %3663 }
 0x4fd   : > { %v4107_v11 = vsel %vm4100_vm15, %v4074_v55, %v3790_v1  ;;  %v4075_v42 = vsel %vm4067_vm14, %v4042_v29, %v3664_v51  ;;  %v7874_v51 = vld [vmem:[#allocation3 + $0x120] sm:$0xff] }
 0x4fe   : > { %3301 = vrot.lane.b32.xlu1 %v2801_v14, %s5233_s9  ;;  %3175 = vrot.lane.b32.xlu0 %v7793_v16, %s5231_s7 }
 0x4ff   : > { %5099 = vmatprep.mubr.msk.f32.mxu1 %vm4142_vm0, %v4107_v11  ;;  %v3883_v11 = vsel %vm1637_vm2, %v7364_v24, %v7336_v8 }
 0x500   : > { %v3410_v5 = vpop.permute.xlu1 %3409  ;;  %v3284_v20 = vpop.permute.xlu0 %3283  ;;  %v3915_v28 = vsel %vm1703_vm5, %v3883_v11, %v7503_v53  ;;  %v8812_v11 = vld [vmem:[#allocation71_spill] sm:$0xff] }
 0x501   : > { %v4010_v43 = vsel %vm4001_vm12, %v3977_v47, %v3410_v5  ;;  %v3978_v25 = vsel %vm1835_vm9, %v3946_v45, %v3284_v20  ;;  %v7888_v20 = vld [vmem:[#allocation3 + $0x128] sm:$0xff]  ;;  %v8809_v45 = vld [vmem:[#allocation89_spill] sm:$0xff] }
 0x502   : > { %3809 = vrot.lane.b32.xlu1 %v2833_v57, %s5237_s6  ;;  %3683 = vrot.lane.b32.xlu0 %v2802_v27, %s5236_s30 }
 0x504   : > { %v3412_v37 = vpop.permute.xlu1 %3411  ;;  %v3792_v58 = vpop.permute.xlu0 %3791 }
 0x505   : > { %v4108_v3 = vsel %vm4100_vm15, %v4075_v42, %v3792_v58  ;;  %v4011_v13 = vsel %vm4001_vm12, %v3978_v25, %v3412_v37  ;;  %v8805_v42 = vld [vmem:[#allocation31_spill] sm:$0xff]  ;;  %v8806_v37 = vld [vmem:[#allocation10_spill] sm:$0xff] }
 0x506   : > { %3429 = vrot.lane.b32.xlu1 %v2833_v57, %s5234_s16  ;;  %3303 = vrot.lane.b32.xlu0 %v2802_v27, %s5233_s9  ;;  %v2805_v57 = vld [vmem:[#allocation3 + $0x121] sm:$0xff]  ;;  %v3884_v58 = vsel %vm1637_vm2, %v8806_v37, %v8805_v42 }
 0x507   : > { %5100 = vmatmul.mubr.msk.f32.gmra.mrb[4].mxu1 %vm4142_vm0, %v4108_v3  ;;  %v8807_v3 = vld [vmem:[#allocation64_spill] sm:$0xff] }
 0x508   : > { %v3158_v22 = vpop.permute.xlu1 %3157  ;;  %v3538_v49 = vpop.permute.xlu0 %3537 }
 0x509   : > { %v4043_v62 = vsel %vm4034_vm13, %v4010_v43, %v3538_v49  ;;  %v3947_v7 = vsel %vm1769_vm7, %v3915_v28, %v3158_v22  ;;  %v3916_v22 = vsel %vm1703_vm5, %v3884_v58, %v8807_v3 }
 0x50a   : > { %3431 = vrot.lane.b32.xlu1 %v2739_v17, %s5234_s16  ;;  %3811 = vrot.lane.b32.xlu0 %v2739_v17, %s5237_s6 }
 0x50c   : > { %v3666_v21 = vpop.permute.xlu1 %3665  ;;  %v3540_v23 = vpop.permute.xlu0 %3539 }
 0x50d   : > { %v4076_v35 = vsel %vm4067_vm14, %v4043_v62, %v3666_v21  ;;  %v4044_v10 = vsel %vm4034_vm13, %v4011_v13, %v3540_v23 }
 0x50e   : > { %3177 = vrot.lane.b32.xlu1 %v7826_v44, %s5231_s7  ;;  %3557 = vrot.lane.b32.xlu0 %v7826_v44, %s5235_s21 }
 0x510   : > { %v3286_v38 = vpop.permute.xlu1 %3285  ;;  %v7839_v48 = vpop.permute.xlu0 %3159 }
 0x511   : > { %v3979_v54 = vsel %vm1835_vm9, %v3947_v7, %v3286_v38  ;;  %v3948_v49 = vsel %vm1769_vm7, %v3916_v22, %v7839_v48  ;;  %v8813_v7 = vld [vmem:[#allocation85_spill] sm:$0xff] }
 0x512   : > { %3685 = vrot.lane.b32.xlu1 %v2803_v59, %s5236_s30  ;;  %3559 = vrot.lane.b32.xlu0 %v7841_v4, %s5235_s21 }
 0x514   : > { %v3794_v40 = vpop.permute.xlu1 %3793  ;;  %v3668_v56 = vpop.permute.xlu0 %3667 }
 0x515   : > { %v4109_v61 = vsel %vm4100_vm15, %v4076_v35, %v3794_v40  ;;  %v4077_v19 = vsel %vm4067_vm14, %v4044_v10, %v3668_v56  ;;  %v2743_v40 = vld [vmem:[#allocation3 + $0x12a] sm:$0xff] }
 0x516   : > { %3305 = vrot.lane.b32.xlu1 %v2803_v59, %s5233_s9  ;;  %3179 = vrot.lane.b32.xlu0 %v7841_v4, %s5231_s7 }
 0x517   : > { %5102 = vmatprep.mubr.msk.f32.mxu1 %vm4142_vm0, %v4109_v61 }
 0x518   : > { %v3414_v63 = vpop.permute.xlu1 %3413  ;;  %v3288_v46 = vpop.permute.xlu0 %3287 }
 0x519   : > { %v4012_v8 = vsel %vm4001_vm12, %v3979_v54, %v3414_v63  ;;  %v3980_v23 = vsel %vm1835_vm9, %v3948_v49, %v3288_v46  ;;  %v3885_v63 = vsel %vm1637_vm2, %v8809_v45, %v8808_v52  ;;  %v8810_v46 = vld [vmem:[#allocation20_spill] sm:$0xff]  ;;  %v2745_v49 = vld [vmem:[#allocation3 + $0x142] sm:$0xff] }
 0x51a   : > { %3813 = vrot.lane.b32.xlu1 %v2835_v18, %s5237_s6  ;;  %3687 = vrot.lane.b32.xlu0 %v2804_v31, %s5236_s30  ;;  %v3917_v25 = vsel %vm1703_vm5, %v3885_v63, %v8810_v46  ;;  %v8817_v46 = vld [vmem:[#allocation38_spill] sm:$0xff] }
 0x51c   : > { %v3416_v36 = vpop.permute.xlu1 %3415  ;;  %v3796_v50 = vpop.permute.xlu0 %3795 }
 0x51d   : > { %v4110_v15 = vsel %vm4100_vm15, %v4077_v19, %v3796_v50  ;;  %v4013_v26 = vsel %vm4001_vm12, %v3980_v23, %v3416_v36  ;;  %v2807_v19 = vld [vmem:[#allocation3 + $0x139] sm:$0xff]  ;;  %v2682_v23 = vld [vmem:[#allocation3 + $0x150] sm:$0xff] }
 0x51e   : > { %3433 = vrot.lane.b32.xlu1 %v2835_v18, %s5234_s16  ;;  %3307 = vrot.lane.b32.xlu0 %v2804_v31, %s5233_s9  ;;  %v2776_v36 = vld [vmem:[#allocation3 + $0x140] sm:$0xff] }
 0x51f   : > { %5103 = vmatmul.mubr.msk.f32.gmra.mrb[6].mxu1 %vm4142_vm0, %v4110_v15 }
 0x520   : > { %v3162_v14 = vpop.permute.xlu1 %3161  ;;  %v3542_v0 = vpop.permute.xlu0 %3541 }
 0x521   : > { %v4045_v24 = vsel %vm4034_vm13, %v4012_v8, %v3542_v0  ;;  %v3949_v18 = vsel %vm1769_vm7, %v3917_v25, %v3162_v14  ;;  %v8818_v25 = vld [vmem:[#allocation23_spill] sm:$0xff] }
 0x522   : > { %3435 = vrot.lane.b32.xlu1 %v2741_v34, %s5234_s16  ;;  %3815 = vrot.lane.b32.xlu0 %v2741_v34, %s5237_s6 }
 0x524   : > { %v3670_v55 = vpop.permute.xlu1 %3669  ;;  %v3544_v1 = vpop.permute.xlu0 %3543 }
 0x525   : > { %v4078_v53 = vsel %vm4067_vm14, %v4045_v24, %v3670_v55  ;;  %v4046_v38 = vsel %vm4034_vm13, %v4013_v26, %v3544_v1  ;;  %v8811_v1 = vld [vmem:[#allocation4_spill] sm:$0xff] }
 0x526   : > { %3181 = vrot.lane.b32.xlu1 %v7874_v51, %s5231_s7  ;;  %3561 = vrot.lane.b32.xlu0 %v7874_v51, %s5235_s21  ;;  %v3886_v28 = vsel %vm1637_vm2, %v8812_v11, %v8811_v1 }
 0x528   : > { %v3290_v33 = vpop.permute.xlu1 %3289  ;;  %v7886_v5 = vpop.permute.xlu0 %3163 }
 0x529   : > { %v3981_v10 = vsel %vm1835_vm9, %v3949_v18, %v3290_v33  ;;  %v3918_v33 = vsel %vm1703_vm5, %v3886_v28, %v8813_v7  ;;  %v3888_v18 = vsel %vm1637_vm2, %v8818_v25, %v8817_v46  ;;  %v2749_v25 = vld [vmem:[#allocation3 + $0x172] sm:$0xff] }
 0x52a   : > { %3689 = vrot.lane.b32.xlu1 %v2805_v57, %s5236_s30  ;;  %3563 = vrot.lane.b32.xlu0 %v7888_v20, %s5235_s21  ;;  %v3950_v54 = vsel %vm1769_vm7, %v3918_v33, %v7886_v5 }
 0x52c   : > { %v3798_v27 = vpop.permute.xlu1 %3797  ;;  %v3672_v9 = vpop.permute.xlu0 %3671 }
 0x52d   : > { %v4111_v29 = vsel %vm4100_vm15, %v4078_v53, %v3798_v27  ;;  %v4079_v47 = vsel %vm4067_vm14, %v4046_v38, %v3672_v9  ;;  %v2839_v53 = vld [vmem:[#allocation3 + $0x13a] sm:$0xff]  ;;  %v8816_v38 = vld [vmem:[#allocation67_spill] sm:$0xff] }
 0x52e   : > { %3309 = vrot.lane.b32.xlu1 %v2805_v57, %s5233_s9  ;;  %3183 = vrot.lane.b32.xlu0 %v7888_v20, %s5231_s7  ;;  %v2808_v27 = vld [vmem:[#allocation3 + $0x141] sm:$0xff] }
 0x52f   : > { %5105 = vmatprep.mubr.msk.f32.mxu1 %vm4142_vm0, %v4111_v29 }
 0x530   : > { %v3418_v17 = vpop.permute.xlu1 %3417  ;;  %v3292_v21 = vpop.permute.xlu0 %3291 }
 0x531   : > { %v4014_v50 = vsel %vm4001_vm12, %v3981_v10, %v3418_v17  ;;  %v3982_v24 = vsel %vm1835_vm9, %v3950_v54, %v3292_v21  ;;  %v2747_v54 = vld [vmem:[#allocation3 + $0x15a] sm:$0xff] }
 0x532   : > { %3817 = vrot.lane.b32.xlu1 %v2837_v6, %s5237_s6  ;;  %3691 = vrot.lane.b32.xlu0 %v2806_v60, %s5236_s30 }
 0x534   : > { %v3420_v59 = vpop.permute.xlu1 %3419  ;;  %v3800_v43 = vpop.permute.xlu0 %3799 }
 0x535   : > { %v4112_v48 = vsel %vm4100_vm15, %v4079_v47, %v3800_v43  ;;  %v4015_v9 = vsel %vm4001_vm12, %v3982_v24, %v3420_v59  ;;  %v2684_v24 = vld [vmem:[#allocation3 + $0x168] sm:$0xff] }
 0x536   : > { %3437 = vrot.lane.b32.xlu1 %v2837_v6, %s5234_s16  ;;  %3311 = vrot.lane.b32.xlu0 %v2806_v60, %s5233_s9  ;;  %v8814_v6 = vld [vmem:[#allocation6_spill] sm:$0xff]  ;;  %v8815_v60 = vld [vmem:[#allocation92_spill] sm:$0xff] }
 0x537   : > { %5106 = vmatmul.mubr.msk.f32.gmra.mrb[8].mxu1 %vm4142_vm0, %v4112_v48  ;;  %v3887_v26 = vsel %vm1637_vm2, %v8815_v60, %v8814_v6  ;;  %v8822_v60 = vld [vmem:[#allocation8_spill] sm:$0xff] }
 0x538   : > { %v3166_v62 = vpop.permute.xlu1 %3165  ;;  %v3546_v35 = vpop.permute.xlu0 %3545  ;;  %v3919_v47 = vsel %vm1703_vm5, %v3887_v26, %v8816_v38  ;;  %v3890_v26 = vsel %vm1637_vm2, %v7672_v12, %v8822_v60  ;;  %v8823_v38 = vld [vmem:[#allocation88_spill] sm:$0xff]  ;;  %v2783_v60 = vld [vmem:[#allocation3 + $0x198] sm:$0xff] }
 0x539   : > { %v4047_v15 = vsel %vm4034_vm13, %v4014_v50, %v3546_v35  ;;  %v3951_v59 = vsel %vm1769_vm7, %v3919_v47, %v3166_v62  ;;  %v3922_v47 = vsel %vm1703_vm5, %v3890_v26, %v8823_v38 }
 0x53a   : > { %3439 = vrot.lane.b32.xlu1 %v2743_v40, %s5234_s16  ;;  %3819 = vrot.lane.b32.xlu0 %v2743_v40, %s5237_s6  ;;  %v2809_v40 = vld [vmem:[#allocation3 + $0x151] sm:$0xff] }
 0x53c   : > { %v3674_v56 = vpop.permute.xlu1 %3673  ;;  %v3548_v61 = vpop.permute.xlu0 %3547 }
 0x53d   : > { %v4080_v0 = vsel %vm4067_vm14, %v4047_v15, %v3674_v56  ;;  %v4048_v29 = vsel %vm4034_vm13, %v4015_v9, %v3548_v61  ;;  %v2778_v56 = vld [vmem:[#allocation3 + $0x158] sm:$0xff]  ;;  %v8821_v9 = vld [vmem:[#allocation19_spill] sm:$0xff] }
 0x53e   : > { %3185 = vrot.lane.b32.xlu1 %v2680_v2, %s5231_s7  ;;  %3565 = vrot.lane.b32.xlu0 %v2680_v2, %s5235_s21 }
 0x540   : > { %v3294_v31 = vpop.permute.xlu1 %3293  ;;  %v7929_v13 = vpop.permute.xlu0 %3167 }
 0x541   : > { %v3983_v35 = vsel %vm1835_vm9, %v3951_v59, %v3294_v31  ;;  %v8819_v31 = vld [vmem:[#allocation44_spill] sm:$0xff] }
 0x542   : > { %3693 = vrot.lane.b32.xlu1 %v2807_v19, %s5236_s30  ;;  %3567 = vrot.lane.b32.xlu0 %v2776_v36, %s5235_s21  ;;  %v3920_v10 = vsel %vm1703_vm5, %v3888_v18, %v8819_v31 }
 0x544   : > { %v3802_v34 = vpop.permute.xlu1 %3801  ;;  %v3676_v55 = vpop.permute.xlu0 %3675 }
 0x545   : > { %v4113_v14 = vsel %vm4100_vm15, %v4080_v0, %v3802_v34  ;;  %v4081_v42 = vsel %vm4067_vm14, %v4048_v29, %v3676_v55  ;;  %v2841_v0 = vld [vmem:[#allocation3 + $0x152] sm:$0xff] }
 0x546   : > { %3313 = vrot.lane.b32.xlu1 %v2807_v19, %s5233_s9  ;;  %3187 = vrot.lane.b32.xlu0 %v2776_v36, %s5231_s7  ;;  %v3952_v19 = vsel %vm1769_vm7, %v3920_v10, %v7929_v13  ;;  %v2810_v34 = vld [vmem:[#allocation3 + $0x159] sm:$0xff] }
 0x547   : > { %5108 = vmatprep.mubr.msk.f32.mxu1 %vm4142_vm0, %v4113_v14  ;;  %v2686_v10 = vld [vmem:[#allocation3 + $0x180] sm:$0xff] }
 0x548   : > { %v3422_v57 = vpop.permute.xlu1 %3421  ;;  %v3296_v8 = vpop.permute.xlu0 %3295 }
 0x549   : > { %v4016_v61 = vsel %vm4001_vm12, %v3983_v35, %v3422_v57  ;;  %v3984_v15 = vsel %vm1835_vm9, %v3952_v19, %v3296_v8  ;;  %v8824_v19 = vld [vmem:[#allocation7_spill] sm:$0xff] }
 0x54a   : > { %3821 = vrot.lane.b32.xlu1 %v2839_v53, %s5237_s6  ;;  %3695 = vrot.lane.b32.xlu0 %v2808_v27, %s5236_s30 }
 0x54c   : > { %v3424_v37 = vpop.permute.xlu1 %3423  ;;  %v3804_v58 = vpop.permute.xlu0 %3803 }
 0x54d   : > { %v4114_v5 = vsel %vm4100_vm15, %v4081_v42, %v3804_v58  ;;  %v4017_v55 = vsel %vm4001_vm12, %v3984_v15, %v3424_v37 }
 0x54e   : > { %3441 = vrot.lane.b32.xlu1 %v2839_v53, %s5234_s16  ;;  %3315 = vrot.lane.b32.xlu0 %v2808_v27, %s5233_s9  ;;  %v8820_v53 = vld [vmem:[#allocation14_spill] sm:$0xff] }
 0x54f   : > { %5109 = vmatmul.mubr.msk.f32.gmra.mrb[10].mxu1 %vm4142_vm0, %v4114_v5  ;;  %v3889_v27 = vsel %vm1637_vm2, %v7662_v32, %v8820_v53 }
 0x550   : > { %v3170_v3 = vpop.permute.xlu1 %3169  ;;  %v3550_v22 = vpop.permute.xlu0 %3549  ;;  %v3921_v29 = vsel %vm1703_vm5, %v3889_v27, %v8821_v9 }
 0x551   : > { %v4049_v2 = vsel %vm4034_vm13, %v4016_v61, %v3550_v22  ;;  %v3953_v42 = vsel %vm1769_vm7, %v3921_v29, %v3170_v3  ;;  %v2811_v22 = vld [vmem:[#allocation3 + $0x169] sm:$0xff]  ;;  %v2812_v61 = vld [vmem:[#allocation3 + $0x171] sm:$0xff] }
 0x552   : > { %3443 = vrot.lane.b32.xlu1 %v2745_v49, %s5234_s16  ;;  %3823 = vrot.lane.b32.xlu0 %v2745_v49, %s5237_s6  ;;  %v2780_v49 = vld [vmem:[#allocation3 + $0x170] sm:$0xff] }
 0x554   : > { %v3678_v17 = vpop.permute.xlu1 %3677  ;;  %v3552_v21 = vpop.permute.xlu0 %3551 }
 0x555   : > { %v4082_v52 = vsel %vm4067_vm14, %v4049_v2, %v3678_v17  ;;  %v4050_v14 = vsel %vm4034_vm13, %v4017_v55, %v3552_v21 }
 0x556   : > { %3189 = vrot.lane.b32.xlu1 %v2682_v23, %s5231_s7  ;;  %3569 = vrot.lane.b32.xlu0 %v2682_v23, %s5235_s21 }
 0x558   : > { %v3298_v43 = vpop.permute.xlu1 %3297  ;;  %v7968_v48 = vpop.permute.xlu0 %3171 }
 0x559   : > { %v3985_v5 = vsel %vm1835_vm9, %v3953_v42, %v3298_v43  ;;  %v3954_v59 = vsel %vm1769_vm7, %v3922_v47, %v7968_v48  ;;  %v8828_v47 = vld [vmem:[#allocation9_spill] sm:$0xff] }
 0x55a   : > { %3697 = vrot.lane.b32.xlu1 %v2809_v40, %s5236_s30  ;;  %3571 = vrot.lane.b32.xlu0 %v2778_v56, %s5235_s21 }
 0x55c   : > { %v3806_v45 = vpop.permute.xlu1 %3805  ;;  %v3680_v63 = vpop.permute.xlu0 %3679 }
 0x55d   : > { %v4115_v62 = vsel %vm4100_vm15, %v4082_v52, %v3806_v45  ;;  %v4083_v1 = vsel %vm4067_vm14, %v4050_v14, %v3680_v63 }
 0x55e   : > { %3317 = vrot.lane.b32.xlu1 %v2809_v40, %s5233_s9  ;;  %3191 = vrot.lane.b32.xlu0 %v2778_v56, %s5231_s7  ;;  %v2843_v56 = vld [vmem:[#allocation3 + $0x16a] sm:$0xff] }
 0x55f   : > { %5111 = vmatprep.mubr.msk.f32.mxu1 %vm4142_vm0, %v4115_v62 }
 0x560   : > { %v3426_v36 = vpop.permute.xlu1 %3425  ;;  %v3300_v50 = vpop.permute.xlu0 %3299 }
 0x561   : > { %v4018_v17 = vsel %vm4001_vm12, %v3985_v5, %v3426_v36  ;;  %v3986_v40 = vsel %vm1835_vm9, %v3954_v59, %v3300_v50  ;;  %v3891_v36 = vsel %vm1637_vm2, %v7731_v30, %v8824_v19  ;;  %v8825_v50 = vld [vmem:[#allocation66_spill] sm:$0xff]  ;;  %v2814_v5 = vld [vmem:[#allocation3 + $0x189] sm:$0xff]  ;;  %v3893_v59 = vsel %vm1637_vm2, %v7780_v41, %v8828_v47 }
 0x562   : > { %3825 = vrot.lane.b32.xlu1 %v2841_v0, %s5237_s6  ;;  %3699 = vrot.lane.b32.xlu0 %v2810_v34, %s5236_s30  ;;  %v3923_v15 = vsel %vm1703_vm5, %v3891_v36, %v8825_v50  ;;  %v8831_v36 = vld [vmem:[#allocation62_spill] sm:$0xff] }
 0x564   : > { %v3428_v11 = vpop.permute.xlu1 %3427  ;;  %v3808_v28 = vpop.permute.xlu0 %3807 }
 0x565   : > { %v4116_v13 = vsel %vm4100_vm15, %v4083_v1, %v3808_v28  ;;  %v4019_v12 = vsel %vm4001_vm12, %v3986_v40, %v3428_v11  ;;  %v2813_v1 = vld [vmem:[#allocation3 + $0x181] sm:$0xff] }
 0x566   : > { %3445 = vrot.lane.b32.xlu1 %v2841_v0, %s5234_s16  ;;  %3319 = vrot.lane.b32.xlu0 %v2810_v34, %s5233_s9  ;;  %v2782_v11 = vld [vmem:[#allocation3 + $0x188] sm:$0xff] }
 0x567   : > { %5112 = vmatmul.mubr.msk.f32.gmra.mrb[12].mxu1 %vm4142_vm0, %v4116_v13  ;;  %v2816_v40 = vld [vmem:[#allocation3 + $0x1a1] sm:$0xff] }
 0x568   : > { %v3174_v7 = vpop.permute.xlu1 %3173  ;;  %v3554_v33 = vpop.permute.xlu0 %3553 }
 0x569   : > { %v4051_v32 = vsel %vm4034_vm13, %v4018_v17, %v3554_v33  ;;  %v3955_v0 = vsel %vm1769_vm7, %v3923_v15, %v3174_v7 }
 0x56a   : > { %3447 = vrot.lane.b32.xlu1 %v2747_v54, %s5234_s16  ;;  %3827 = vrot.lane.b32.xlu0 %v2747_v54, %s5237_s6 }
 0x56c   : > { %v3682_v57 = vpop.permute.xlu1 %3681  ;;  %v3556_v8 = vpop.permute.xlu0 %3555 }
 0x56d   : > { %v4084_v21 = vsel %vm4067_vm14, %v4051_v32, %v3682_v57  ;;  %v4052_v2 = vsel %vm4034_vm13, %v4019_v12, %v3556_v8  ;;  %v8826_v57 = vld [vmem:[#allocation40_spill] sm:$0xff] }
 0x56e   : > { %3193 = vrot.lane.b32.xlu1 %v2684_v24, %s5231_s7  ;;  %3573 = vrot.lane.b32.xlu0 %v2684_v24, %s5235_s21  ;;  %v3892_v8 = vsel %vm1637_vm2, %v7739_v39, %v8826_v57  ;;  %v8827_v24 = vld [vmem:[#allocation43_spill] sm:$0xff] }
 0x56f   : > { %v3924_v53 = vsel %vm1703_vm5, %v3892_v8, %v8827_v24 }
 0x570   : > { %v3302_v37 = vpop.permute.xlu1 %3301  ;;  %v8007_v58 = vpop.permute.xlu0 %3175 }
 0x571   : > { %v3987_v14 = vsel %vm1835_vm9, %v3955_v0, %v3302_v37  ;;  %v3956_v27 = vsel %vm1769_vm7, %v3924_v53, %v8007_v58  ;;  %v2845_v37 = vld [vmem:[#allocation3 + $0x182] sm:$0xff] }
 0x572   : > { %3701 = vrot.lane.b32.xlu1 %v2811_v22, %s5236_s30  ;;  %3575 = vrot.lane.b32.xlu0 %v2780_v49, %s5235_s21 }
 0x574   : > { %v3810_v23 = vpop.permute.xlu1 %3809  ;;  %v3684_v6 = vpop.permute.xlu0 %3683 }
 0x575   : > { %v4117_v3 = vsel %vm4100_vm15, %v4084_v21, %v3810_v23  ;;  %v4085_v52 = vsel %vm4067_vm14, %v4052_v2, %v3684_v6  ;;  %v2751_v6 = vld [vmem:[#allocation3 + $0x18a] sm:$0xff] }
 0x576   : > { %3321 = vrot.lane.b32.xlu1 %v2811_v22, %s5233_s9  ;;  %3195 = vrot.lane.b32.xlu0 %v2780_v49, %s5231_s7 }
 0x577   : > { %5114 = vmatprep.mubr.msk.f32.mxu1 %vm4142_vm0, %v4117_v3  ;;  %v2784_v3 = vld [vmem:[#allocation3 + $0x1a0] sm:$0xff] }
 0x578   : > { %v3430_v43 = vpop.permute.xlu1 %3429  ;;  %v3304_v35 = vpop.permute.xlu0 %3303 }
 0x579   : > { %v4020_v28 = vsel %vm4001_vm12, %v3987_v14, %v3430_v43  ;;  %v3988_v42 = vsel %vm1835_vm9, %v3956_v27, %v3304_v35  ;;  %v8829_v43 = vld [vmem:[#allocation87_spill] sm:$0xff] }
 0x57a   : > { %3829 = vrot.lane.b32.xlu1 %v2843_v56, %s5237_s6  ;;  %3703 = vrot.lane.b32.xlu0 %v2812_v61, %s5236_s30  ;;  %v3925_v35 = vsel %vm1703_vm5, %v3893_v59, %v8829_v43 }
 0x57c   : > { %v3432_v45 = vpop.permute.xlu1 %3431  ;;  %v3812_v63 = vpop.permute.xlu0 %3811 }
 0x57d   : > { %v4118_v48 = vsel %vm4100_vm15, %v4085_v52, %v3812_v63  ;;  %v4021_v39 = vsel %vm4001_vm12, %v3988_v42, %v3432_v45  ;;  %v2848_v63 = vld [vmem:[#allocation3 + $0x1a2] sm:$0xff] }
 0x57e   : > { %3449 = vrot.lane.b32.xlu1 %v2843_v56, %s5234_s16  ;;  %3323 = vrot.lane.b32.xlu0 %v2812_v61, %s5233_s9  ;;  %v2815_v56 = vld [vmem:[#allocation3 + $0x199] sm:$0xff] }
 0x57f   : > { %5115 = vmatmul.mubr.msk.f32.gmra.mrb[14].mxu1 %vm4142_vm0, %v4118_v48  ;;  %v2847_v48 = vld [vmem:[#allocation3 + $0x19a] sm:$0xff] }
 0x580   : > { %v8036_v62 = vpop.permute.xlu1 %3177  ;;  %v3558_v46 = vpop.permute.xlu0 %3557 }
 0x581   : > { %v4053_v30 = vsel %vm4034_vm13, %v4020_v28, %v3558_v46  ;;  %v3957_v61 = vsel %vm1769_vm7, %v3925_v35, %v8036_v62 }
 0x582   : > { %3451 = vrot.lane.b32.xlu1 %v2749_v25, %s5234_s16  ;;  %3831 = vrot.lane.b32.xlu0 %v2749_v25, %s5237_s6 }
 0x584   : > { %v3686_v18 = vpop.permute.xlu1 %3685  ;;  %v3560_v31 = vpop.permute.xlu0 %3559 }
 0x585   : > { %v4086_v13 = vsel %vm4067_vm14, %v4053_v30, %v3686_v18  ;;  %v4054_v22 = vsel %vm4034_vm13, %v4021_v39, %v3560_v31  ;;  %v8830_v31 = vld [vmem:[#allocation11_spill] sm:$0xff] }
 0x586   : > { %3197 = vrot.lane.b32.xlu1 %v2686_v10, %s5231_s7  ;;  %3577 = vrot.lane.b32.xlu0 %v2686_v10, %s5235_s21  ;;  %v3894_v10 = vsel %vm1637_vm2, %v7793_v16, %v8830_v31 }
 0x587   : > { %v3926_v50 = vsel %vm1703_vm5, %v3894_v10, %v8831_v36 }
 0x588   : > { %v3306_v34 = vpop.permute.xlu1 %3305  ;;  %v8048_v55 = vpop.permute.xlu0 %3179 }
 0x589   : > { %v3989_v52 = vsel %vm1835_vm9, %v3957_v61, %v3306_v34  ;;  %v3958_v16 = vsel %vm1769_vm7, %v3926_v50, %v8048_v55 }
 0x58a   : > { %3705 = vrot.lane.b32.xlu1 %v2813_v1, %s5236_s30  ;;  %3579 = vrot.lane.b32.xlu0 %v2782_v11, %s5235_s21 }
 0x58c   : > { %v3814_v33 = vpop.permute.xlu1 %3813  ;;  %v3688_v54 = vpop.permute.xlu0 %3687 }
 0x58d   : > { %v4119_v7 = vsel %vm4100_vm15, %v4086_v13, %v3814_v33  ;;  %v4087_v49 = vsel %vm4067_vm14, %v4054_v22, %v3688_v54 }
 0x58e   : > { %3325 = vrot.lane.b32.xlu1 %v2813_v1, %s5233_s9  ;;  %3199 = vrot.lane.b32.xlu0 %v2782_v11, %s5231_s7  ;;  %s4935_s7 = sshll.u32 %s8853_s13, 4 }
 0x58f   : > { %5117 = vmatprep.mubr.msk.f32.mxu1 %vm4142_vm0, %v4119_v7  ;;  %s170_s10 = scalar_lea.vmem %s8539_s3, %s4935_s7 }
 0x590   : > { %v3434_v9 = vpop.permute.xlu1 %3433  ;;  %v3308_v29 = vpop.permute.xlu0 %3307 }
 0x591   : > { %v4022_v45 = vsel %vm4001_vm12, %v3989_v52, %v3434_v9  ;;  %v3990_v30 = vsel %vm1835_vm9, %v3958_v16, %v3308_v29 }
 0x592   : > { %3833 = vrot.lane.b32.xlu1 %v2845_v37, %s5237_s6  ;;  %3707 = vrot.lane.b32.xlu0 %v2814_v5, %s5236_s30 }
 0x594   : > { %v3436_v17 = vpop.permute.xlu1 %3435  ;;  %v3816_v32 = vpop.permute.xlu0 %3815 }
 0x595   : > { %v4120_v58 = vsel %vm4100_vm15, %v4087_v49, %v3816_v32  ;;  %v4023_v54 = vsel %vm4001_vm12, %v3990_v30, %v3436_v17 }
 0x596   : > { %3453 = vrot.lane.b32.xlu1 %v2845_v37, %s5234_s16  ;;  %3327 = vrot.lane.b32.xlu0 %v2814_v5, %s5233_s9 }
 0x597   : > { %5118 = vmatmul.mubr.msk.f32.gmra.mrb[16].mxu1 %vm4142_vm0, %v4120_v58  ;;  %v8832_v58 = vld [vmem:[#allocation12_spill] sm:$0xff] }
 0x598   : > { %v8077_v21 = vpop.permute.xlu1 %3181  ;;  %v3562_v23 = vpop.permute.xlu0 %3561 }
 0x599   : > { %v4055_v41 = vsel %vm4034_vm13, %v4022_v45, %v3562_v23  ;;  %v3895_v23 = vsel %vm1637_vm2, %v7826_v44, %v8832_v58 }
 0x59a   : > { %3455 = vrot.lane.b32.xlu1 %v2751_v6, %s5234_s16  ;;  %3835 = vrot.lane.b32.xlu0 %v2751_v6, %s5237_s6 }
 0x59c   : > { %v3690_v26 = vpop.permute.xlu1 %3689  ;;  %v3564_v38 = vpop.permute.xlu0 %3563 }
 0x59d   : > { %v4088_v46 = vsel %vm4067_vm14, %v4055_v41, %v3690_v26  ;;  %v4056_v57 = vsel %vm4034_vm13, %v4023_v54, %v3564_v38 }
 0x59e   : > { %3583 = vrot.lane.b32.xlu1 %v2784_v3, %s5235_s21  ;;  %3581 = vrot.lane.b32.xlu0 %v2783_v60, %s5235_s21  ;;  %v8833_v60 = vld [vmem:[#allocation46_spill] sm:$0xff] }
 0x59f   : > { %v3927_v26 = vsel %vm1703_vm5, %v3895_v23, %v8833_v60 }
 0x5a0   : > { %v3310_v12 = vpop.permute.xlu1 %3309  ;;  %v8090_v2 = vpop.permute.xlu0 %3183  ;;  %v3959_v59 = vsel %vm1769_vm7, %v3927_v26, %v8077_v21 }
 0x5a2   : > { %3711 = vrot.lane.b32.xlu1 %v2816_v40, %s5236_s30  ;;  %3709 = vrot.lane.b32.xlu0 %v2815_v56, %s5236_s30  ;;  %v3991_v56 = vsel %vm1835_vm9, %v3959_v59, %v3310_v12 }
 0x5a4   : > { %v3818_v25 = vpop.permute.xlu1 %3817  ;;  %v3692_v18 = vpop.permute.xlu0 %3691 }
 0x5a5   : > { %v4121_v62 = vsel %vm4100_vm15, %v4088_v46, %v3818_v25  ;;  %v4089_v8 = vsel %vm4067_vm14, %v4056_v57, %v3692_v18  ;;  %v8834_v46 = vld [vmem:[#allocation13_spill] sm:$0xff]  ;;  %v8835_v25 = vld [vmem:[#allocation22_spill] sm:$0xff] }
 0x5a6   : > { %v8102_v19 = vpop.f32.mrb[32].mxu0  ;;  %3839 = vrot.lane.b32.xlu1 %v2848_v63, %s5237_s6  ;;  %3837 = vrot.lane.b32.xlu0 %v2847_v48, %s5237_s6  ;;  %v3896_v21 = vsel %vm1637_vm2, %v7841_v4, %v8834_v46 }
 0x5a7   : > { %v4465_v15 = vsel %vm1637_vm2, %v8102_v19, 0.0  ;;  %v4535_v0 = vmul.f32 %v8102_v19, %v8102_v19  ;;  %v8112_v34 = vpop.f32.mrb[33].mxu0  ;;  %5120 = vmatprep.mubr.msk.f32.mxu1 %vm4142_vm0, %v4121_v62  ;;  %v3928_v12 = vsel %vm1703_vm5, %v3896_v21, %v8835_v25 }
 0x5a8   : > { %v4464_v14 = vsel %vm1637_vm2, %v8112_v34, 0.0  ;;  %v4534_v1 = vmul.f32 %v8112_v34, %v8112_v34  ;;  %v3438_v11 = vpop.permute.xlu1 %3437  ;;  %v3312_v28 = vpop.permute.xlu0 %3311  ;;  %v3960_v18 = vsel %vm1769_vm7, %v3928_v12, %v8090_v2 }
 0x5a9   : > { %v4567_v13 = vsel %vm1637_vm2, %v4535_v0, 0.0  ;;  %v4466_v33 = vadd.f32 %v4465_v15, %v4464_v14  ;;  %v4024_v61 = vsel %vm4001_vm12, %v3991_v56, %v3438_v11  ;;  %v3992_v10 = vsel %vm1835_vm9, %v3960_v18, %v3312_v28 }
 0x5aa   : > { %v4566_v7 = vsel %vm1637_vm2, %v4534_v1, 0.0 }
 0x5ab   : > { %v4568_v55 = vadd.f32 %v4567_v13, %v4566_v7 }
 0x5ac   : > { %v3440_v24 = vpop.permute.xlu1 %3439  ;;  %v3820_v53 = vpop.permute.xlu0 %3819 }
 0x5ad   : > { %v4122_v27 = vsel %vm4100_vm15, %v4089_v8, %v3820_v53  ;;  %v4025_v36 = vsel %vm4001_vm12, %v3992_v10, %v3440_v24 }
 0x5ae   : > { %5121 = vmatmul.mubr.msk.f32.gmra.mrb[18].mxu1 %vm4142_vm0, %v4122_v27 }
 0x5b0   : > { %v3186_v9 = vpop.permute.xlu1 %3185  ;;  %v3566_v29 = vpop.permute.xlu0 %3565 }
 0x5b1   : > { %v4057_v52 = vsel %vm4034_vm13, %v4024_v61, %v3566_v29  ;;  %v8836_v29 = vld [vmem:[#allocation15_spill] sm:$0xff] }
 0x5b2   : > { %v8129_v42 = vpop.f32.mrb[0].mxu1 }
 0x5b3   : > { %v8131_v37 = vpop.f32.mrb[1].mxu1  ;;  %v4537_v5 = vmul.f32 %v8129_v42, %v8129_v42  ;;  %v4469_v6 = vsel %vm1637_vm2, %v8129_v42, 0.0 }
 0x5b4   : > { %v4467_v39 = vsel %vm1637_vm2, %v8131_v37, 0.0  ;;  %v4536_v22 = vmul.f32 %v8131_v37, %v8131_v37  ;;  %v3694_v49 = vpop.permute.xlu1 %3693  ;;  %v3568_v17 = vpop.permute.xlu0 %3567 }
 0x5b5   : > { %v4468_v32 = vadd.f32 %v4467_v39, %v4466_v33  ;;  %v4571_v43 = vsel %vm1637_vm2, %v4537_v5, 0.0  ;;  %v4090_v45 = vsel %vm4067_vm14, %v4057_v52, %v3694_v49  ;;  %v4058_v50 = vsel %vm4034_vm13, %v4025_v36, %v3568_v17  ;;  %v8837_v39 = vld [vmem:[#allocation90_spill] sm:$0xff] }
 0x5b6   : > { %v4569_v3 = vsel %vm1637_vm2, %v4536_v22, 0.0  ;;  %v3897_v5 = vsel %vm1637_vm2, %v7874_v51, %v8836_v29  ;;  %v8838_v51 = vld [vmem:[#allocation16_spill] sm:$0xff] }
 0x5b7   : > { %v4570_v38 = vadd.f32 %v4569_v3, %v4568_v55  ;;  %v4470_v47 = vadd.f32 %v4469_v6, %v4468_v32  ;;  %v3929_v22 = vsel %vm1703_vm5, %v3897_v5, %v8837_v39  ;;  %v2587_v5 = vld [vmem:[#allocation3 + $0x140] sm:$0xff] }
 0x5b8   : > { %v3314_v35 = vpop.permute.xlu1 %3313  ;;  %v3188_v40 = vpop.permute.xlu0 %3187  ;;  %v3961_v49 = vsel %vm1769_vm7, %v3929_v22, %v3186_v9  ;;  %v8839_v9 = vld [vmem:[#allocation69_spill] sm:$0xff]  ;;  %v8842_v22 = vld [vmem:[#allocation18_spill] sm:$0xff] }
 0x5b9   : > { %v4572_v44 = vadd.f32 %v4571_v43, %v4570_v38  ;;  %v3993_v58 = vsel %vm1835_vm9, %v3961_v49, %v3314_v35  ;;  %v3900_v49 = vsel %vm1637_vm2, %v2587_v5, %v8842_v22 }
 0x5bc   : > { %v3822_v41 = vpop.permute.xlu1 %3821  ;;  %v3696_v63 = vpop.permute.xlu0 %3695 }
 0x5bd   : > { %v4123_v48 = vsel %vm4100_vm15, %v4090_v45, %v3822_v41  ;;  %v4091_v15 = vsel %vm4067_vm14, %v4058_v50, %v3696_v63 }
 0x5be   : > { %5123 = vmatprep.mubr.msk.f32.mxu1 %vm4142_vm0, %v4123_v48 }
 0x5c0   : > { %v3442_v62 = vpop.permute.xlu1 %3441  ;;  %v3316_v31 = vpop.permute.xlu0 %3315 }
 0x5c1   : > { %v4026_v23 = vsel %vm4001_vm12, %v3993_v58, %v3442_v62 }
 0x5c4   : > { %v3444_v0 = vpop.permute.xlu1 %3443  ;;  %v3824_v4 = vpop.permute.xlu0 %3823 }
 0x5c5   : > { %v4124_v16 = vsel %vm4100_vm15, %v4091_v15, %v3824_v4 }
 0x5c6   : > { %v8168_v14 = vpop.f32.mrb[2].mxu1  ;;  %5124 = vmatmul.mubr.msk.f32.gmra.mrb[20].mxu1 %vm4142_vm0, %v4124_v16 }
 0x5c7   : > { %v8171_v1 = vpop.f32.mrb[3].mxu1  ;;  %v4539_v2 = vmul.f32 %v8168_v14, %v8168_v14  ;;  %v4473_v54 = vsel %vm1637_vm2, %v8168_v14, 0.0 }
 0x5c8   : > { %v4471_v11 = vsel %vm1637_vm2, %v8171_v1, 0.0  ;;  %v4538_v28 = vmul.f32 %v8171_v1, %v8171_v1  ;;  %v3190_v30 = vpop.permute.xlu1 %3189  ;;  %v3570_v13 = vpop.permute.xlu0 %3569 }
 0x5c9   : > { %v4472_v33 = vadd.f32 %v4471_v11, %v4470_v47  ;;  %v4575_v8 = vsel %vm1637_vm2, %v4539_v2, 0.0  ;;  %v4059_v6 = vsel %vm4034_vm13, %v4026_v23, %v3570_v13  ;;  %v3898_v47 = vsel %vm1637_vm2, %v7888_v20, %v8838_v51  ;;  %v2586_v2 = vld [vmem:[#allocation3 + $0x138] sm:$0xff]  ;;  %v8840_v11 = vld [vmem:[#allocation42_spill] sm:$0xff] }
 0x5ca   : > { %v4573_v7 = vsel %vm1637_vm2, %v4538_v28, 0.0  ;;  %v3930_v59 = vsel %vm1703_vm5, %v3898_v47, %v8839_v9  ;;  %v3899_v28 = vsel %vm1637_vm2, %v2586_v2, %v8840_v11  ;;  %v8841_v13 = vld [vmem:[#allocation21_spill] sm:$0xff] }
 0x5cb   : > { %v4574_v57 = vadd.f32 %v4573_v7, %v4572_v44  ;;  %v4474_v55 = vadd.f32 %v4473_v54, %v4472_v33  ;;  %v3962_v43 = vsel %vm1769_vm7, %v3930_v59, %v3188_v40  ;;  %v3931_v33 = vsel %vm1703_vm5, %v3899_v28, %v8841_v13 }
 0x5cc   : > { %v3698_v24 = vpop.permute.xlu1 %3697  ;;  %v3572_v53 = vpop.permute.xlu0 %3571  ;;  %v3994_v44 = vsel %vm1835_vm9, %v3962_v43, %v3316_v31  ;;  %v3963_v54 = vsel %vm1769_vm7, %v3931_v33, %v3190_v30  ;;  %v8843_v30 = vld [vmem:[#allocation63_spill] sm:$0xff] }
 0x5cd   : > { %v4576_v27 = vadd.f32 %v4575_v8, %v4574_v57  ;;  %v4092_v3 = vsel %vm4067_vm14, %v4059_v6, %v3698_v24  ;;  %v4027_v61 = vsel %vm4001_vm12, %v3994_v44, %v3444_v0  ;;  %v3932_v58 = vsel %vm1703_vm5, %v3900_v49, %v8843_v30 }
 0x5ce   : > { %v4060_v45 = vsel %vm4034_vm13, %v4027_v61, %v3572_v53 }
 0x5d0   : > { %v3318_v17 = vpop.permute.xlu1 %3317  ;;  %v3192_v32 = vpop.permute.xlu0 %3191 }
 0x5d4   : > { %v3826_v60 = vpop.permute.xlu1 %3825  ;;  %v3700_v26 = vpop.permute.xlu0 %3699 }
 0x5d5   : > { %v4125_v38 = vsel %vm4100_vm15, %v4092_v3, %v3826_v60  ;;  %v4093_v20 = vsel %vm4067_vm14, %v4060_v45, %v3700_v26 }
 0x5d6   : > { %5126 = vmatprep.mubr.msk.f32.mxu1 %vm4142_vm0, %v4125_v38 }
 0x5d8   : > { %v3446_v35 = vpop.permute.xlu1 %3445  ;;  %v3320_v56 = vpop.permute.xlu0 %3319 }
 0x5da   : > { %v8203_v52 = vpop.f32.mrb[4].mxu1 }
 0x5db   : > { %v8206_v41 = vpop.f32.mrb[5].mxu1  ;;  %v4541_v63 = vmul.f32 %v8203_v52, %v8203_v52  ;;  %v4477_v18 = vsel %vm1637_vm2, %v8203_v52, 0.0 }
 0x5dc   : > { %v4475_v40 = vsel %vm1637_vm2, %v8206_v41, 0.0  ;;  %v4540_v48 = vmul.f32 %v8206_v41, %v8206_v41  ;;  %v3448_v46 = vpop.permute.xlu1 %3447  ;;  %v3828_v21 = vpop.permute.xlu0 %3827 }
 0x5dd   : > { %v4476_v25 = vadd.f32 %v4475_v40, %v4474_v55  ;;  %v4126_v12 = vsel %vm4100_vm15, %v4093_v20, %v3828_v21  ;;  %v4579_v36 = vsel %vm1637_vm2, %v4541_v63, 0.0  ;;  %v3995_v55 = vsel %vm1835_vm9, %v3963_v54, %v3318_v17  ;;  %v2589_v54 = vld [vmem:[#allocation3 + $0x158] sm:$0xff] }
 0x5de   : > { %v4577_v62 = vsel %vm1637_vm2, %v4540_v48, 0.0  ;;  %5127 = vmatmul.mubr.msk.f32.gmra.mrb[22].mxu1 %vm4142_vm0, %v4126_v12  ;;  %v4028_v8 = vsel %vm4001_vm12, %v3995_v55, %v3446_v35  ;;  %v3964_v17 = vsel %vm1769_vm7, %v3932_v58, %v3192_v32 }
 0x5df   : > { %v4578_v31 = vadd.f32 %v4577_v62, %v4576_v27  ;;  %v4478_v10 = vadd.f32 %v4477_v18, %v4476_v25  ;;  %v3996_v3 = vsel %vm1835_vm9, %v3964_v17, %v3320_v56  ;;  %v2588_v18 = vld [vmem:[#allocation3 + $0x150] sm:$0xff]  ;;  %v8844_v62 = vld [vmem:[#allocation86_spill] sm:$0xff] }
 0x5e0   : > { %v3194_v50 = vpop.permute.xlu1 %3193  ;;  %v3574_v15 = vpop.permute.xlu0 %3573  ;;  %v4029_v60 = vsel %vm4001_vm12, %v3996_v3, %v3448_v46 }
 0x5e1   : > { %v4580_v0 = vadd.f32 %v4579_v36, %v4578_v31  ;;  %v4061_v24 = vsel %vm4034_vm13, %v4028_v8, %v3574_v15  ;;  %v3901_v31 = vsel %vm1637_vm2, %v2588_v18, %v8844_v62  ;;  %v8846_v8 = vld [vmem:[#allocation65_spill] sm:$0xff]  ;;  %v8851_v18 = vld [vmem:[#allocation48_spill] sm:$0xff] }
 0x5e4   : > { %v3702_v4 = vpop.permute.xlu1 %3701  ;;  %v3576_v16 = vpop.permute.xlu0 %3575 }
 0x5e5   : > { %v4094_v53 = vsel %vm4067_vm14, %v4061_v24, %v3702_v4  ;;  %v4062_v38 = vsel %vm4034_vm13, %v4029_v60, %v3576_v16  ;;  %v3902_v24 = vsel %vm1637_vm2, %v2589_v54, %v8846_v8 }
 0x5e8   : > { %v3322_v7 = vpop.permute.xlu1 %3321  ;;  %v3196_v57 = vpop.permute.xlu0 %3195 }
 0x5ec   : > { %v3830_v27 = vpop.permute.xlu1 %3829  ;;  %v3704_v29 = vpop.permute.xlu0 %3703 }
 0x5ed   : > { %v4127_v39 = vsel %vm4100_vm15, %v4094_v53, %v3830_v27  ;;  %v4095_v47 = vsel %vm4067_vm14, %v4062_v38, %v3704_v29 }
 0x5ee   : > { %5129 = vmatprep.mubr.msk.f32.mxu1 %vm4142_vm0, %v4127_v39 }
 0x5f0   : > { %v3450_v23 = vpop.permute.xlu1 %3449  ;;  %v3324_v6 = vpop.permute.xlu0 %3323 }
 0x5f2   : > { %v8239_v26 = vpop.f32.mrb[6].mxu1 }
 0x5f3   : > { %v8242_v51 = vpop.f32.mrb[7].mxu1  ;;  %v4543_v9 = vmul.f32 %v8239_v26, %v8239_v26  ;;  %v4481_v61 = vsel %vm1637_vm2, %v8239_v26, 0.0 }
 0x5f4   : > { %v4479_v32 = vsel %vm1637_vm2, %v8242_v51, 0.0  ;;  %v4542_v59 = vmul.f32 %v8242_v51, %v8242_v51  ;;  %v3452_v43 = vpop.permute.xlu1 %3451  ;;  %v3832_v35 = vpop.permute.xlu0 %3831 }
 0x5f5   : > { %v4480_v56 = vadd.f32 %v4479_v32, %v4478_v10  ;;  %v4128_v44 = vsel %vm4100_vm15, %v4095_v47, %v3832_v35  ;;  %v4583_v40 = vsel %vm1637_vm2, %v4543_v9, 0.0  ;;  %v8845_v10 = vld [vmem:[#allocation68_spill] sm:$0xff] }
 0x5f6   : > { %v4581_v45 = vsel %vm1637_vm2, %v4542_v59, 0.0  ;;  %5130 = vmatmul.mubr.msk.f32.gmra.mrb[24].mxu1 %vm4142_vm0, %v4128_v44  ;;  %v3933_v36 = vsel %vm1703_vm5, %v3901_v31, %v8845_v10  ;;  %v2591_v44 = vld [vmem:[#allocation3 + $0x170] sm:$0xff] }
 0x5f7   : > { %v4582_v20 = vadd.f32 %v4581_v45, %v4580_v0  ;;  %v4482_v63 = vadd.f32 %v4481_v61, %v4480_v56  ;;  %v3965_v15 = vsel %vm1769_vm7, %v3933_v36, %v3194_v50  ;;  %v8847_v50 = vld [vmem:[#allocation45_spill] sm:$0xff]  ;;  %v2590_v61 = vld [vmem:[#allocation3 + $0x168] sm:$0xff] }
 0x5f8   : > { %v3198_v48 = vpop.permute.xlu1 %3197  ;;  %v3578_v46 = vpop.permute.xlu0 %3577  ;;  %v3997_v0 = vsel %vm1835_vm9, %v3965_v15, %v3322_v7  ;;  %v3934_v53 = vsel %vm1703_vm5, %v3902_v24, %v8847_v50 }
 0x5f9   : > { %v4584_v21 = vadd.f32 %v4583_v40, %v4582_v20  ;;  %v4030_v2 = vsel %vm4001_vm12, %v3997_v0, %v3450_v23  ;;  %v3966_v7 = vsel %vm1769_vm7, %v3934_v53, %v3196_v57  ;;  %v8848_v20 = vld [vmem:[#allocation17_spill] sm:$0xff] }
 0x5fa   : > { %v4063_v11 = vsel %vm4034_vm13, %v4030_v2, %v3578_v46  ;;  %v3998_v5 = vsel %vm1835_vm9, %v3966_v7, %v3324_v6  ;;  %v8849_v40 = vld [vmem:[#allocation41_spill] sm:$0xff] }
 0x5fb   : > { %v4031_v39 = vsel %vm4001_vm12, %v3998_v5, %v3452_v43  ;;  %v3903_v46 = vsel %vm1637_vm2, %v2590_v61, %v8849_v40 }
 0x5fc   : > { %v3706_v25 = vpop.permute.xlu1 %3705  ;;  %v3580_v12 = vpop.permute.xlu0 %3579 }
 0x5fd   : > { %v4096_v28 = vsel %vm4067_vm14, %v4063_v11, %v3706_v25  ;;  %v4064_v49 = vsel %vm4034_vm13, %v4031_v39, %v3580_v12  ;;  %v8850_v25 = vld [vmem:[#allocation24_spill] sm:$0xff] }
 0x600   : > { %v3326_v4 = vpop.permute.xlu1 %3325  ;;  %v3200_v16 = vpop.permute.xlu0 %3199 }
 0x604   : > { %v3834_v13 = vpop.permute.xlu1 %3833  ;;  %v3708_v33 = vpop.permute.xlu0 %3707 }
 0x605   : > { %v4129_v55 = vsel %vm4100_vm15, %v4096_v28, %v3834_v13  ;;  %v4097_v58 = vsel %vm4067_vm14, %v4064_v49, %v3708_v33 }
 0x606   : > { %5132 = vmatprep.mubr.msk.f32.mxu1 %vm4142_vm0, %v4129_v55 }
 0x608   : > { %v3454_v27 = vpop.permute.xlu1 %3453  ;;  %v3328_v29 = vpop.permute.xlu0 %3327 }
 0x60a   : > { %v8275_v22 = vpop.f32.mrb[8].mxu1 }
 0x60b   : > { %v8278_v30 = vpop.f32.mrb[9].mxu1  ;;  %v4545_v17 = vmul.f32 %v8275_v22, %v8275_v22  ;;  %v4485_v47 = vsel %vm1637_vm2, %v8275_v22, 0.0 }
 0x60c   : > { %v4483_v57 = vsel %vm1637_vm2, %v8278_v30, 0.0  ;;  %v4544_v23 = vmul.f32 %v8278_v30, %v8278_v30  ;;  %v3456_v6 = vpop.permute.xlu1 %3455  ;;  %v3836_v3 = vpop.permute.xlu0 %3835 }
 0x60d   : > { %v4484_v60 = vadd.f32 %v4483_v57, %v4482_v63  ;;  %v4130_v38 = vsel %vm4100_vm15, %v4097_v58, %v3836_v3  ;;  %v4587_v43 = vsel %vm1637_vm2, %v4545_v17, 0.0  ;;  %v3904_v63 = vsel %vm1637_vm2, %v2591_v44, %v8848_v20 }
 0x60e   : > { %v4585_v9 = vsel %vm1637_vm2, %v4544_v23, 0.0  ;;  %5133 = vmatmul.mubr.msk.f32.gmra.mrb[26].mxu1 %vm4142_vm0, %v4130_v38  ;;  %v3936_v12 = vsel %vm1703_vm5, %v3904_v63, %v8850_v25 }
 0x60f   : > { %v4586_v32 = vadd.f32 %v4585_v9, %v4584_v21  ;;  %v4486_v59 = vadd.f32 %v4485_v47, %v4484_v60  ;;  %v3935_v21 = vsel %vm1703_vm5, %v3903_v46, %v8851_v18  ;;  %v3968_v31 = vsel %vm1769_vm7, %v3936_v12, %v3200_v16 }
 0x610   : > { %v3584_v35 = vpop.permute.xlu1 %3583  ;;  %v3582_v56 = vpop.permute.xlu0 %3581  ;;  %v3967_v62 = vsel %vm1769_vm7, %v3935_v21, %v3198_v48  ;;  %v4000_v0 = vsel %vm1835_vm9, %v3968_v31, %v3328_v29 }
 0x611   : > { %v4588_v45 = vadd.f32 %v4587_v43, %v4586_v32  ;;  %v3999_v15 = vsel %vm1835_vm9, %v3967_v62, %v3326_v4  ;;  %v4033_v11 = vsel %vm4001_vm12, %v4000_v0, %v3456_v6 }
 0x612   : > { %v4032_v2 = vsel %vm4001_vm12, %v3999_v15, %v3454_v27  ;;  %v4066_v28 = vsel %vm4034_vm13, %v4033_v11, %v3584_v35 }
 0x613   : > { %v4065_v13 = vsel %vm4034_vm13, %v4032_v2, %v3582_v56 }
 0x614   : > { %v3712_v10 = vpop.permute.xlu1 %3711  ;;  %v3710_v36 = vpop.permute.xlu0 %3709 }
 0x615   : > { %v4099_v33 = vsel %vm4067_vm14, %v4066_v28, %v3712_v10  ;;  %v4098_v48 = vsel %vm4067_vm14, %v4065_v13, %v3710_v36 }
 0x618   : > { %v3840_v54 = vpop.permute.xlu1 %3839  ;;  %v3838_v16 = vpop.permute.xlu0 %3837 }
 0x619   : > { %v4132_v55 = vsel %vm4100_vm15, %v4099_v33, %v3840_v54  ;;  %v4131_v4 = vsel %vm4100_vm15, %v4098_v48, %v3838_v16 }
 0x61a   : > { %5135 = vmatprep.mubr.msk.f32.mxu1 %vm4142_vm0, %v4131_v4 }
 0x61b   : > { %5136 = vmatmul.mubr.msk.f32.gmra.mrb[28].mxu1 %vm4142_vm0, %v4132_v55 }
 0x622   : > { %v8315_v8 = vpop.f32.mrb[10].mxu1 }
 0x623   : > { %v8317_v24 = vpop.f32.mrb[11].mxu1  ;;  %v4547_v50 = vmul.f32 %v8315_v8, %v8315_v8  ;;  %v4489_v29 = vsel %vm1637_vm2, %v8315_v8, 0.0 }
 0x624   : > { %v4487_v53 = vsel %vm1637_vm2, %v8317_v24, 0.0  ;;  %v4546_v7 = vmul.f32 %v8317_v24, %v8317_v24 }
 0x625   : > { %v4488_v27 = vadd.f32 %v4487_v53, %v4486_v59  ;;  %v4591_v58 = vsel %vm1637_vm2, %v4547_v50, 0.0 }
 0x626   : > { %v4589_v5 = vsel %vm1637_vm2, %v4546_v7, 0.0 }
 0x627   : > { %v4590_v39 = vadd.f32 %v4589_v5, %v4588_v45  ;;  %v4490_v49 = vadd.f32 %v4489_v29, %v4488_v27 }
 0x629   : > { %v4592_v17 = vadd.f32 %v4591_v58, %v4590_v39 }
 0x63a   : > { %v8329_v57 = vpop.f32.mrb[12].mxu1 }
 0x63b   : > { %v8331_v23 = vpop.f32.mrb[13].mxu1  ;;  %v4549_v6 = vmul.f32 %v8329_v57, %v8329_v57  ;;  %v4493_v47 = vsel %vm1637_vm2, %v8329_v57, 0.0 }
 0x63c   : > { %v4491_v3 = vsel %vm1637_vm2, %v8331_v23, 0.0  ;;  %v4548_v60 = vmul.f32 %v8331_v23, %v8331_v23 }
 0x63d   : > { %v4492_v38 = vadd.f32 %v4491_v3, %v4490_v49  ;;  %v4595_v43 = vsel %vm1637_vm2, %v4549_v6, 0.0 }
 0x63e   : > { %v4593_v9 = vsel %vm1637_vm2, %v4548_v60, 0.0 }
 0x63f   : > { %v4594_v32 = vadd.f32 %v4593_v9, %v4592_v17  ;;  %v4494_v59 = vadd.f32 %v4493_v47, %v4492_v38 }
 0x641   : > { %v4596_v35 = vadd.f32 %v4595_v43, %v4594_v32 }
 0x652   : > { %v8343_v56 = vpop.f32.mrb[14].mxu1 }
 0x653   : > { %v8345_v44 = vpop.f32.mrb[15].mxu1  ;;  %v4551_v61 = vmul.f32 %v8343_v56, %v8343_v56  ;;  %v4497_v40 = vsel %vm1637_vm2, %v8343_v56, 0.0 }
 0x654   : > { %v4495_v45 = vsel %vm1637_vm2, %v8345_v44, 0.0  ;;  %v4550_v20 = vmul.f32 %v8345_v44, %v8345_v44 }
 0x655   : > { %v4496_v63 = vadd.f32 %v4495_v45, %v4494_v59  ;;  %v4599_v18 = vsel %vm1637_vm2, %v4551_v61, 0.0 }
 0x656   : > { %v4597_v46 = vsel %vm1637_vm2, %v4550_v20, 0.0 }
 0x657   : > { %v4598_v25 = vadd.f32 %v4597_v46, %v4596_v35  ;;  %v4498_v12 = vadd.f32 %v4497_v40, %v4496_v63 }
 0x659   : > { %v4600_v21 = vadd.f32 %v4599_v18, %v4598_v25 }
 0x66a   : > { %v8357_v62 = vpop.f32.mrb[16].mxu1 }
 0x66b   : > { %v8359_v31 = vpop.f32.mrb[17].mxu1  ;;  %v4553_v10 = vmul.f32 %v8357_v62, %v8357_v62  ;;  %v4501_v2 = vsel %vm1637_vm2, %v8357_v62, 0.0 }
 0x66c   : > { %v4499_v36 = vsel %vm1637_vm2, %v8359_v31, 0.0  ;;  %v4552_v15 = vmul.f32 %v8359_v31, %v8359_v31 }
 0x66d   : > { %v4500_v0 = vadd.f32 %v4499_v36, %v4498_v12  ;;  %v4603_v33 = vsel %vm1637_vm2, %v4553_v10, 0.0 }
 0x66e   : > { %v4601_v11 = vsel %vm1637_vm2, %v4552_v15, 0.0 }
 0x66f   : > { %v4602_v28 = vadd.f32 %v4601_v11, %v4600_v21  ;;  %v4502_v13 = vadd.f32 %v4501_v2, %v4500_v0 }
 0x671   : > { %v4604_v48 = vadd.f32 %v4603_v33, %v4602_v28 }
 0x681   : > { %v8371_v54 = vpop.f32.mrb[18].mxu1 }
 0x682   : > { %v8373_v16 = vpop.f32.mrb[19].mxu1  ;;  %v4555_v55 = vmul.f32 %v8371_v54, %v8371_v54  ;;  %v4505_v7 = vsel %vm1637_vm2, %v8371_v54, 0.0 }
 0x683   : > { %v4503_v4 = vsel %vm1637_vm2, %v8373_v16, 0.0  ;;  %v4554_v50 = vmul.f32 %v8373_v16, %v8373_v16 }
 0x684   : > { %v4504_v53 = vadd.f32 %v4503_v4, %v4502_v13  ;;  %v4607_v39 = vsel %vm1637_vm2, %v4555_v55, 0.0 }
 0x685   : > { %v4605_v27 = vsel %vm1637_vm2, %v4554_v50, 0.0 }
 0x686   : > { %v4606_v29 = vadd.f32 %v4605_v27, %v4604_v48  ;;  %v4506_v5 = vadd.f32 %v4505_v7, %v4504_v53 }
 0x688   : > { %v4608_v49 = vadd.f32 %v4607_v39, %v4606_v29 }
 0x699   : > { %v8385_v58 = vpop.f32.mrb[20].mxu1 }
 0x69a   : > { %v8387_v17 = vpop.f32.mrb[21].mxu1  ;;  %v4557_v6 = vmul.f32 %v8385_v58, %v8385_v58  ;;  %v4509_v47 = vsel %vm1637_vm2, %v8385_v58, 0.0 }
 0x69b   : > { %v4507_v3 = vsel %vm1637_vm2, %v8387_v17, 0.0  ;;  %v4556_v60 = vmul.f32 %v8387_v17, %v8387_v17 }
 0x69c   : > { %v4508_v38 = vadd.f32 %v4507_v3, %v4506_v5  ;;  %v4611_v43 = vsel %vm1637_vm2, %v4557_v6, 0.0 }
 0x69d   : > { %v4609_v9 = vsel %vm1637_vm2, %v4556_v60, 0.0 }
 0x69e   : > { %v4610_v32 = vadd.f32 %v4609_v9, %v4608_v49  ;;  %v4510_v59 = vadd.f32 %v4509_v47, %v4508_v38 }
 0x6a0   : > { %v4612_v35 = vadd.f32 %v4611_v43, %v4610_v32 }
 0x6b1   : > { %v8399_v61 = vpop.f32.mrb[22].mxu1 }
 0x6b2   : > { %v8401_v45 = vpop.f32.mrb[23].mxu1  ;;  %v4559_v20 = vmul.f32 %v8399_v61, %v8399_v61  ;;  %v4513_v25 = vsel %vm1637_vm2, %v8399_v61, 0.0 }
 0x6b3   : > { %v4511_v63 = vsel %vm1637_vm2, %v8401_v45, 0.0  ;;  %v4558_v40 = vmul.f32 %v8401_v45, %v8401_v45 }
 0x6b4   : > { %v4512_v46 = vadd.f32 %v4511_v63, %v4510_v59  ;;  %v4615_v10 = vsel %vm1637_vm2, %v4559_v20, 0.0 }
 0x6b5   : > { %v4613_v12 = vsel %vm1637_vm2, %v4558_v40, 0.0 }
 0x6b6   : > { %v4614_v18 = vadd.f32 %v4613_v12, %v4612_v35  ;;  %v4514_v21 = vadd.f32 %v4513_v25, %v4512_v46 }
 0x6b8   : > { %v4616_v36 = vadd.f32 %v4615_v10, %v4614_v18 }
 0x6c9   : > { %v8413_v15 = vpop.f32.mrb[24].mxu1 }
 0x6ca   : > { %v8415_v0 = vpop.f32.mrb[25].mxu1  ;;  %v4561_v2 = vmul.f32 %v8413_v15, %v8413_v15  ;;  %v4517_v33 = vsel %vm1637_vm2, %v8413_v15, 0.0 }
 0x6cb   : > { %v4515_v11 = vsel %vm1637_vm2, %v8415_v0, 0.0  ;;  %v4560_v28 = vmul.f32 %v8415_v0, %v8415_v0 }
 0x6cc   : > { %v4516_v13 = vadd.f32 %v4515_v11, %v4514_v21  ;;  %v4619_v50 = vsel %vm1637_vm2, %v4561_v2, 0.0 }
 0x6cd   : > { %v4617_v48 = vsel %vm1637_vm2, %v4560_v28, 0.0 }
 0x6ce   : > { %v4618_v55 = vadd.f32 %v4617_v48, %v4616_v36  ;;  %v4518_v4 = vadd.f32 %v4517_v33, %v4516_v13 }
 0x6d0   : > { %v4620_v53 = vadd.f32 %v4619_v50, %v4618_v55 }
 0x6e1   : > { %v8427_v7 = vpop.f32.mrb[26].mxu1 }
 0x6e2   : > { %v8429_v27 = vpop.f32.mrb[27].mxu1  ;;  %v4563_v29 = vmul.f32 %v8427_v7, %v8427_v7  ;;  %v4521_v6 = vsel %vm1637_vm2, %v8427_v7, 0.0 }
 0x6e3   : > { %v4519_v5 = vsel %vm1637_vm2, %v8429_v27, 0.0  ;;  %v4562_v39 = vmul.f32 %v8429_v27, %v8429_v27 }
 0x6e4   : > { %v4520_v49 = vadd.f32 %v4519_v5, %v4518_v4  ;;  %v4623_v47 = vsel %vm1637_vm2, %v4563_v29, 0.0 }
 0x6e5   : > { %v4621_v3 = vsel %vm1637_vm2, %v4562_v39, 0.0 }
 0x6e6   : > { %v4622_v60 = vadd.f32 %v4621_v3, %v4620_v53  ;;  %v4522_v38 = vadd.f32 %v4521_v6, %v4520_v49 }
 0x6e8   : > { %v4624_v9 = vadd.f32 %v4623_v47, %v4622_v60 }
 0x6ee   : > { %v8441_v32 = vpop.f32.mrb[28].mxu1 }
 0x6ef   : > { %v8443_v59 = vpop.f32.mrb[29].mxu1  ;;  %v4565_v43 = vmul.f32 %v8441_v32, %v8441_v32  ;;  %v4525_v40 = vsel %vm1637_vm2, %v8441_v32, 0.0 }
 0x6f0   : > { %v4523_v35 = vsel %vm1637_vm2, %v8443_v59, 0.0  ;;  %v4564_v20 = vmul.f32 %v8443_v59, %v8443_v59 }
 0x6f1   : > { %v4524_v63 = vadd.f32 %v4523_v35, %v4522_v38  ;;  %v4627_v18 = vsel %vm1637_vm2, %v4565_v43, 0.0 }
 0x6f2   : > { %v4625_v46 = vsel %vm1637_vm2, %v4564_v20, 0.0 }
 0x6f3   : > { %v4526_v25 = vadd.f32 %v4525_v40, %v4524_v63  ;;  %v4626_v12 = vadd.f32 %v4625_v46, %v4624_v9 }
 0x6f5   : > { %v4527_v21 = vrot.slane %v4526_v25, 4  ;;  %v4628_v10 = vadd.f32 %v4627_v18, %v4626_v12 }
 0x6f7   : > { %v4528_v36 = vadd.f32 %v4527_v21, %v4526_v25  ;;  %v4629_v2 = vrot.slane %v4628_v10, 4 }
 0x6f9   : > { %v4529_v11 = vrot.slane %v4528_v36, 2  ;;  %v4630_v28 = vadd.f32 %v4629_v2, %v4628_v10 }
 0x6fb   : > { %v4530_v13 = vadd.f32 %v4529_v11, %v4528_v36  ;;  %v4631_v33 = vrot.slane %v4630_v28, 2 }
 0x6fd   : > { %v4531_v48 = vrot.slane %v4530_v13, 1  ;;  %v4632_v55 = vadd.f32 %v4631_v33, %v4630_v28 }
 0x6ff   : > { %v4532_v4 = vadd.f32 %v4531_v48, %v4530_v13  ;;  %v4633_v50 = vrot.slane %v4632_v55, 1 }
 0x701   : > { %v8455_v53 = vmul.f32 0.00390625, %v4532_v4  ;;  %v4634_v29 = vadd.f32 %v4633_v50, %v4632_v55 }
 0x703   : > { %v4635_v5 = vmul.f32 0.00390625, %v4634_v29  ;;  %v4636_v39 = vmul.f32 %v8455_v53, %v8455_v53  ;;  %v4669_v49 = vsub.f32 %v8443_v59, %v8455_v53  ;;  %v4639_v6 = vsub.f32 %v8112_v34, %v8455_v53 }
 0x704   : > { %v4640_v3 = vsub.f32 %v8102_v19, %v8455_v53  ;;  %v4641_v60 = vsub.f32 %v8131_v37, %v8455_v53  ;;  %v4642_v38 = vsub.f32 %v8129_v42, %v8455_v53  ;;  %v4643_v47 = vsub.f32 %v8171_v1, %v8455_v53 }
 0x705   : > { %v4637_v9 = vsub.f32 %v4635_v5, %v4636_v39  ;;  %v4644_v43 = vsub.f32 %v8168_v14, %v8455_v53  ;;  %v4645_v59 = vsub.f32 %v8206_v41, %v8455_v53  ;;  %v4646_v34 = vsub.f32 %v8203_v52, %v8455_v53 }
 0x706   : > { %v4647_v19 = vsub.f32 %v8242_v51, %v8455_v53  ;;  %v4648_v37 = vsub.f32 %v8239_v26, %v8455_v53  ;;  %v4649_v42 = vsub.f32 %v8278_v30, %v8455_v53  ;;  %v4650_v1 = vsub.f32 %v8275_v22, %v8455_v53 }
 0x707   : > { %v4638_v35 = vmax.f32 %v4637_v9, 0.0  ;;  %v4651_v14 = vsub.f32 %v8317_v24, %v8455_v53  ;;  %v4652_v41 = vsub.f32 %v8315_v8, %v8455_v53  ;;  %v4653_v52 = vsub.f32 %v8331_v23, %v8455_v53 }
 0x708   : > { %v4654_v51 = vsub.f32 %v8329_v57, %v8455_v53  ;;  %v4655_v26 = vsub.f32 %v8345_v44, %v8455_v53  ;;  %v4656_v30 = vsub.f32 %v8343_v56, %v8455_v53  ;;  %v4657_v22 = vsub.f32 %v8359_v31, %v8455_v53 }
 0x709   : > { %v4671_v20 = vadd.f32 1e-05, %v4638_v35  ;;  %v4658_v24 = vsub.f32 %v8357_v62, %v8455_v53  ;;  %v4659_v8 = vsub.f32 %v8373_v16, %v8455_v53  ;;  %v4660_v23 = vsub.f32 %v8371_v54, %v8455_v53 }
 0x70a   : > { %v4661_v63 = vsub.f32 %v8387_v17, %v8455_v53  ;;  %v4662_v44 = vsub.f32 %v8385_v58, %v8455_v53  ;;  %v4663_v56 = vsub.f32 %v8401_v45, %v8455_v53  ;;  %v4664_v31 = vsub.f32 %v8399_v61, %v8455_v53 }
 0x70b   : > { %5195 = vrsqrt.f32 %v4671_v20  ;;  %v4665_v62 = vsub.f32 %v8415_v0, %v8455_v53  ;;  %v4666_v16 = vsub.f32 %v8413_v15, %v8455_v53  ;;  %v4667_v54 = vsub.f32 %v8429_v27, %v8455_v53 }
 0x70c   : > { %v4668_v17 = vsub.f32 %v8427_v7, %v8455_v53  ;;  %v4670_v58 = vsub.f32 %v8441_v32, %v8455_v53 }
 0x715   : > { %v5196_v45 = vpop.eup %5195 }
 0x716   : > { %v8523_v40 = vmul.f32 %v5196_v45, %v4669_v49  ;;  %v4689_v61 = vmul.f32 %v5196_v45, %v4655_v26  ;;  %v4673_v46 = vmul.f32 %v5196_v45, %v4639_v6  ;;  %v4690_v25 = vmul.f32 %v5196_v45, %v4656_v30 }
 0x717   : > { %v4674_v12 = vmul.f32 %v5196_v45, %v4640_v3  ;;  %v4691_v0 = vmul.f32 %v5196_v45, %v4657_v22  ;;  %v4675_v18 = vmul.f32 %v5196_v45, %v4641_v60  ;;  %v4692_v21 = vmul.f32 %v5196_v45, %v4658_v24 }
 0x718   : > { %v4721_v15 = vmax.f32 %v4689_v61, 0.0  ;;  %v4705_v10 = vmax.f32 %v4673_v46, 0.0  ;;  %v4676_v36 = vmul.f32 %v5196_v45, %v4642_v38  ;;  %v4693_v27 = vmul.f32 %v5196_v45, %v4659_v8 }
 0x719   : > { %v4677_v7 = vmul.f32 %v5196_v45, %v4643_v47  ;;  %v4694_v2 = vmul.f32 %v5196_v45, %v4660_v23  ;;  %v4678_v11 = vmul.f32 %v5196_v45, %v4644_v43  ;;  %v4695_v32 = vmul.f32 %v5196_v45, %v4661_v63 }
 0x71a   : > { %4769 = vxpose.xlu1.b32.start [1/16] (narrow) %v4721_v15, 8  ;;  %4737 = vxpose.xlu0.b32.start [1/16] (narrow) %v4705_v10, 8  ;;  %v4679_v28 = vmul.f32 %v5196_v45, %v4645_v59  ;;  %v4696_v13 = vmul.f32 %v5196_v45, %v4662_v44  ;;  %v4722_v33 = vmax.f32 %v4690_v25, 0.0  ;;  %v4706_v48 = vmax.f32 %v4674_v12, 0.0 }
 0x71b   : > { %v4680_v55 = vmul.f32 %v5196_v45, %v4646_v34  ;;  %v4697_v4 = vmul.f32 %v5196_v45, %v4663_v56  ;;  %v4681_v50 = vmul.f32 %v5196_v45, %v4647_v19  ;;  %v4698_v29 = vmul.f32 %v5196_v45, %v4664_v31 }
 0x71c   : > { %v4682_v5 = vmul.f32 %v5196_v45, %v4648_v37  ;;  %v4699_v39 = vmul.f32 %v5196_v45, %v4665_v62  ;;  %v4683_v49 = vmul.f32 %v5196_v45, %v4649_v42  ;;  %v4700_v6 = vmul.f32 %v5196_v45, %v4666_v16 }
 0x71d   : > { %v4723_v3 = vmax.f32 %v4691_v0, 0.0  ;;  %v4707_v60 = vmax.f32 %v4675_v18, 0.0  ;;  %v4684_v38 = vmul.f32 %v5196_v45, %v4650_v1  ;;  %v4701_v47 = vmul.f32 %v5196_v45, %v4667_v54 }
 0x71e   : > { %4770 = vxpose.xlu1.b32.cont [2/16] (narrow) %v4722_v33, 8  ;;  %4738 = vxpose.xlu0.b32.cont [2/16] (narrow) %v4706_v48, 8  ;;  %v4685_v9 = vmul.f32 %v5196_v45, %v4651_v14  ;;  %v4702_v43 = vmul.f32 %v5196_v45, %v4668_v17  ;;  %v4686_v59 = vmul.f32 %v5196_v45, %v4652_v41  ;;  %v4724_v26 = vmax.f32 %v4692_v21, 0.0 }
 0x71f   : > { %v4687_v35 = vmul.f32 %v5196_v45, %v4653_v52  ;;  %v4704_v34 = vmul.f32 %v5196_v45, %v4670_v58  ;;  %v4708_v30 = vmax.f32 %v4676_v36, 0.0  ;;  %v4688_v19 = vmul.f32 %v5196_v45, %v4654_v51 }
 0x720   : > { %v4725_v37 = vmax.f32 %v4693_v27, 0.0  ;;  %v4709_v42 = vmax.f32 %v4677_v7, 0.0  ;;  %v4726_v1 = vmax.f32 %v4694_v2, 0.0  ;;  %v4710_v22 = vmax.f32 %v4678_v11, 0.0 }
 0x721   : > { %v4727_v14 = vmax.f32 %v4695_v32, 0.0  ;;  %v4711_v41 = vmax.f32 %v4679_v28, 0.0  ;;  %v4728_v52 = vmax.f32 %v4696_v13, 0.0  ;;  %v4712_v20 = vmax.f32 %v4680_v55, 0.0 }
 0x722   : > { %4771 = vxpose.xlu1.b32.cont [3/16] (narrow) %v4723_v3, 8  ;;  %4739 = vxpose.xlu0.b32.cont [3/16] (narrow) %v4707_v60, 8  ;;  %v4729_v57 = vmax.f32 %v4697_v4, 0.0  ;;  %v4713_v53 = vmax.f32 %v4681_v50, 0.0  ;;  %v4730_v51 = vmax.f32 %v4698_v29, 0.0  ;;  %v4714_v24 = vmax.f32 %v4682_v5, 0.0 }
 0x723   : > { %v4731_v8 = vmax.f32 %v4699_v39, 0.0  ;;  %v4715_v23 = vmax.f32 %v4683_v49, 0.0  ;;  %v4732_v63 = vmax.f32 %v4700_v6, 0.0  ;;  %v4716_v44 = vmax.f32 %v4684_v38, 0.0 }
 0x724   : > { %v4733_v56 = vmax.f32 %v4701_v47, 0.0  ;;  %v4717_v31 = vmax.f32 %v4685_v9, 0.0  ;;  %v4734_v62 = vmax.f32 %v4702_v43, 0.0  ;;  %v4718_v16 = vmax.f32 %v4686_v59, 0.0 }
 0x725   : > { %v4735_v54 = vmax.f32 %v8523_v40, 0.0  ;;  %v4719_v17 = vmax.f32 %v4687_v35, 0.0  ;;  %v4736_v58 = vmax.f32 %v4704_v34, 0.0  ;;  %v4720_v45 = vmax.f32 %v4688_v19, 0.0 }
 0x726   : > { %4772 = vxpose.xlu1.b32.cont [4/16] (narrow) %v4724_v26, 8  ;;  %4740 = vxpose.xlu0.b32.cont [4/16] (narrow) %v4708_v30, 8 }
 0x72a   : > { %4773 = vxpose.xlu1.b32.cont [5/16] (narrow) %v4725_v37, 8  ;;  %4741 = vxpose.xlu0.b32.cont [5/16] (narrow) %v4709_v42, 8 }
 0x72e   : > { %4774 = vxpose.xlu1.b32.cont [6/16] (narrow) %v4726_v1, 8  ;;  %4742 = vxpose.xlu0.b32.cont [6/16] (narrow) %v4710_v22, 8 }
 0x732   : > { %4775 = vxpose.xlu1.b32.cont [7/16] (narrow) %v4727_v14, 8  ;;  %4743 = vxpose.xlu0.b32.cont [7/16] (narrow) %v4711_v41, 8 }
 0x736   : > { %4776 = vxpose.xlu1.b32.cont [8/16] (narrow) %v4728_v52, 8  ;;  %4744 = vxpose.xlu0.b32.cont [8/16] (narrow) %v4712_v20, 8 }
 0x73a   : > { %4777 = vxpose.xlu1.b32.cont [9/16] (narrow) %v4729_v57, 8  ;;  %4745 = vxpose.xlu0.b32.cont [9/16] (narrow) %v4713_v53, 8 }
 0x73e   : > { %4778 = vxpose.xlu1.b32.cont [10/16] (narrow) %v4730_v51, 8  ;;  %4746 = vxpose.xlu0.b32.cont [10/16] (narrow) %v4714_v24, 8 }
 0x742   : > { %4779 = vxpose.xlu1.b32.cont [11/16] (narrow) %v4731_v8, 8  ;;  %4747 = vxpose.xlu0.b32.cont [11/16] (narrow) %v4715_v23, 8 }
 0x746   : > { %4780 = vxpose.xlu1.b32.cont [12/16] (narrow) %v4732_v63, 8  ;;  %4748 = vxpose.xlu0.b32.cont [12/16] (narrow) %v4716_v44, 8 }
 0x74a   : > { %4781 = vxpose.xlu1.b32.cont [13/16] (narrow) %v4733_v56, 8  ;;  %4749 = vxpose.xlu0.b32.cont [13/16] (narrow) %v4717_v31, 8 }
 0x74e   : > { %4782 = vxpose.xlu1.b32.cont [14/16] (narrow) %v4734_v62, 8  ;;  %4750 = vxpose.xlu0.b32.cont [14/16] (narrow) %v4718_v16, 8 }
 0x752   : > { %4783 = vxpose.xlu1.b32.cont [15/16] (narrow) %v4735_v54, 8  ;;  %4751 = vxpose.xlu0.b32.cont [15/16] (narrow) %v4719_v17, 8 }
 0x756   : > { %4784 = vxpose.xlu1.b32.end [16/16] (narrow) %v4736_v58, 8  ;;  %4752 = vxpose.xlu0.b32.end [16/16] (narrow) %v4720_v45, 8 }
 0x79a   : > { %v4785_v61 = vpop.trf.xlu1  ;;  %v4753_v46 = vpop.trf.xlu0 }
 0x79b   : > { %4802 = vst [vmem:[%s170_s10 + $0x8] sm:$0xff] %v4785_v61  ;;  %4801 = vst [vmem:[%s170_s10] sm:$0xff] %v4753_v46 }
 0x79c PF: > { %s13_s12 = sadd.s32 1, %s5223_s12  }
 0x79d   : > { %p10_p4 = scmp.ge.s32.totalorder %s13_s12, 4  }
 0x79f   :  { %12 = sbr.rel (!%p10_p4) target bundleno = 1 (0x1), region = 66 }

</bundles_post_ra>
